<compile_context>
chip_gen: v7x
topology: tpu7x:2x2x1
jax: 0.10.0
libtpu: 0.0.40
codegen_flags: <defaults>
</compile_context>

<pallas_src>
import functools

import jax
import jax.numpy as jnp
from jax.experimental import pallas as pl
from jax.experimental.pallas import tpu as pltpu


# ----------------------------- Pallas kernel ------------------------------- #
def _matmul_bias_act_kernel(x_ref, w_ref, b_ref, o_ref, *, relu):
    """One (tm, tn) tile of relu?(x @ w + b).

    Grid axis 2 reduces over K. The output tile is VMEM-resident across the K
    steps (its index_map ignores k) and is used directly as the accumulator, so
    no scratch accumulator / extra copy is needed.
    """
    k = pl.program_id(2)
    x = x_ref[...]
    w = w_ref[...]
    if w.dtype != jnp.float32:
        x = x.astype(w.dtype)  # bf16 weights -> MXU-native bf16 matmul, f32 accum
    part = jnp.dot(x, w, preferred_element_type=jnp.float32)

    @pl.when(k == 0)
    def _():
        o_ref[...] = part

    @pl.when(k > 0)
    def _():
        o_ref[...] = o_ref[...] + part

    @pl.when(k == pl.num_programs(2) - 1)
    def _():
        out = o_ref[...] + b_ref[...]  # bias broadcast over rows
        if relu:
            out = jnp.maximum(out, 0.0)
        o_ref[...] = out


def _round_up(x, m):
    return -(-x // m) * m


def _pick_tile(d, unit, cap):
    """Full extent if d <= cap, else the largest multiple of `unit` <= cap dividing d."""
    if d <= cap:
        return d
    best = unit
    t = unit
    while t <= cap:
        if d % t == 0:
            best = t
        t += unit
    return best


def _pad_axis(x, size, axis):
    pad = size - x.shape[axis]
    if pad == 0:
        return x
    widths = [(0, 0)] * x.ndim
    widths[axis] = (0, pad)
    return jnp.pad(x, widths)


# Shape-aware tile caps (generation-safe: worst case here is FC1 with two
# (1792, 256) bf16 weight buffers + tiny x/out tiles ~= 2 MB of VMEM).
_M_CAP = 512    # M padded only to 8 (f32 sublane min); M=2/450/392 never hits 128
_N_CAP = 256    # N=512 (FC1) -> 2 tiles so both v7x TensorCores get work
_K_CAP = 2048   # K=12544 (FC1) -> tk=1792 -> 7 reduction steps instead of 98


def matmul_bias_act(x, w, b, relu):
    """y = relu?(x @ w + b). x:(M,K) f32, w:(K,N) f32/bf16, b:(N,) f32 -> (M,N) f32."""
    M, K = x.shape
    Kw, N = w.shape
    assert K == Kw

    Mp = _round_up(M, 8)
    tm = _pick_tile(Mp, 8, _M_CAP)
    Kp = K if K <= _K_CAP else _round_up(K, 128)
    tk = _pick_tile(Kp, 128, _K_CAP)
    Np = N if N <= _N_CAP else _round_up(N, 128)
    tn = _pick_tile(Np, 128, _N_CAP)

    xp = _pad_axis(_pad_axis(x.astype(jnp.float32), Mp, 0), Kp, 1)
    wp = _pad_axis(_pad_axis(w, Kp, 0), Np, 1)
    bp = _pad_axis(b.astype(jnp.float32).reshape(1, -1), Np, 1)

    out = pl.pallas_call(
        functools.partial(_matmul_bias_act_kernel, relu=relu),
        out_shape=jax.ShapeDtypeStruct((Mp, Np), jnp.float32),
        grid_spec=pltpu.PrefetchScalarGridSpec(
            num_scalar_prefetch=0,
            grid=(Mp // tm, Np // tn, Kp // tk),
            in_specs=[
                pl.BlockSpec((tm, tk), lambda i, j, k: (i, k)),
                pl.BlockSpec((tk, tn), lambda i, j, k: (k, j)),
                pl.BlockSpec((1, tn), lambda i, j, k: (0, j)),
            ],
            out_specs=pl.BlockSpec((tm, tn), lambda i, j, k: (i, j)),
        ),
        compiler_params=pltpu.CompilerParams(
            dimension_semantics=("parallel", "parallel", "arbitrary")
        ),
    )(xp, wp, bp)
    return out[:M, :N]


# ----------------------------- conv via im2col ----------------------------- #
def conv2d_relu(x_nhwc, w_oihw, b):
    """VALID conv, stride 1, fused bias+ReLU. Weight layout matches PyTorch OIHW."""
    # TODO(synk): fold the 3-conv stack into one VMEM-resident Pallas kernel so the
    # tiny intermediate activations never round-trip HBM (im2col stays XLA glue here).
    N, H, W, C = x_nhwc.shape
    O, Ci, KH, KW = w_oihw.shape
    assert Ci == C
    Ho, Wo = H - KH + 1, W - KW + 1
    if KH == 1 and KW == 1:
        p = x_nhwc.reshape(N * H * W, C)
        wm = w_oihw.reshape(O, C).T
    else:
        cols = [x_nhwc[:, dh:dh + Ho, dw:dw + Wo, :]
                for dh in range(KH) for dw in range(KW)]
        p = jnp.concatenate(cols, axis=-1).reshape(N * Ho * Wo, KH * KW * C)
        # patch feature order is (kh, kw, c) -> reorder OIHW weights to match
        wm = w_oihw.transpose(2, 3, 1, 0).reshape(KH * KW * C, O)
    y = matmul_bias_act(p, wm, b, relu=True)
    return y.reshape(N, Ho, Wo, O)


# ------------------------------- full model -------------------------------- #
def init_params(key, input_shape, action_space):
    C, H, W = input_shape
    Ho, Wo = H - 2, W - 2  # two 2x2 VALID convs, then a 1x1
    feat = 64 * Ho * Wo
    ks = jax.random.split(key, 10)
    u = lambda k, shp, s: jax.random.uniform(k, shp, jnp.float32, -s, s)
    p = {
        "w1": u(ks[0], (32, C, 2, 2), 0.1), "b1": u(ks[1], (32,), 0.1),
        "w2": u(ks[2], (64, 32, 2, 2), 0.05), "b2": u(ks[3], (64,), 0.05),
        "w3": u(ks[4], (64, 64, 1, 1), 0.05), "b3": u(ks[5], (64,), 0.05),
        "wl1": u(ks[6], (feat, 512), 0.02), "bl1": u(ks[7], (512,), 0.02),
        "wl2": u(ks[8], (512, action_space), 0.05), "bl2": u(ks[9], (action_space,), 0.05),
    }
    # FC1 is HBM-bound on its 12544x512 weight: stream it as bf16 (cast once here,
    # not per call); the kernel accumulates in f32.
    p["wl1_bf16"] = p["wl1"].astype(jnp.bfloat16)
    return p


def cnn_forward(x_nchw, params):
    # layout: x_nchw is (N, C, H, W) like PyTorch; converted to NHWC for the convs.
    x = jnp.transpose(x_nchw.astype(jnp.float32), (0, 2, 3, 1)) / 255.0
    x = conv2d_relu(x, params["w1"], params["b1"])
    x = conv2d_relu(x, params["w2"], params["b2"])
    x = conv2d_relu(x, params["w3"], params["b3"])
    # PyTorch's Flatten acts on NCHW, so flatten in (C, H, W) order.
    x = jnp.transpose(x, (0, 3, 1, 2)).reshape(x.shape[0], -1)
    x = matmul_bias_act(x, params["wl1_bf16"], params["bl1"], relu=True)
    x = matmul_bias_act(x, params["wl2"], params["bl2"], relu=False)
    return x


def reference_forward(x_nchw, params):
    """Pure-JAX (XLA, full f32) reference mirroring the PyTorch module semantics."""
    x = x_nchw.astype(jnp.float32) / 255.0

    def conv(x, w, b):
        y = jax.lax.conv_general_dilated(
            x, w, (1, 1), "VALID", dimension_numbers=("NCHW", "OIHW", "NCHW")
        )
        return jax.nn.relu(y + b[None, :, None, None])

    x = conv(x, params["w1"], params["b1"])
    x = conv(x, params["w2"], params["b2"])
    x = conv(x, params["w3"], params["b3"])
    x = x.reshape(x.shape[0], -1)
    x = jax.nn.relu(x @ params["wl1"] + params["bl1"])
    return x @ params["wl2"] + params["bl2"]


if __name__ == "__main__":
    key = jax.random.PRNGKey(0)
    k_params, k_x = jax.random.split(key)

    input_shape = (4, 16, 16)   # (C, H, W)
    action_space = 6
    batch = 2

    params = init_params(k_params, input_shape, action_space)
    x = jax.random.uniform(k_x, (batch, *input_shape), jnp.float32, 0.0, 255.0)

    fwd = jax.jit(cnn_forward)
    ref_fn = jax.jit(reference_forward)

    out = jax.block_until_ready(fwd(x, params))
    ref = jax.block_until_ready(ref_fn(x, params))

    assert out.shape == (batch, action_space), out.shape
    assert jnp.allclose(out, ref, rtol=2e-2, atol=2e-2), (out, ref)
    print("KERNEL_OK")
</pallas_src>

<mosaic_0001>
module attributes {stable_mosaic.version = 11 : i64} {
  func.func @_matmul_bias_act_kernel(%arg0: i32, %arg1: i32, %arg2: i32, %arg3: memref<456x16xf32, #tpu.memory_space<vmem>>, %arg4: memref<16x32xf32, #tpu.memory_space<vmem>>, %arg5: memref<1x32xf32, #tpu.memory_space<vmem>>, %arg6: memref<456x32xf32, #tpu.memory_space<vmem>>) attributes {dimension_semantics = [#tpu.dimension_semantics<parallel>, #tpu.dimension_semantics<parallel>, #tpu.dimension_semantics<arbitrary>], iteration_bounds = array<i64: 1, 1, 1>, scalar_prefetch = 0 : i64, scratch_operands = 0 : i64, tpu.core_type = #tpu.core_type<tc>, window_params = [{transform_indices = @transform_0, window_bounds = array<i64: 456, 16>}, {transform_indices = @transform_1, window_bounds = array<i64: 16, 32>}, {transform_indices = @transform_2, window_bounds = array<i64: 1, 32>}, {transform_indices = @transform_3, window_bounds = array<i64: 456, 32>}]} {
    %c0 = arith.constant 0 : index
    %c0_0 = arith.constant 0 : index
    %0 = vector.load %arg3[%c0, %c0_0] : memref<456x16xf32, #tpu.memory_space<vmem>>, vector<456x16xf32>
    %c0_1 = arith.constant 0 : index
    %c0_2 = arith.constant 0 : index
    %1 = vector.load %arg4[%c0_1, %c0_2] : memref<16x32xf32, #tpu.memory_space<vmem>>, vector<16x32xf32>
    %cst = arith.constant dense<0.000000e+00> : vector<456x32xf32>
    %2 = tpu.matmul %0, %1, %cst {dimension_numbers = #tpu.dot_dimension_numbers<[1], [0], [0], [1], [0, 0, 1, 1], [], []>} : vector<456x16xf32>, vector<16x32xf32>, vector<456x32xf32> -> vector<456x32xf32>
    %c0_i32 = arith.constant 0 : i32
    %3 = arith.cmpi eq, %arg2, %c0_i32 : i32
    %4 = arith.extui %3 : i1 to i32
    %c0_i32_3 = arith.constant 0 : i32
    %5 = arith.cmpi ne, %4, %c0_i32_3 : i32
    scf.if %5 {
      %c0_8 = arith.constant 0 : index
      %c0_9 = arith.constant 0 : index
      %12 = vector.load %arg6[%c0_8, %c0_9] : memref<456x32xf32, #tpu.memory_space<vmem>>, vector<456x32xf32>
      tpu.vector_store %arg6[%c0_8, %c0_9], %2 {strides = array<i32>} : memref<456x32xf32, #tpu.memory_space<vmem>>, vector<456x32xf32>,
    } else {
    }
    %c0_i32_4 = arith.constant 0 : i32
    %6 = arith.cmpi sgt, %arg2, %c0_i32_4 : i32
    %7 = arith.extui %6 : i1 to i32
    %c0_i32_5 = arith.constant 0 : i32
    %8 = arith.cmpi ne, %7, %c0_i32_5 : i32
    scf.if %8 {
      %c0_8 = arith.constant 0 : index
      %c0_9 = arith.constant 0 : index
      %12 = vector.load %arg6[%c0_8, %c0_9] : memref<456x32xf32, #tpu.memory_space<vmem>>, vector<456x32xf32>
      %13 = arith.addf %12, %2 : vector<456x32xf32>
      %c0_10 = arith.constant 0 : index
      %c0_11 = arith.constant 0 : index
      %14 = vector.load %arg6[%c0_10, %c0_11] : memref<456x32xf32, #tpu.memory_space<vmem>>, vector<456x32xf32>
      tpu.vector_store %arg6[%c0_10, %c0_11], %13 {strides = array<i32>} : memref<456x32xf32, #tpu.memory_space<vmem>>, vector<456x32xf32>,
    } else {
    }
    %c0_i32_6 = arith.constant 0 : i32
    %9 = arith.cmpi eq, %arg2, %c0_i32_6 : i32
    %10 = arith.extui %9 : i1 to i32
    %c0_i32_7 = arith.constant 0 : i32
    %11 = arith.cmpi ne, %10, %c0_i32_7 : i32
    scf.if %11 {
      %c0_8 = arith.constant 0 : index
      %c0_9 = arith.constant 0 : index
      %12 = vector.load %arg6[%c0_8, %c0_9] : memref<456x32xf32, #tpu.memory_space<vmem>>, vector<456x32xf32>
      %c0_10 = arith.constant 0 : index
      %c0_11 = arith.constant 0 : index
      %13 = vector.load %arg5[%c0_10, %c0_11] : memref<1x32xf32, #tpu.memory_space<vmem>>, vector<1x32xf32>
      %14 = vector.broadcast %13 : vector<1x32xf32> to vector<456x32xf32>
      %15 = arith.addf %12, %14 : vector<456x32xf32>
      %cst_12 = arith.constant 0.000000e+00 : f32
      %16 = vector.broadcast %cst_12 : f32 to vector<456x32xf32>
      %17 = arith.maximumf %15, %16 : vector<456x32xf32>
      %c0_13 = arith.constant 0 : index
      %c0_14 = arith.constant 0 : index
      %18 = vector.load %arg6[%c0_13, %c0_14] : memref<456x32xf32, #tpu.memory_space<vmem>>, vector<456x32xf32>
      tpu.vector_store %arg6[%c0_13, %c0_14], %17 {strides = array<i32>} : memref<456x32xf32, #tpu.memory_space<vmem>>, vector<456x32xf32>,
    } else {
    }
    return
  }
  func.func @transform_0(%arg0: i32, %arg1: i32, %arg2: i32) -> (i32, i32) {
    %c0_i32 = arith.constant 0 : i32
    return %arg0, %arg2 : i32, i32
  }
  func.func @transform_1(%arg0: i32, %arg1: i32, %arg2: i32) -> (i32, i32) {
    %c0_i32 = arith.constant 0 : i32
    return %arg2, %arg1 : i32, i32
  }
  func.func @transform_2(%arg0: i32, %arg1: i32, %arg2: i32) -> (i32, i32) {
    %c0_i32 = arith.constant 0 : i32
    %c0_i32_0 = arith.constant 0 : i32
    return %c0_i32, %arg1 : i32, i32
  }
  func.func @transform_3(%arg0: i32, %arg1: i32, %arg2: i32) -> (i32, i32) {
    %c0_i32 = arith.constant 0 : i32
    return %arg0, %arg1 : i32, i32
  }
}

module attributes {stable_mosaic.version = 11 : i64} {
  func.func @_matmul_bias_act_kernel(%arg0: i32, %arg1: i32, %arg2: i32, %arg3: memref<392x128xf32, #tpu.memory_space<vmem>>, %arg4: memref<128x64xf32, #tpu.memory_space<vmem>>, %arg5: memref<1x64xf32, #tpu.memory_space<vmem>>, %arg6: memref<392x64xf32, #tpu.memory_space<vmem>>) attributes {dimension_semantics = [#tpu.dimension_semantics<parallel>, #tpu.dimension_semantics<parallel>, #tpu.dimension_semantics<arbitrary>], iteration_bounds = array<i64: 1, 1, 1>, scalar_prefetch = 0 : i64, scratch_operands = 0 : i64, tpu.core_type = #tpu.core_type<tc>, window_params = [{transform_indices = @transform_0, window_bounds = array<i64: 392, 128>}, {transform_indices = @transform_1, window_bounds = array<i64: 128, 64>}, {transform_indices = @transform_2, window_bounds = array<i64: 1, 64>}, {transform_indices = @transform_3, window_bounds = array<i64: 392, 64>}]} {
    %c0 = arith.constant 0 : index
    %c0_0 = arith.constant 0 : index
    %0 = vector.load %arg3[%c0, %c0_0] : memref<392x128xf32, #tpu.memory_space<vmem>>, vector<392x128xf32>
    %c0_1 = arith.constant 0 : index
    %c0_2 = arith.constant 0 : index
    %1 = vector.load %arg4[%c0_1, %c0_2] : memref<128x64xf32, #tpu.memory_space<vmem>>, vector<128x64xf32>
    %cst = arith.constant dense<0.000000e+00> : vector<392x64xf32>
    %2 = tpu.matmul %0, %1, %cst {dimension_numbers = #tpu.dot_dimension_numbers<[1], [0], [0], [1], [0, 0, 1, 1], [], []>} : vector<392x128xf32>, vector<128x64xf32>, vector<392x64xf32> -> vector<392x64xf32>
    %c0_i32 = arith.constant 0 : i32
    %3 = arith.cmpi eq, %arg2, %c0_i32 : i32
    %4 = arith.extui %3 : i1 to i32
    %c0_i32_3 = arith.constant 0 : i32
    %5 = arith.cmpi ne, %4, %c0_i32_3 : i32
    scf.if %5 {
      %c0_8 = arith.constant 0 : index
      %c0_9 = arith.constant 0 : index
      %12 = vector.load %arg6[%c0_8, %c0_9] : memref<392x64xf32, #tpu.memory_space<vmem>>, vector<392x64xf32>
      tpu.vector_store %arg6[%c0_8, %c0_9], %2 {strides = array<i32>} : memref<392x64xf32, #tpu.memory_space<vmem>>, vector<392x64xf32>,
    } else {
    }
    %c0_i32_4 = arith.constant 0 : i32
    %6 = arith.cmpi sgt, %arg2, %c0_i32_4 : i32
    %7 = arith.extui %6 : i1 to i32
    %c0_i32_5 = arith.constant 0 : i32
    %8 = arith.cmpi ne, %7, %c0_i32_5 : i32
    scf.if %8 {
      %c0_8 = arith.constant 0 : index
      %c0_9 = arith.constant 0 : index
      %12 = vector.load %arg6[%c0_8, %c0_9] : memref<392x64xf32, #tpu.memory_space<vmem>>, vector<392x64xf32>
      %13 = arith.addf %12, %2 : vector<392x64xf32>
      %c0_10 = arith.constant 0 : index
      %c0_11 = arith.constant 0 : index
      %14 = vector.load %arg6[%c0_10, %c0_11] : memref<392x64xf32, #tpu.memory_space<vmem>>, vector<392x64xf32>
      tpu.vector_store %arg6[%c0_10, %c0_11], %13 {strides = array<i32>} : memref<392x64xf32, #tpu.memory_space<vmem>>, vector<392x64xf32>,
    } else {
    }
    %c0_i32_6 = arith.constant 0 : i32
    %9 = arith.cmpi eq, %arg2, %c0_i32_6 : i32
    %10 = arith.extui %9 : i1 to i32
    %c0_i32_7 = arith.constant 0 : i32
    %11 = arith.cmpi ne, %10, %c0_i32_7 : i32
    scf.if %11 {
      %c0_8 = arith.constant 0 : index
      %c0_9 = arith.constant 0 : index
      %12 = vector.load %arg6[%c0_8, %c0_9] : memref<392x64xf32, #tpu.memory_space<vmem>>, vector<392x64xf32>
      %c0_10 = arith.constant 0 : index
      %c0_11 = arith.constant 0 : index
      %13 = vector.load %arg5[%c0_10, %c0_11] : memref<1x64xf32, #tpu.memory_space<vmem>>, vector<1x64xf32>
      %14 = vector.broadcast %13 : vector<1x64xf32> to vector<392x64xf32>
      %15 = arith.addf %12, %14 : vector<392x64xf32>
      %cst_12 = arith.constant 0.000000e+00 : f32
      %16 = vector.broadcast %cst_12 : f32 to vector<392x64xf32>
      %17 = arith.maximumf %15, %16 : vector<392x64xf32>
      %c0_13 = arith.constant 0 : index
      %c0_14 = arith.constant 0 : index
      %18 = vector.load %arg6[%c0_13, %c0_14] : memref<392x64xf32, #tpu.memory_space<vmem>>, vector<392x64xf32>
      tpu.vector_store %arg6[%c0_13, %c0_14], %17 {strides = array<i32>} : memref<392x64xf32, #tpu.memory_space<vmem>>, vector<392x64xf32>,
    } else {
    }
    return
  }
  func.func @transform_0(%arg0: i32, %arg1: i32, %arg2: i32) -> (i32, i32) {
    %c0_i32 = arith.constant 0 : i32
    return %arg0, %arg2 : i32, i32
  }
  func.func @transform_1(%arg0: i32, %arg1: i32, %arg2: i32) -> (i32, i32) {
    %c0_i32 = arith.constant 0 : i32
    return %arg2, %arg1 : i32, i32
  }
  func.func @transform_2(%arg0: i32, %arg1: i32, %arg2: i32) -> (i32, i32) {
    %c0_i32 = arith.constant 0 : i32
    %c0_i32_0 = arith.constant 0 : i32
    return %c0_i32, %arg1 : i32, i32
  }
  func.func @transform_3(%arg0: i32, %arg1: i32, %arg2: i32) -> (i32, i32) {
    %c0_i32 = arith.constant 0 : i32
    return %arg0, %arg1 : i32, i32
  }
}

module attributes {stable_mosaic.version = 11 : i64} {
  func.func @_matmul_bias_act_kernel(%arg0: i32, %arg1: i32, %arg2: i32, %arg3: memref<392x64xf32, #tpu.memory_space<vmem>>, %arg4: memref<64x64xf32, #tpu.memory_space<vmem>>, %arg5: memref<1x64xf32, #tpu.memory_space<vmem>>, %arg6: memref<392x64xf32, #tpu.memory_space<vmem>>) attributes {dimension_semantics = [#tpu.dimension_semantics<parallel>, #tpu.dimension_semantics<parallel>, #tpu.dimension_semantics<arbitrary>], iteration_bounds = array<i64: 1, 1, 1>, scalar_prefetch = 0 : i64, scratch_operands = 0 : i64, tpu.core_type = #tpu.core_type<tc>, window_params = [{transform_indices = @transform_0, window_bounds = array<i64: 392, 64>}, {transform_indices = @transform_1, window_bounds = array<i64: 64, 64>}, {transform_indices = @transform_2, window_bounds = array<i64: 1, 64>}, {transform_indices = @transform_3, window_bounds = array<i64: 392, 64>}]} {
    %c0 = arith.constant 0 : index
    %c0_0 = arith.constant 0 : index
    %0 = vector.load %arg3[%c0, %c0_0] : memref<392x64xf32, #tpu.memory_space<vmem>>, vector<392x64xf32>
    %c0_1 = arith.constant 0 : index
    %c0_2 = arith.constant 0 : index
    %1 = vector.load %arg4[%c0_1, %c0_2] : memref<64x64xf32, #tpu.memory_space<vmem>>, vector<64x64xf32>
    %cst = arith.constant dense<0.000000e+00> : vector<392x64xf32>
    %2 = tpu.matmul %0, %1, %cst {dimension_numbers = #tpu.dot_dimension_numbers<[1], [0], [0], [1], [0, 0, 1, 1], [], []>} : vector<392x64xf32>, vector<64x64xf32>, vector<392x64xf32> -> vector<392x64xf32>
    %c0_i32 = arith.constant 0 : i32
    %3 = arith.cmpi eq, %arg2, %c0_i32 : i32
    %4 = arith.extui %3 : i1 to i32
    %c0_i32_3 = arith.constant 0 : i32
    %5 = arith.cmpi ne, %4, %c0_i32_3 : i32
    scf.if %5 {
      %c0_8 = arith.constant 0 : index
      %c0_9 = arith.constant 0 : index
      %12 = vector.load %arg6[%c0_8, %c0_9] : memref<392x64xf32, #tpu.memory_space<vmem>>, vector<392x64xf32>
      tpu.vector_store %arg6[%c0_8, %c0_9], %2 {strides = array<i32>} : memref<392x64xf32, #tpu.memory_space<vmem>>, vector<392x64xf32>,
    } else {
    }
    %c0_i32_4 = arith.constant 0 : i32
    %6 = arith.cmpi sgt, %arg2, %c0_i32_4 : i32
    %7 = arith.extui %6 : i1 to i32
    %c0_i32_5 = arith.constant 0 : i32
    %8 = arith.cmpi ne, %7, %c0_i32_5 : i32
    scf.if %8 {
      %c0_8 = arith.constant 0 : index
      %c0_9 = arith.constant 0 : index
      %12 = vector.load %arg6[%c0_8, %c0_9] : memref<392x64xf32, #tpu.memory_space<vmem>>, vector<392x64xf32>
      %13 = arith.addf %12, %2 : vector<392x64xf32>
      %c0_10 = arith.constant 0 : index
      %c0_11 = arith.constant 0 : index
      %14 = vector.load %arg6[%c0_10, %c0_11] : memref<392x64xf32, #tpu.memory_space<vmem>>, vector<392x64xf32>
      tpu.vector_store %arg6[%c0_10, %c0_11], %13 {strides = array<i32>} : memref<392x64xf32, #tpu.memory_space<vmem>>, vector<392x64xf32>,
    } else {
    }
    %c0_i32_6 = arith.constant 0 : i32
    %9 = arith.cmpi eq, %arg2, %c0_i32_6 : i32
    %10 = arith.extui %9 : i1 to i32
    %c0_i32_7 = arith.constant 0 : i32
    %11 = arith.cmpi ne, %10, %c0_i32_7 : i32
    scf.if %11 {
      %c0_8 = arith.constant 0 : index
      %c0_9 = arith.constant 0 : index
      %12 = vector.load %arg6[%c0_8, %c0_9] : memref<392x64xf32, #tpu.memory_space<vmem>>, vector<392x64xf32>
      %c0_10 = arith.constant 0 : index
      %c0_11 = arith.constant 0 : index
      %13 = vector.load %arg5[%c0_10, %c0_11] : memref<1x64xf32, #tpu.memory_space<vmem>>, vector<1x64xf32>
      %14 = vector.broadcast %13 : vector<1x64xf32> to vector<392x64xf32>
      %15 = arith.addf %12, %14 : vector<392x64xf32>
      %cst_12 = arith.constant 0.000000e+00 : f32
      %16 = vector.broadcast %cst_12 : f32 to vector<392x64xf32>
      %17 = arith.maximumf %15, %16 : vector<392x64xf32>
      %c0_13 = arith.constant 0 : index
      %c0_14 = arith.constant 0 : index
      %18 = vector.load %arg6[%c0_13, %c0_14] : memref<392x64xf32, #tpu.memory_space<vmem>>, vector<392x64xf32>
      tpu.vector_store %arg6[%c0_13, %c0_14], %17 {strides = array<i32>} : memref<392x64xf32, #tpu.memory_space<vmem>>, vector<392x64xf32>,
    } else {
    }
    return
  }
  func.func @transform_0(%arg0: i32, %arg1: i32, %arg2: i32) -> (i32, i32) {
    %c0_i32 = arith.constant 0 : i32
    return %arg0, %arg2 : i32, i32
  }
  func.func @transform_1(%arg0: i32, %arg1: i32, %arg2: i32) -> (i32, i32) {
    %c0_i32 = arith.constant 0 : i32
    return %arg2, %arg1 : i32, i32
  }
  func.func @transform_2(%arg0: i32, %arg1: i32, %arg2: i32) -> (i32, i32) {
    %c0_i32 = arith.constant 0 : i32
    %c0_i32_0 = arith.constant 0 : i32
    return %c0_i32, %arg1 : i32, i32
  }
  func.func @transform_3(%arg0: i32, %arg1: i32, %arg2: i32) -> (i32, i32) {
    %c0_i32 = arith.constant 0 : i32
    return %arg0, %arg1 : i32, i32
  }
}

module attributes {stable_mosaic.version = 11 : i64} {
  func.func @_matmul_bias_act_kernel(%arg0: i32, %arg1: i32, %arg2: i32, %arg3: memref<8x1792xf32, #tpu.memory_space<vmem>>, %arg4: memref<1792x256xbf16, #tpu.memory_space<vmem>>, %arg5: memref<1x256xf32, #tpu.memory_space<vmem>>, %arg6: memref<8x256xf32, #tpu.memory_space<vmem>>) attributes {dimension_semantics = [#tpu.dimension_semantics<parallel>, #tpu.dimension_semantics<parallel>, #tpu.dimension_semantics<arbitrary>], iteration_bounds = array<i64: 1, 2, 7>, scalar_prefetch = 0 : i64, scratch_operands = 0 : i64, tpu.core_type = #tpu.core_type<tc>, window_params = [{transform_indices = @transform_0, window_bounds = array<i64: 8, 1792>}, {transform_indices = @transform_1, window_bounds = array<i64: 1792, 256>}, {transform_indices = @transform_2, window_bounds = array<i64: 1, 256>}, {transform_indices = @transform_3, window_bounds = array<i64: 8, 256>}]} {
    %c0 = arith.constant 0 : index
    %c0_0 = arith.constant 0 : index
    %0 = vector.load %arg3[%c0, %c0_0] : memref<8x1792xf32, #tpu.memory_space<vmem>>, vector<8x1792xf32>
    %c0_1 = arith.constant 0 : index
    %c0_2 = arith.constant 0 : index
    %1 = vector.load %arg4[%c0_1, %c0_2] : memref<1792x256xbf16, #tpu.memory_space<vmem>>, vector<1792x256xbf16>
    %2 = arith.truncf %0 : vector<8x1792xf32> to vector<8x1792xbf16>
    %cst = arith.constant dense<0.000000e+00> : vector<8x256xf32>
    %3 = tpu.matmul %2, %1, %cst {dimension_numbers = #tpu.dot_dimension_numbers<[1], [0], [0], [1], [0, 0, 1, 1], [], []>} : vector<8x1792xbf16>, vector<1792x256xbf16>, vector<8x256xf32> -> vector<8x256xf32>
    %c0_i32 = arith.constant 0 : i32
    %4 = arith.cmpi eq, %arg2, %c0_i32 : i32
    %5 = arith.extui %4 : i1 to i32
    %c0_i32_3 = arith.constant 0 : i32
    %6 = arith.cmpi ne, %5, %c0_i32_3 : i32
    scf.if %6 {
      %c0_7 = arith.constant 0 : index
      %c0_8 = arith.constant 0 : index
      %13 = vector.load %arg6[%c0_7, %c0_8] : memref<8x256xf32, #tpu.memory_space<vmem>>, vector<8x256xf32>
      tpu.vector_store %arg6[%c0_7, %c0_8], %3 {strides = array<i32>} : memref<8x256xf32, #tpu.memory_space<vmem>>, vector<8x256xf32>,
    } else {
    }
    %c0_i32_4 = arith.constant 0 : i32
    %7 = arith.cmpi sgt, %arg2, %c0_i32_4 : i32
    %8 = arith.extui %7 : i1 to i32
    %c0_i32_5 = arith.constant 0 : i32
    %9 = arith.cmpi ne, %8, %c0_i32_5 : i32
    scf.if %9 {
      %c0_7 = arith.constant 0 : index
      %c0_8 = arith.constant 0 : index
      %13 = vector.load %arg6[%c0_7, %c0_8] : memref<8x256xf32, #tpu.memory_space<vmem>>, vector<8x256xf32>
      %14 = arith.addf %13, %3 : vector<8x256xf32>
      %c0_9 = arith.constant 0 : index
      %c0_10 = arith.constant 0 : index
      %15 = vector.load %arg6[%c0_9, %c0_10] : memref<8x256xf32, #tpu.memory_space<vmem>>, vector<8x256xf32>
      tpu.vector_store %arg6[%c0_9, %c0_10], %14 {strides = array<i32>} : memref<8x256xf32, #tpu.memory_space<vmem>>, vector<8x256xf32>,
    } else {
    }
    %c6_i32 = arith.constant 6 : i32
    %10 = arith.cmpi eq, %arg2, %c6_i32 : i32
    %11 = arith.extui %10 : i1 to i32
    %c0_i32_6 = arith.constant 0 : i32
    %12 = arith.cmpi ne, %11, %c0_i32_6 : i32
    scf.if %12 {
      %c0_7 = arith.constant 0 : index
      %c0_8 = arith.constant 0 : index
      %13 = vector.load %arg6[%c0_7, %c0_8] : memref<8x256xf32, #tpu.memory_space<vmem>>, vector<8x256xf32>
      %c0_9 = arith.constant 0 : index
      %c0_10 = arith.constant 0 : index
      %14 = vector.load %arg5[%c0_9, %c0_10] : memref<1x256xf32, #tpu.memory_space<vmem>>, vector<1x256xf32>
      %15 = vector.broadcast %14 : vector<1x256xf32> to vector<8x256xf32>
      %16 = arith.addf %13, %15 : vector<8x256xf32>
      %cst_11 = arith.constant 0.000000e+00 : f32
      %17 = vector.broadcast %cst_11 : f32 to vector<8x256xf32>
      %18 = arith.maximumf %16, %17 : vector<8x256xf32>
      %c0_12 = arith.constant 0 : index
      %c0_13 = arith.constant 0 : index
      %19 = vector.load %arg6[%c0_12, %c0_13] : memref<8x256xf32, #tpu.memory_space<vmem>>, vector<8x256xf32>
      tpu.vector_store %arg6[%c0_12, %c0_13], %18 {strides = array<i32>} : memref<8x256xf32, #tpu.memory_space<vmem>>, vector<8x256xf32>,
    } else {
    }
    return
  }
  func.func @transform_0(%arg0: i32, %arg1: i32, %arg2: i32) -> (i32, i32) {
    %c0_i32 = arith.constant 0 : i32
    return %arg0, %arg2 : i32, i32
  }
  func.func @transform_1(%arg0: i32, %arg1: i32, %arg2: i32) -> (i32, i32) {
    %c0_i32 = arith.constant 0 : i32
    return %arg2, %arg1 : i32, i32
  }
  func.func @transform_2(%arg0: i32, %arg1: i32, %arg2: i32) -> (i32, i32) {
    %c0_i32 = arith.constant 0 : i32
    %c0_i32_0 = arith.constant 0 : i32
    return %c0_i32, %arg1 : i32, i32
  }
  func.func @transform_3(%arg0: i32, %arg1: i32, %arg2: i32) -> (i32, i32) {
    %c0_i32 = arith.constant 0 : i32
    return %arg0, %arg1 : i32, i32
  }
}

module attributes {stable_mosaic.version = 11 : i64} {
  func.func @_matmul_bias_act_kernel(%arg0: i32, %arg1: i32, %arg2: i32, %arg3: memref<8x512xf32, #tpu.memory_space<vmem>>, %arg4: memref<512x6xf32, #tpu.memory_space<vmem>>, %arg5: memref<1x6xf32, #tpu.memory_space<vmem>>, %arg6: memref<8x6xf32, #tpu.memory_space<vmem>>) attributes {dimension_semantics = [#tpu.dimension_semantics<parallel>, #tpu.dimension_semantics<parallel>, #tpu.dimension_semantics<arbitrary>], iteration_bounds = array<i64: 1, 1, 1>, scalar_prefetch = 0 : i64, scratch_operands = 0 : i64, tpu.core_type = #tpu.core_type<tc>, window_params = [{transform_indices = @transform_0, window_bounds = array<i64: 8, 512>}, {transform_indices = @transform_1, window_bounds = array<i64: 512, 6>}, {transform_indices = @transform_2, window_bounds = array<i64: 1, 6>}, {transform_indices = @transform_3, window_bounds = array<i64: 8, 6>}]} {
    %c0 = arith.constant 0 : index
    %c0_0 = arith.constant 0 : index
    %0 = vector.load %arg3[%c0, %c0_0] : memref<8x512xf32, #tpu.memory_space<vmem>>, vector<8x512xf32>
    %c0_1 = arith.constant 0 : index
    %c0_2 = arith.constant 0 : index
    %1 = vector.load %arg4[%c0_1, %c0_2] : memref<512x6xf32, #tpu.memory_space<vmem>>, vector<512x6xf32>
    %cst = arith.constant dense<0.000000e+00> : vector<8x6xf32>
    %2 = tpu.matmul %0, %1, %cst {dimension_numbers = #tpu.dot_dimension_numbers<[1], [0], [0], [1], [0, 0, 1, 1], [], []>} : vector<8x512xf32>, vector<512x6xf32>, vector<8x6xf32> -> vector<8x6xf32>
    %c0_i32 = arith.constant 0 : i32
    %3 = arith.cmpi eq, %arg2, %c0_i32 : i32
    %4 = arith.extui %3 : i1 to i32
    %c0_i32_3 = arith.constant 0 : i32
    %5 = arith.cmpi ne, %4, %c0_i32_3 : i32
    scf.if %5 {
      %c0_8 = arith.constant 0 : index
      %c0_9 = arith.constant 0 : index
      %12 = vector.load %arg6[%c0_8, %c0_9] : memref<8x6xf32, #tpu.memory_space<vmem>>, vector<8x6xf32>
      tpu.vector_store %arg6[%c0_8, %c0_9], %2 {strides = array<i32>} : memref<8x6xf32, #tpu.memory_space<vmem>>, vector<8x6xf32>,
    } else {
    }
    %c0_i32_4 = arith.constant 0 : i32
    %6 = arith.cmpi sgt, %arg2, %c0_i32_4 : i32
    %7 = arith.extui %6 : i1 to i32
    %c0_i32_5 = arith.constant 0 : i32
    %8 = arith.cmpi ne, %7, %c0_i32_5 : i32
    scf.if %8 {
      %c0_8 = arith.constant 0 : index
      %c0_9 = arith.constant 0 : index
      %12 = vector.load %arg6[%c0_8, %c0_9] : memref<8x6xf32, #tpu.memory_space<vmem>>, vector<8x6xf32>
      %13 = arith.addf %12, %2 : vector<8x6xf32>
      %c0_10 = arith.constant 0 : index
      %c0_11 = arith.constant 0 : index
      %14 = vector.load %arg6[%c0_10, %c0_11] : memref<8x6xf32, #tpu.memory_space<vmem>>, vector<8x6xf32>
      tpu.vector_store %arg6[%c0_10, %c0_11], %13 {strides = array<i32>} : memref<8x6xf32, #tpu.memory_space<vmem>>, vector<8x6xf32>,
    } else {
    }
    %c0_i32_6 = arith.constant 0 : i32
    %9 = arith.cmpi eq, %arg2, %c0_i32_6 : i32
    %10 = arith.extui %9 : i1 to i32
    %c0_i32_7 = arith.constant 0 : i32
    %11 = arith.cmpi ne, %10, %c0_i32_7 : i32
    scf.if %11 {
      %c0_8 = arith.constant 0 : index
      %c0_9 = arith.constant 0 : index
      %12 = vector.load %arg6[%c0_8, %c0_9] : memref<8x6xf32, #tpu.memory_space<vmem>>, vector<8x6xf32>
      %c0_10 = arith.constant 0 : index
      %c0_11 = arith.constant 0 : index
      %13 = vector.load %arg5[%c0_10, %c0_11] : memref<1x6xf32, #tpu.memory_space<vmem>>, vector<1x6xf32>
      %14 = vector.broadcast %13 : vector<1x6xf32> to vector<8x6xf32>
      %15 = arith.addf %12, %14 : vector<8x6xf32>
      %c0_12 = arith.constant 0 : index
      %c0_13 = arith.constant 0 : index
      %16 = vector.load %arg6[%c0_12, %c0_13] : memref<8x6xf32, #tpu.memory_space<vmem>>, vector<8x6xf32>
      tpu.vector_store %arg6[%c0_12, %c0_13], %15 {strides = array<i32>} : memref<8x6xf32, #tpu.memory_space<vmem>>, vector<8x6xf32>,
    } else {
    }
    return
  }
  func.func @transform_0(%arg0: i32, %arg1: i32, %arg2: i32) -> (i32, i32) {
    %c0_i32 = arith.constant 0 : i32
    return %arg0, %arg2 : i32, i32
  }
  func.func @transform_1(%arg0: i32, %arg1: i32, %arg2: i32) -> (i32, i32) {
    %c0_i32 = arith.constant 0 : i32
    return %arg2, %arg1 : i32, i32
  }
  func.func @transform_2(%arg0: i32, %arg1: i32, %arg2: i32) -> (i32, i32) {
    %c0_i32 = arith.constant 0 : i32
    %c0_i32_0 = arith.constant 0 : i32
    return %c0_i32, %arg1 : i32, i32
  }
  func.func @transform_3(%arg0: i32, %arg1: i32, %arg2: i32) -> (i32, i32) {
    %c0_i32 = arith.constant 0 : i32
    return %arg0, %arg1 : i32, i32
  }
}

</mosaic_0001>

<bundles_post_ra>
// kernel: cnn_forward.6
= control target key start
LH: loop header
LB: loop body
LE: loop exit
PB: predicated region body
PF: predicated region fallthrough
CT: control target
= control target key end

     0   :  { %8 = vsyncpa [#allocation3], 0  ;;  %s1132_s12 = smov [#allocation2]   ;;  %s2051_s0 = inlined_call_operand.vmem [shape: f32[392,128], index: 0, kind: input, shape index: {}]   ;;  %s2052_s1 = inlined_call_operand.vmem [shape: f32[128,64], index: 1, kind: input, shape index: {}]   ;;  %s2053_s2 = inlined_call_operand.hbm [shape: f32[1,64], index: 2, kind: input, shape index: {}]   ;;  %s2054_s3 = inlined_call_operand.vmem [shape: f32[392,64], index: 3, kind: output, shape index: {}]  }
   0x1   :  { %s19_s13 = sshll.u32 %s1132_s12, 4  ;;  %s1108_s16 = scalar_lea.hbm %s2053_s2, 16  ;;  %s20_s13 = int_to_ptr.vmem [resolvable:$true] %s19_s13 }
   0x2   :  { %p1109_p0 = scmp.ne.s32.totalorder %s2053_s2, %s1108_s16  ;;  %p1112_p1 = scmp.lt.u32.totalorder %s1108_s16, %s2053_s2 }
   0x4   :  { %p1114_p2 = pnand %p1112_p1, %p1109_p0 }
   0x6   :  { %1117 = shalt.err (!%p1114_p2)
}
   0x7   :  { %s1118_s21 = scalar_lea.vmem %s20_s13, 16  ;;  %s1122_s22 = scalar_lea.vmem %s20_s13, 32 }
   0x8   :  { %p1119_p3 = scmp.ne.s32.totalorder %s20_s13, %s1118_s21  ;;  %p1123_p4 = scmp.lt.s32.totalorder %s20_s13, %s20_s13 }
   0x9   :  { %p1124_p5 = scmp.lt.s32.totalorder %s1122_s22, %s1118_s21 }
   0xb   :  { %p1125_p6 = por %p1124_p5, %p1123_p4 }
   0xd   :  { %p1126_p7 = pnand %p1125_p6, %p1119_p3 }
   0xf   :  { %1129 = shalt.err (!%p1126_p7)
}
  0x10   :  { %22 = dma.hbm_to_vmem [thread:$0]  %s2053_s2, 16, %s20_s13, [#allocation3]  }
  0x11   :  { %1130 = dma.done.wait [#allocation3], 16  }
  0x12   :  { %1131 = vsyncadd [#allocation3], 4294967280  ;;  %v1133_v0 = vmov 0.0|0.0   ;;  %vm1134_vm0 = vmmov 0   ;;  %v1135_v1 = vmov 0.0   ;;  %v75_v2 = vld [vmem:[%s2052_s1] sm:$0xff] }
  0x13   :  { %1064 = vmatprep.subr.bf16.mxu0 %v1133_v0  ;;  %1088 = vmatprep.subr.bf16.mxu1 %v1133_v0  ;;  %v76_v3 = vld [vmem:[%s2052_s1 + $0x8] sm:$0xff]  ;;  %v77_v4 = vld [vmem:[%s2052_s1 + $0x10] sm:$0xff]  ;;  %v78_v6 = vld [vmem:[%s2052_s1 + $0x18] sm:$0xff]  ;;  %vm405_vm1 = vcmask 523264  }
  0x14   :  { %917 = vmatprep.mubr.msk.f32.mxu0 %vm1134_vm0, %v1135_v1  ;;  %992 = vmatprep.mubr.msk.f32.mxu1 %vm1134_vm0, %v1135_v1  ;;  %v1065_v5 = vpack.c.bf16 %v76_v3, %v75_v2  ;;  %v1068_v7 = vpack.c.bf16 %v78_v6, %v77_v4  ;;  %v79_v8 = vld [vmem:[%s2052_s1 + $0x20] sm:$0xff]  ;;  %v80_v9 = vld [vmem:[%s2052_s1 + $0x28] sm:$0xff]  ;;  %v81_v11 = vld [vmem:[%s2052_s1 + $0x30] sm:$0xff] }
  0x15   :  { %v1071_v10 = vpack.c.bf16 %v80_v9, %v79_v8  ;;  %v82_v12 = vld [vmem:[%s2052_s1 + $0x38] sm:$0xff]  ;;  %v83_v14 = vld [vmem:[%s2052_s1 + $0x40] sm:$0xff]  ;;  %v84_v15 = vld [vmem:[%s2052_s1 + $0x48] sm:$0xff] }
  0x16   :  { %1066 = vmatpush3.bf16.msra.mxu0 %v1065_v5  ;;  %1096 = vmatpush3.bf16.msra.mxu1 %v1065_v5  ;;  %v1074_v13 = vpack.c.bf16 %v82_v12, %v81_v11  ;;  %v1077_v16 = vpack.c.bf16 %v84_v15, %v83_v14  ;;  %v85_v17 = vld [vmem:[%s2052_s1 + $0x50] sm:$0xff]  ;;  %v86_v18 = vld [vmem:[%s2052_s1 + $0x58] sm:$0xff]  ;;  %v87_v20 = vld [vmem:[%s2052_s1 + $0x60] sm:$0xff] }
  0x17   :  { %1067 = vmatprep.subr.bf16.mxu0 %v1133_v0  ;;  %1089 = vmatprep.subr.bf16.mxu1 %v1133_v0  ;;  %v1080_v19 = vpack.c.bf16 %v86_v18, %v85_v17  ;;  %v88_v21 = vld [vmem:[%s2052_s1 + $0x68] sm:$0xff]  ;;  %v89_v23 = vld [vmem:[%s2052_s1 + $0x70] sm:$0xff]  ;;  %v90_v24 = vld [vmem:[%s2052_s1 + $0x78] sm:$0xff] }
  0x18   :  { %v1083_v22 = vpack.c.bf16 %v88_v21, %v87_v20  ;;  %v1086_v25 = vpack.c.bf16 %v90_v24, %v89_v23  ;;  %v26_v26 = vld [vmem:[%s2051_s0] sm:$0xff]  ;;  %v51_v27 = vld [vmem:[%s2051_s0 + $0xc8] sm:$0xff]  ;;  %v52_v29 = vld [vmem:[%s2051_s0 + $0xd0] sm:$0xff] }
  0x19   :  { %v27_v28 = vld [vmem:[%s2051_s0 + $0x8] sm:$0xff]  ;;  %v28_v30 = vld [vmem:[%s2051_s0 + $0x10] sm:$0xff]  ;;  %v53_v31 = vld [vmem:[%s2051_s0 + $0xd8] sm:$0xff] }
  0x1a   :  { %1069 = vmatpush3.bf16.msra.mxu0 %v1068_v7  ;;  %1097 = vmatpush3.bf16.msra.mxu1 %v1068_v7  ;;  %v29_v32 = vld [vmem:[%s2051_s0 + $0x18] sm:$0xff]  ;;  %v54_v33 = vld [vmem:[%s2051_s0 + $0xe0] sm:$0xff]  ;;  %v55_v35 = vld [vmem:[%s2051_s0 + $0xe8] sm:$0xff] }
  0x1b   :  { %1070 = vmatprep.subr.bf16.mxu0 %v1133_v0  ;;  %1090 = vmatprep.subr.bf16.mxu1 %v1133_v0  ;;  %v30_v34 = vld [vmem:[%s2051_s0 + $0x20] sm:$0xff]  ;;  %v31_v36 = vld [vmem:[%s2051_s0 + $0x28] sm:$0xff]  ;;  %v56_v37 = vld [vmem:[%s2051_s0 + $0xf0] sm:$0xff] }
  0x1c   :  { %v32_v38 = vld [vmem:[%s2051_s0 + $0x30] sm:$0xff]  ;;  %v57_v39 = vld [vmem:[%s2051_s0 + $0xf8] sm:$0xff]  ;;  %v58_v41 = vld [vmem:[%s2051_s0 + $0x100] sm:$0xff] }
  0x1d   :  { %v33_v40 = vld [vmem:[%s2051_s0 + $0x38] sm:$0xff]  ;;  %v34_v42 = vld [vmem:[%s2051_s0 + $0x40] sm:$0xff]  ;;  %v59_v43 = vld [vmem:[%s2051_s0 + $0x108] sm:$0xff] }
  0x1e   :  { %1072 = vmatpush3.bf16.msra.mxu0 %v1071_v10  ;;  %1098 = vmatpush3.bf16.msra.mxu1 %v1071_v10  ;;  %v35_v44 = vld [vmem:[%s2051_s0 + $0x48] sm:$0xff]  ;;  %v60_v45 = vld [vmem:[%s2051_s0 + $0x110] sm:$0xff]  ;;  %v61_v47 = vld [vmem:[%s2051_s0 + $0x118] sm:$0xff] }
  0x1f   :  { %1073 = vmatprep.subr.bf16.mxu0 %v1133_v0  ;;  %1091 = vmatprep.subr.bf16.mxu1 %v1133_v0  ;;  %v36_v46 = vld [vmem:[%s2051_s0 + $0x50] sm:$0xff]  ;;  %v37_v48 = vld [vmem:[%s2051_s0 + $0x58] sm:$0xff]  ;;  %v62_v49 = vld [vmem:[%s2051_s0 + $0x120] sm:$0xff] }
  0x20   :  { %v38_v50 = vld [vmem:[%s2051_s0 + $0x60] sm:$0xff]  ;;  %v63_v51 = vld [vmem:[%s2051_s0 + $0x128] sm:$0xff]  ;;  %v64_v53 = vld [vmem:[%s2051_s0 + $0x130] sm:$0xff] }
  0x21   :  { %v39_v52 = vld [vmem:[%s2051_s0 + $0x68] sm:$0xff]  ;;  %v40_v54 = vld [vmem:[%s2051_s0 + $0x70] sm:$0xff]  ;;  %v65_v55 = vld [vmem:[%s2051_s0 + $0x138] sm:$0xff] }
  0x22   :  { %1075 = vmatpush3.bf16.msra.mxu0 %v1074_v13  ;;  %1099 = vmatpush3.bf16.msra.mxu1 %v1074_v13  ;;  %v41_v56 = vld [vmem:[%s2051_s0 + $0x78] sm:$0xff]  ;;  %v66_v57 = vld [vmem:[%s2051_s0 + $0x140] sm:$0xff]  ;;  %v67_v59 = vld [vmem:[%s2051_s0 + $0x148] sm:$0xff] }
  0x23   :  { %1076 = vmatprep.subr.bf16.mxu0 %v1133_v0  ;;  %1092 = vmatprep.subr.bf16.mxu1 %v1133_v0  ;;  %v42_v58 = vld [vmem:[%s2051_s0 + $0x80] sm:$0xff]  ;;  %v43_v60 = vld [vmem:[%s2051_s0 + $0x88] sm:$0xff]  ;;  %v68_v61 = vld [vmem:[%s2051_s0 + $0x150] sm:$0xff] }
  0x24   :  { %v44_v62 = vld [vmem:[%s2051_s0 + $0x90] sm:$0xff]  ;;  %v69_v63 = vld [vmem:[%s2051_s0 + $0x158] sm:$0xff]  ;;  %v70_v2 = vld [vmem:[%s2051_s0 + $0x160] sm:$0xff] }
  0x25   :  { %v46_v3 = vld [vmem:[%s2051_s0 + $0xa0] sm:$0xff]  ;;  %v71_v4 = vld [vmem:[%s2051_s0 + $0x168] sm:$0xff]  ;;  %v72_v6 = vld [vmem:[%s2051_s0 + $0x170] sm:$0xff] }
  0x26   :  { %1078 = vmatpush3.bf16.msra.mxu0 %v1077_v16  ;;  %1100 = vmatpush3.bf16.msra.mxu1 %v1077_v16  ;;  %v47_v5 = vld [vmem:[%s2051_s0 + $0xa8] sm:$0xff]  ;;  %v48_v7 = vld [vmem:[%s2051_s0 + $0xb0] sm:$0xff]  ;;  %v73_v8 = vld [vmem:[%s2051_s0 + $0x178] sm:$0xff] }
  0x27   :  { %1079 = vmatprep.subr.bf16.mxu0 %v1133_v0  ;;  %1093 = vmatprep.subr.bf16.mxu1 %v1133_v0  ;;  %v49_v9 = vld [vmem:[%s2051_s0 + $0xb8] sm:$0xff]  ;;  %v74_v10 = vld [vmem:[%s2051_s0 + $0x180] sm:$0xff] }
  0x28   :  { %v50_v11 = vld [vmem:[%s2051_s0 + $0xc0] sm:$0xff] }
  0x2a   :  { %1081 = vmatpush3.bf16.msra.mxu0 %v1080_v19  ;;  %1101 = vmatpush3.bf16.msra.mxu1 %v1080_v19  ;;  %v1477_v19 = vld [vmem:[#allocation2] ss:$0 sm:$0xff] }
  0x2b   :  { %1082 = vmatprep.subr.bf16.mxu0 %v1133_v0  ;;  %1094 = vmatprep.subr.bf16.mxu1 %v1133_v0 }
  0x2e   :  { %1084 = vmatpush3.bf16.msra.mxu0 %v1083_v22  ;;  %1102 = vmatpush3.bf16.msra.mxu1 %v1083_v22 }
  0x2f   :  { %1085 = vmatprep.subr.bf16.mxu0 %v1133_v0  ;;  %1095 = vmatprep.subr.bf16.mxu1 %v1133_v0  ;;  %v45_v0 = vld [vmem:[%s2051_s0 + $0x98] sm:$0xff] }
  0x32   :  { %1087 = vmatpush3.bf16.msra.mxu0 %v1086_v25  ;;  %1103 = vmatpush3.bf16.msra.mxu1 %v1086_v25 }
  0x35   :  { %918 = vmatmul.mubr.f32.vlgmr.msra.gmra.mrb[0].mxu0 %v26_v26  ;;  %993 = vmatmul.mubr.f32.vlgmr.msra.gmra.mrb[0].mxu1 %v51_v27 }
  0x36   :  { %920 = vmatprep.mubr.msk.f32.mxu0 %vm1134_vm0, %v1135_v1  ;;  %995 = vmatprep.mubr.msk.f32.mxu1 %vm1134_vm0, %v1135_v1 }
  0x39   :  { %921 = vmatmul.mubr.f32.gmra.mrb[2].mxu0 %v27_v28  ;;  %996 = vmatmul.mubr.f32.gmra.mrb[2].mxu1 %v52_v29 }
  0x3a   :  { %923 = vmatprep.mubr.msk.f32.mxu0 %vm1134_vm0, %v1135_v1  ;;  %998 = vmatprep.mubr.msk.f32.mxu1 %vm1134_vm0, %v1135_v1 }
  0x3d   :  { %924 = vmatmul.mubr.f32.gmra.mrb[4].mxu0 %v28_v30  ;;  %999 = vmatmul.mubr.f32.gmra.mrb[4].mxu1 %v53_v31 }
  0x3e   :  { %926 = vmatprep.mubr.msk.f32.mxu0 %vm1134_vm0, %v1135_v1  ;;  %1001 = vmatprep.mubr.msk.f32.mxu1 %vm1134_vm0, %v1135_v1 }
  0x41   :  { %927 = vmatmul.mubr.f32.gmra.mrb[6].mxu0 %v29_v32  ;;  %1002 = vmatmul.mubr.f32.gmra.mrb[6].mxu1 %v54_v33 }
  0x42   :  { %929 = vmatprep.mubr.msk.f32.mxu0 %vm1134_vm0, %v1135_v1  ;;  %1004 = vmatprep.mubr.msk.f32.mxu1 %vm1134_vm0, %v1135_v1 }
  0x45   :  { %930 = vmatmul.mubr.f32.gmra.mrb[8].mxu0 %v30_v34  ;;  %1005 = vmatmul.mubr.f32.gmra.mrb[8].mxu1 %v55_v35 }
  0x46   :  { %932 = vmatprep.mubr.msk.f32.mxu0 %vm1134_vm0, %v1135_v1  ;;  %1007 = vmatprep.mubr.msk.f32.mxu1 %vm1134_vm0, %v1135_v1 }
  0x49   :  { %933 = vmatmul.mubr.f32.gmra.mrb[10].mxu0 %v31_v36  ;;  %1008 = vmatmul.mubr.f32.gmra.mrb[10].mxu1 %v56_v37 }
  0x4a   :  { %935 = vmatprep.mubr.msk.f32.mxu0 %vm1134_vm0, %v1135_v1  ;;  %1010 = vmatprep.mubr.msk.f32.mxu1 %vm1134_vm0, %v1135_v1 }
  0x4d   :  { %936 = vmatmul.mubr.f32.gmra.mrb[12].mxu0 %v32_v38  ;;  %1011 = vmatmul.mubr.f32.gmra.mrb[12].mxu1 %v57_v39 }
  0x4e   :  { %938 = vmatprep.mubr.msk.f32.mxu0 %vm1134_vm0, %v1135_v1  ;;  %1013 = vmatprep.mubr.msk.f32.mxu1 %vm1134_vm0, %v1135_v1 }
  0x51   :  { %939 = vmatmul.mubr.f32.gmra.mrb[14].mxu0 %v33_v40  ;;  %1014 = vmatmul.mubr.f32.gmra.mrb[14].mxu1 %v58_v41 }
  0x52   :  { %941 = vmatprep.mubr.msk.f32.mxu0 %vm1134_vm0, %v1135_v1  ;;  %1016 = vmatprep.mubr.msk.f32.mxu1 %vm1134_vm0, %v1135_v1 }
  0x55   :  { %942 = vmatmul.mubr.f32.gmra.mrb[16].mxu0 %v34_v42  ;;  %1017 = vmatmul.mubr.f32.gmra.mrb[16].mxu1 %v59_v43 }
  0x56   :  { %944 = vmatprep.mubr.msk.f32.mxu0 %vm1134_vm0, %v1135_v1  ;;  %1019 = vmatprep.mubr.msk.f32.mxu1 %vm1134_vm0, %v1135_v1 }
  0x59   :  { %945 = vmatmul.mubr.f32.gmra.mrb[18].mxu0 %v35_v44  ;;  %1020 = vmatmul.mubr.f32.gmra.mrb[18].mxu1 %v60_v45 }
  0x5a   :  { %947 = vmatprep.mubr.msk.f32.mxu0 %vm1134_vm0, %v1135_v1  ;;  %1022 = vmatprep.mubr.msk.f32.mxu1 %vm1134_vm0, %v1135_v1 }
  0x5d   :  { %948 = vmatmul.mubr.f32.gmra.mrb[20].mxu0 %v36_v46  ;;  %1023 = vmatmul.mubr.f32.gmra.mrb[20].mxu1 %v61_v47 }
  0x5e   :  { %950 = vmatprep.mubr.msk.f32.mxu0 %vm1134_vm0, %v1135_v1  ;;  %1025 = vmatprep.mubr.msk.f32.mxu1 %vm1134_vm0, %v1135_v1 }
  0x61   :  { %951 = vmatmul.mubr.f32.gmra.mrb[22].mxu0 %v37_v48  ;;  %1026 = vmatmul.mubr.f32.gmra.mrb[22].mxu1 %v62_v49 }
  0x62   :  { %953 = vmatprep.mubr.msk.f32.mxu0 %vm1134_vm0, %v1135_v1  ;;  %1028 = vmatprep.mubr.msk.f32.mxu1 %vm1134_vm0, %v1135_v1 }
  0x65   :  { %954 = vmatmul.mubr.f32.gmra.mrb[24].mxu0 %v38_v50  ;;  %1029 = vmatmul.mubr.f32.gmra.mrb[24].mxu1 %v63_v51 }
  0x66   :  { %956 = vmatprep.mubr.msk.f32.mxu0 %vm1134_vm0, %v1135_v1  ;;  %1031 = vmatprep.mubr.msk.f32.mxu1 %vm1134_vm0, %v1135_v1 }
  0x69   :  { %957 = vmatmul.mubr.f32.gmra.mrb[26].mxu0 %v39_v52  ;;  %1032 = vmatmul.mubr.f32.gmra.mrb[26].mxu1 %v64_v53 }
  0x6a   :  { %959 = vmatprep.mubr.msk.f32.mxu0 %vm1134_vm0, %v1135_v1  ;;  %1034 = vmatprep.mubr.msk.f32.mxu1 %vm1134_vm0, %v1135_v1 }
  0x6d   :  { %960 = vmatmul.mubr.f32.gmra.mrb[28].mxu0 %v40_v54  ;;  %1035 = vmatmul.mubr.f32.gmra.mrb[28].mxu1 %v65_v55 }
  0x6e   :  { %962 = vmatprep.mubr.msk.f32.mxu0 %vm1134_vm0, %v1135_v1  ;;  %1037 = vmatprep.mubr.msk.f32.mxu1 %vm1134_vm0, %v1135_v1 }
  0x71   :  { %963 = vmatmul.mubr.f32.gmra.mrb[30].mxu0 %v41_v56  ;;  %1038 = vmatmul.mubr.f32.gmra.mrb[30].mxu1 %v66_v57 }
  0x72   :  { %965 = vmatprep.mubr.msk.f32.mxu0 %vm1134_vm0, %v1135_v1  ;;  %1040 = vmatprep.mubr.msk.f32.mxu1 %vm1134_vm0, %v1135_v1 }
  0x75   :  { %966 = vmatmul.mubr.f32.gmra.mrb[32].mxu0 %v42_v58  ;;  %1041 = vmatmul.mubr.f32.gmra.mrb[32].mxu1 %v67_v59 }
  0x76   :  { %968 = vmatprep.mubr.msk.f32.mxu0 %vm1134_vm0, %v1135_v1  ;;  %1043 = vmatprep.mubr.msk.f32.mxu1 %vm1134_vm0, %v1135_v1 }
  0x79   :  { %969 = vmatmul.mubr.f32.gmra.mrb[34].mxu0 %v43_v60  ;;  %1044 = vmatmul.mubr.f32.gmra.mrb[34].mxu1 %v68_v61 }
  0x7a   :  { %971 = vmatprep.mubr.msk.f32.mxu0 %vm1134_vm0, %v1135_v1  ;;  %1046 = vmatprep.mubr.msk.f32.mxu1 %vm1134_vm0, %v1135_v1 }
  0x7d   :  { %972 = vmatmul.mubr.f32.gmra.mrb[36].mxu0 %v44_v62  ;;  %1047 = vmatmul.mubr.f32.gmra.mrb[36].mxu1 %v69_v63 }
  0x7e   :  { %974 = vmatprep.mubr.msk.f32.mxu0 %vm1134_vm0, %v1135_v1  ;;  %1049 = vmatprep.mubr.msk.f32.mxu1 %vm1134_vm0, %v1135_v1 }
  0x81   :  { %975 = vmatmul.mubr.f32.gmra.mrb[38].mxu0 %v45_v0  ;;  %1050 = vmatmul.mubr.f32.gmra.mrb[38].mxu1 %v70_v2 }
  0x82   :  { %977 = vmatprep.mubr.msk.f32.mxu0 %vm1134_vm0, %v1135_v1  ;;  %1052 = vmatprep.mubr.msk.f32.mxu1 %vm1134_vm0, %v1135_v1 }
  0x85   :  { %978 = vmatmul.mubr.f32.gmra.mrb[40].mxu0 %v46_v3  ;;  %1053 = vmatmul.mubr.f32.gmra.mrb[40].mxu1 %v71_v4 }
  0x86   :  { %980 = vmatprep.mubr.msk.f32.mxu0 %vm1134_vm0, %v1135_v1  ;;  %1055 = vmatprep.mubr.msk.f32.mxu1 %vm1134_vm0, %v1135_v1 }
  0x89   :  { %981 = vmatmul.mubr.f32.gmra.mrb[42].mxu0 %v47_v5  ;;  %1056 = vmatmul.mubr.f32.gmra.mrb[42].mxu1 %v72_v6 }
  0x8a   :  { %983 = vmatprep.mubr.msk.f32.mxu0 %vm1134_vm0, %v1135_v1  ;;  %1058 = vmatprep.mubr.msk.f32.mxu1 %vm1134_vm0, %v1135_v1 }
  0x8d   :  { %984 = vmatmul.mubr.f32.gmra.mrb[44].mxu0 %v48_v7  ;;  %1059 = vmatmul.mubr.f32.gmra.mrb[44].mxu1 %v73_v8 }
  0x8e   :  { %986 = vmatprep.mubr.msk.f32.mxu0 %vm1134_vm0, %v1135_v1  ;;  %1061 = vmatprep.mubr.msk.f32.mxu1 %vm1134_vm0, %v1135_v1 }
  0x91   :  { %987 = vmatmul.mubr.f32.gmra.mrb[46].mxu0 %v49_v9  ;;  %1062 = vmatmul.mubr.f32.gmra.mrb[46].mxu1 %v74_v10 }
  0x92   :  { %989 = vmatprep.mubr.msk.f32.mxu0 %vm1134_vm0, %v1135_v1 }
  0x95   :  { %990 = vmatmul.mubr.f32.gmra.mrb[48].mxu0 %v50_v11 }
 0x108   :  { %v157_v12 = vpop.f32.mrb[0].mxu0  ;;  %v282_v13 = vpop.f32.mrb[0].mxu1 }
 0x109   :  { %406 = vst.msk [vmem:[%s2054_s3] sm:$0xff] %vm405_vm1, %v157_v12  ;;  %v919_v14 = vpop.f32.mrb[1].mxu0  ;;  %431 = vst.msk [vmem:[%s2054_s3 + $0xc8] sm:$0xff] %vm405_vm1, %v282_v13  ;;  %v994_v1 = vpop.f32.mrb[1].mxu1 }
 0x10c   :  { %v162_v15 = vpop.f32.mrb[2].mxu0  ;;  %v287_v16 = vpop.f32.mrb[2].mxu1 }
 0x10d   :  { %407 = vst.msk [vmem:[%s2054_s3 + $0x8] sm:$0xff] %vm405_vm1, %v162_v15  ;;  %v922_v17 = vpop.f32.mrb[3].mxu0  ;;  %432 = vst.msk [vmem:[%s2054_s3 + $0xd0] sm:$0xff] %vm405_vm1, %v287_v16  ;;  %v997_v18 = vpop.f32.mrb[3].mxu1 }
 0x110   :  { %v610_v20 = vld [vmem:[%s2054_s3] sm:$0xff]  ;;  %v635_v21 = vld [vmem:[%s2054_s3 + $0xc8] sm:$0xff]  ;;  %v167_v22 = vpop.f32.mrb[4].mxu0  ;;  %v292_v23 = vpop.f32.mrb[4].mxu1 }
 0x111   :  { %v666_v24 = vadd.f32 %v1477_v19, %v610_v20  ;;  %v691_v25 = vadd.f32 %v1477_v19, %v635_v21  ;;  %408 = vst.msk [vmem:[%s2054_s3 + $0x10] sm:$0xff] %vm405_vm1, %v167_v22  ;;  %v925_v26 = vpop.f32.mrb[5].mxu0  ;;  %433 = vst.msk [vmem:[%s2054_s3 + $0xd8] sm:$0xff] %vm405_vm1, %v292_v23  ;;  %v1000_v27 = vpop.f32.mrb[5].mxu1 }
 0x113   :  { %v715_v28 = vmax.f32 %v666_v24, 0.0  ;;  %v740_v29 = vmax.f32 %v691_v25, 0.0 }
 0x114   :  { %v611_v30 = vld [vmem:[%s2054_s3 + $0x8] sm:$0xff]  ;;  %v636_v31 = vld [vmem:[%s2054_s3 + $0xd0] sm:$0xff]  ;;  %v172_v32 = vpop.f32.mrb[6].mxu0  ;;  %v297_v33 = vpop.f32.mrb[6].mxu1 }
 0x115   :  { %765 = vst.msk [vmem:[%s2054_s3] sm:$0xff] %vm405_vm1, %v715_v28  ;;  %790 = vst.msk [vmem:[%s2054_s3 + $0xc8] sm:$0xff] %vm405_vm1, %v740_v29  ;;  %v667_v34 = vadd.f32 %v1477_v19, %v611_v30  ;;  %v692_v35 = vadd.f32 %v1477_v19, %v636_v31  ;;  %v928_v36 = vpop.f32.mrb[7].mxu0  ;;  %v1003_v37 = vpop.f32.mrb[7].mxu1 }
 0x116   :  { %409 = vst.msk [vmem:[%s2054_s3 + $0x18] sm:$0xff] %vm405_vm1, %v172_v32  ;;  %434 = vst.msk [vmem:[%s2054_s3 + $0xe0] sm:$0xff] %vm405_vm1, %v297_v33 }
 0x117   :  { %v716_v38 = vmax.f32 %v667_v34, 0.0  ;;  %v741_v39 = vmax.f32 %v692_v35, 0.0 }
 0x118   :  { %v612_v40 = vld [vmem:[%s2054_s3 + $0x10] sm:$0xff]  ;;  %v637_v41 = vld [vmem:[%s2054_s3 + $0xd8] sm:$0xff]  ;;  %v177_v42 = vpop.f32.mrb[8].mxu0  ;;  %v302_v43 = vpop.f32.mrb[8].mxu1 }
 0x119   :  { %766 = vst.msk [vmem:[%s2054_s3 + $0x8] sm:$0xff] %vm405_vm1, %v716_v38  ;;  %791 = vst.msk [vmem:[%s2054_s3 + $0xd0] sm:$0xff] %vm405_vm1, %v741_v39  ;;  %v668_v44 = vadd.f32 %v1477_v19, %v612_v40  ;;  %v693_v45 = vadd.f32 %v1477_v19, %v637_v41  ;;  %v931_v46 = vpop.f32.mrb[9].mxu0  ;;  %v1006_v47 = vpop.f32.mrb[9].mxu1 }
 0x11a   :  { %410 = vst.msk [vmem:[%s2054_s3 + $0x20] sm:$0xff] %vm405_vm1, %v177_v42  ;;  %435 = vst.msk [vmem:[%s2054_s3 + $0xe8] sm:$0xff] %vm405_vm1, %v302_v43 }
 0x11b   :  { %v717_v48 = vmax.f32 %v668_v44, 0.0  ;;  %v742_v49 = vmax.f32 %v693_v45, 0.0 }
 0x11c   :  { %v182_v52 = vpop.f32.mrb[10].mxu0  ;;  %v307_v53 = vpop.f32.mrb[10].mxu1 }
 0x11d   :  { %v613_v50 = vld [vmem:[%s2054_s3 + $0x18] sm:$0xff]  ;;  %v638_v51 = vld [vmem:[%s2054_s3 + $0xe0] sm:$0xff]  ;;  %767 = vst.msk [vmem:[%s2054_s3 + $0x10] sm:$0xff] %vm405_vm1, %v717_v48  ;;  %792 = vst.msk [vmem:[%s2054_s3 + $0xd8] sm:$0xff] %vm405_vm1, %v742_v49  ;;  %v934_v56 = vpop.f32.mrb[11].mxu0  ;;  %v1009_v57 = vpop.f32.mrb[11].mxu1 }
 0x11e   :  { %v669_v54 = vadd.f32 %v1477_v19, %v613_v50  ;;  %v694_v55 = vadd.f32 %v1477_v19, %v638_v51  ;;  %411 = vst.msk [vmem:[%s2054_s3 + $0x28] sm:$0xff] %vm405_vm1, %v182_v52  ;;  %436 = vst.msk [vmem:[%s2054_s3 + $0xf0] sm:$0xff] %vm405_vm1, %v307_v53 }
 0x120   :  { %v718_v58 = vmax.f32 %v669_v54, 0.0  ;;  %v743_v59 = vmax.f32 %v694_v55, 0.0  ;;  %v187_v62 = vpop.f32.mrb[12].mxu0  ;;  %v312_v63 = vpop.f32.mrb[12].mxu1 }
 0x121   :  { %v614_v60 = vld [vmem:[%s2054_s3 + $0x20] sm:$0xff]  ;;  %v639_v61 = vld [vmem:[%s2054_s3 + $0xe8] sm:$0xff]  ;;  %412 = vst.msk [vmem:[%s2054_s3 + $0x30] sm:$0xff] %vm405_vm1, %v187_v62  ;;  %v937_v3 = vpop.f32.mrb[13].mxu0  ;;  %437 = vst.msk [vmem:[%s2054_s3 + $0xf8] sm:$0xff] %vm405_vm1, %v312_v63  ;;  %v1012_v4 = vpop.f32.mrb[13].mxu1 }
 0x122   :  { %768 = vst.msk [vmem:[%s2054_s3 + $0x18] sm:$0xff] %vm405_vm1, %v718_v58  ;;  %793 = vst.msk [vmem:[%s2054_s3 + $0xe0] sm:$0xff] %vm405_vm1, %v743_v59  ;;  %v670_v0 = vadd.f32 %v1477_v19, %v614_v60  ;;  %v695_v2 = vadd.f32 %v1477_v19, %v639_v61 }
 0x124   :  { %v719_v5 = vmax.f32 %v670_v0, 0.0  ;;  %v744_v6 = vmax.f32 %v695_v2, 0.0  ;;  %v192_v9 = vpop.f32.mrb[14].mxu0  ;;  %v317_v10 = vpop.f32.mrb[14].mxu1 }
 0x125   :  { %v615_v7 = vld [vmem:[%s2054_s3 + $0x28] sm:$0xff]  ;;  %v640_v8 = vld [vmem:[%s2054_s3 + $0xf0] sm:$0xff]  ;;  %413 = vst.msk [vmem:[%s2054_s3 + $0x38] sm:$0xff] %vm405_vm1, %v192_v9  ;;  %v940_v13 = vpop.f32.mrb[15].mxu0  ;;  %438 = vst.msk [vmem:[%s2054_s3 + $0x100] sm:$0xff] %vm405_vm1, %v317_v10  ;;  %v1015_v14 = vpop.f32.mrb[15].mxu1 }
 0x126   :  { %769 = vst.msk [vmem:[%s2054_s3 + $0x20] sm:$0xff] %vm405_vm1, %v719_v5  ;;  %794 = vst.msk [vmem:[%s2054_s3 + $0xe8] sm:$0xff] %vm405_vm1, %v744_v6  ;;  %v671_v11 = vadd.f32 %v1477_v19, %v615_v7  ;;  %v696_v12 = vadd.f32 %v1477_v19, %v640_v8 }
 0x128   :  { %v720_v1 = vmax.f32 %v671_v11, 0.0  ;;  %v745_v15 = vmax.f32 %v696_v12, 0.0  ;;  %v616_v16 = vld [vmem:[%s2054_s3 + $0x30] sm:$0xff]  ;;  %v641_v17 = vld [vmem:[%s2054_s3 + $0xf8] sm:$0xff]  ;;  %v197_v18 = vpop.f32.mrb[16].mxu0  ;;  %v322_v20 = vpop.f32.mrb[16].mxu1 }
 0x129   :  { %v672_v21 = vadd.f32 %v1477_v19, %v616_v16  ;;  %v697_v22 = vadd.f32 %v1477_v19, %v641_v17  ;;  %414 = vst.msk [vmem:[%s2054_s3 + $0x40] sm:$0xff] %vm405_vm1, %v197_v18  ;;  %v943_v23 = vpop.f32.mrb[17].mxu0  ;;  %439 = vst.msk [vmem:[%s2054_s3 + $0x108] sm:$0xff] %vm405_vm1, %v322_v20  ;;  %v1018_v24 = vpop.f32.mrb[17].mxu1 }
 0x12a   :  { %770 = vst.msk [vmem:[%s2054_s3 + $0x28] sm:$0xff] %vm405_vm1, %v720_v1  ;;  %795 = vst.msk [vmem:[%s2054_s3 + $0xf0] sm:$0xff] %vm405_vm1, %v745_v15 }
 0x12b   :  { %v721_v25 = vmax.f32 %v672_v21, 0.0  ;;  %v746_v26 = vmax.f32 %v697_v22, 0.0 }
 0x12c   :  { %v617_v27 = vld [vmem:[%s2054_s3 + $0x38] sm:$0xff]  ;;  %v642_v28 = vld [vmem:[%s2054_s3 + $0x100] sm:$0xff]  ;;  %v202_v29 = vpop.f32.mrb[18].mxu0  ;;  %v327_v30 = vpop.f32.mrb[18].mxu1 }
 0x12d   :  { %771 = vst.msk [vmem:[%s2054_s3 + $0x30] sm:$0xff] %vm405_vm1, %v721_v25  ;;  %796 = vst.msk [vmem:[%s2054_s3 + $0xf8] sm:$0xff] %vm405_vm1, %v746_v26  ;;  %v673_v31 = vadd.f32 %v1477_v19, %v617_v27  ;;  %v698_v32 = vadd.f32 %v1477_v19, %v642_v28  ;;  %v946_v33 = vpop.f32.mrb[19].mxu0  ;;  %v1021_v34 = vpop.f32.mrb[19].mxu1 }
 0x12e   :  { %415 = vst.msk [vmem:[%s2054_s3 + $0x48] sm:$0xff] %vm405_vm1, %v202_v29  ;;  %440 = vst.msk [vmem:[%s2054_s3 + $0x110] sm:$0xff] %vm405_vm1, %v327_v30 }
 0x12f   :  { %v722_v35 = vmax.f32 %v673_v31, 0.0  ;;  %v747_v36 = vmax.f32 %v698_v32, 0.0 }
 0x130   :  { %v618_v37 = vld [vmem:[%s2054_s3 + $0x40] sm:$0xff]  ;;  %v643_v38 = vld [vmem:[%s2054_s3 + $0x108] sm:$0xff]  ;;  %v207_v39 = vpop.f32.mrb[20].mxu0  ;;  %v332_v40 = vpop.f32.mrb[20].mxu1 }
 0x131   :  { %772 = vst.msk [vmem:[%s2054_s3 + $0x38] sm:$0xff] %vm405_vm1, %v722_v35  ;;  %797 = vst.msk [vmem:[%s2054_s3 + $0x100] sm:$0xff] %vm405_vm1, %v747_v36  ;;  %v674_v41 = vadd.f32 %v1477_v19, %v618_v37  ;;  %v699_v42 = vadd.f32 %v1477_v19, %v643_v38  ;;  %v949_v43 = vpop.f32.mrb[21].mxu0  ;;  %v1024_v44 = vpop.f32.mrb[21].mxu1 }
 0x132   :  { %416 = vst.msk [vmem:[%s2054_s3 + $0x50] sm:$0xff] %vm405_vm1, %v207_v39  ;;  %441 = vst.msk [vmem:[%s2054_s3 + $0x118] sm:$0xff] %vm405_vm1, %v332_v40 }
 0x133   :  { %v723_v45 = vmax.f32 %v674_v41, 0.0  ;;  %v748_v46 = vmax.f32 %v699_v42, 0.0 }
 0x134   :  { %v212_v49 = vpop.f32.mrb[22].mxu0  ;;  %v337_v50 = vpop.f32.mrb[22].mxu1 }
 0x135   :  { %v619_v47 = vld [vmem:[%s2054_s3 + $0x48] sm:$0xff]  ;;  %v644_v48 = vld [vmem:[%s2054_s3 + $0x110] sm:$0xff]  ;;  %773 = vst.msk [vmem:[%s2054_s3 + $0x40] sm:$0xff] %vm405_vm1, %v723_v45  ;;  %798 = vst.msk [vmem:[%s2054_s3 + $0x108] sm:$0xff] %vm405_vm1, %v748_v46  ;;  %v952_v53 = vpop.f32.mrb[23].mxu0  ;;  %v1027_v54 = vpop.f32.mrb[23].mxu1 }
 0x136   :  { %v675_v51 = vadd.f32 %v1477_v19, %v619_v47  ;;  %v700_v52 = vadd.f32 %v1477_v19, %v644_v48  ;;  %417 = vst.msk [vmem:[%s2054_s3 + $0x58] sm:$0xff] %vm405_vm1, %v212_v49  ;;  %442 = vst.msk [vmem:[%s2054_s3 + $0x120] sm:$0xff] %vm405_vm1, %v337_v50 }
 0x138   :  { %v724_v55 = vmax.f32 %v675_v51, 0.0  ;;  %v749_v56 = vmax.f32 %v700_v52, 0.0  ;;  %v217_v59 = vpop.f32.mrb[24].mxu0  ;;  %v342_v60 = vpop.f32.mrb[24].mxu1 }
 0x139   :  { %v620_v57 = vld [vmem:[%s2054_s3 + $0x50] sm:$0xff]  ;;  %v645_v58 = vld [vmem:[%s2054_s3 + $0x118] sm:$0xff]  ;;  %418 = vst.msk [vmem:[%s2054_s3 + $0x60] sm:$0xff] %vm405_vm1, %v217_v59  ;;  %v955_v63 = vpop.f32.mrb[25].mxu0  ;;  %443 = vst.msk [vmem:[%s2054_s3 + $0x128] sm:$0xff] %vm405_vm1, %v342_v60  ;;  %v1030_v0 = vpop.f32.mrb[25].mxu1 }
 0x13a   :  { %774 = vst.msk [vmem:[%s2054_s3 + $0x48] sm:$0xff] %vm405_vm1, %v724_v55  ;;  %799 = vst.msk [vmem:[%s2054_s3 + $0x110] sm:$0xff] %vm405_vm1, %v749_v56  ;;  %v676_v61 = vadd.f32 %v1477_v19, %v620_v57  ;;  %v701_v62 = vadd.f32 %v1477_v19, %v645_v58 }
 0x13c   :  { %v725_v2 = vmax.f32 %v676_v61, 0.0  ;;  %v750_v3 = vmax.f32 %v701_v62, 0.0  ;;  %v222_v6 = vpop.f32.mrb[26].mxu0  ;;  %v347_v7 = vpop.f32.mrb[26].mxu1 }
 0x13d   :  { %v621_v4 = vld [vmem:[%s2054_s3 + $0x58] sm:$0xff]  ;;  %v646_v5 = vld [vmem:[%s2054_s3 + $0x120] sm:$0xff]  ;;  %419 = vst.msk [vmem:[%s2054_s3 + $0x68] sm:$0xff] %vm405_vm1, %v222_v6  ;;  %v958_v10 = vpop.f32.mrb[27].mxu0  ;;  %444 = vst.msk [vmem:[%s2054_s3 + $0x130] sm:$0xff] %vm405_vm1, %v347_v7  ;;  %v1033_v11 = vpop.f32.mrb[27].mxu1 }
 0x13e   :  { %775 = vst.msk [vmem:[%s2054_s3 + $0x50] sm:$0xff] %vm405_vm1, %v725_v2  ;;  %800 = vst.msk [vmem:[%s2054_s3 + $0x118] sm:$0xff] %vm405_vm1, %v750_v3  ;;  %v677_v8 = vadd.f32 %v1477_v19, %v621_v4  ;;  %v702_v9 = vadd.f32 %v1477_v19, %v646_v5 }
 0x140   :  { %v726_v12 = vmax.f32 %v677_v8, 0.0  ;;  %v751_v13 = vmax.f32 %v702_v9, 0.0  ;;  %v622_v14 = vld [vmem:[%s2054_s3 + $0x60] sm:$0xff]  ;;  %v647_v1 = vld [vmem:[%s2054_s3 + $0x128] sm:$0xff]  ;;  %v227_v15 = vpop.f32.mrb[28].mxu0  ;;  %v352_v16 = vpop.f32.mrb[28].mxu1 }
 0x141   :  { %v678_v17 = vadd.f32 %v1477_v19, %v622_v14  ;;  %v703_v18 = vadd.f32 %v1477_v19, %v647_v1  ;;  %420 = vst.msk [vmem:[%s2054_s3 + $0x70] sm:$0xff] %vm405_vm1, %v227_v15  ;;  %v961_v20 = vpop.f32.mrb[29].mxu0  ;;  %445 = vst.msk [vmem:[%s2054_s3 + $0x138] sm:$0xff] %vm405_vm1, %v352_v16  ;;  %v1036_v21 = vpop.f32.mrb[29].mxu1 }
 0x142   :  { %776 = vst.msk [vmem:[%s2054_s3 + $0x58] sm:$0xff] %vm405_vm1, %v726_v12  ;;  %801 = vst.msk [vmem:[%s2054_s3 + $0x120] sm:$0xff] %vm405_vm1, %v751_v13 }
 0x143   :  { %v727_v22 = vmax.f32 %v678_v17, 0.0  ;;  %v752_v23 = vmax.f32 %v703_v18, 0.0 }
 0x144   :  { %v623_v24 = vld [vmem:[%s2054_s3 + $0x68] sm:$0xff]  ;;  %v648_v25 = vld [vmem:[%s2054_s3 + $0x130] sm:$0xff]  ;;  %v232_v26 = vpop.f32.mrb[30].mxu0  ;;  %v357_v27 = vpop.f32.mrb[30].mxu1 }
 0x145   :  { %777 = vst.msk [vmem:[%s2054_s3 + $0x60] sm:$0xff] %vm405_vm1, %v727_v22  ;;  %802 = vst.msk [vmem:[%s2054_s3 + $0x128] sm:$0xff] %vm405_vm1, %v752_v23  ;;  %v679_v28 = vadd.f32 %v1477_v19, %v623_v24  ;;  %v704_v29 = vadd.f32 %v1477_v19, %v648_v25  ;;  %v964_v30 = vpop.f32.mrb[31].mxu0  ;;  %v1039_v31 = vpop.f32.mrb[31].mxu1 }
 0x146   :  { %421 = vst.msk [vmem:[%s2054_s3 + $0x78] sm:$0xff] %vm405_vm1, %v232_v26  ;;  %446 = vst.msk [vmem:[%s2054_s3 + $0x140] sm:$0xff] %vm405_vm1, %v357_v27 }
 0x147   :  { %v728_v32 = vmax.f32 %v679_v28, 0.0  ;;  %v753_v33 = vmax.f32 %v704_v29, 0.0 }
 0x148   :  { %v624_v34 = vld [vmem:[%s2054_s3 + $0x70] sm:$0xff]  ;;  %v649_v35 = vld [vmem:[%s2054_s3 + $0x138] sm:$0xff]  ;;  %v237_v36 = vpop.f32.mrb[32].mxu0  ;;  %v362_v37 = vpop.f32.mrb[32].mxu1 }
 0x149   :  { %778 = vst.msk [vmem:[%s2054_s3 + $0x68] sm:$0xff] %vm405_vm1, %v728_v32  ;;  %803 = vst.msk [vmem:[%s2054_s3 + $0x130] sm:$0xff] %vm405_vm1, %v753_v33  ;;  %v680_v38 = vadd.f32 %v1477_v19, %v624_v34  ;;  %v705_v39 = vadd.f32 %v1477_v19, %v649_v35  ;;  %v967_v40 = vpop.f32.mrb[33].mxu0  ;;  %v1042_v41 = vpop.f32.mrb[33].mxu1 }
 0x14a   :  { %422 = vst.msk [vmem:[%s2054_s3 + $0x80] sm:$0xff] %vm405_vm1, %v237_v36  ;;  %447 = vst.msk [vmem:[%s2054_s3 + $0x148] sm:$0xff] %vm405_vm1, %v362_v37 }
 0x14b   :  { %v729_v42 = vmax.f32 %v680_v38, 0.0  ;;  %v754_v43 = vmax.f32 %v705_v39, 0.0 }
 0x14c   :  { %v242_v46 = vpop.f32.mrb[34].mxu0  ;;  %v367_v47 = vpop.f32.mrb[34].mxu1 }
 0x14d   :  { %v625_v44 = vld [vmem:[%s2054_s3 + $0x78] sm:$0xff]  ;;  %v650_v45 = vld [vmem:[%s2054_s3 + $0x140] sm:$0xff]  ;;  %779 = vst.msk [vmem:[%s2054_s3 + $0x70] sm:$0xff] %vm405_vm1, %v729_v42  ;;  %804 = vst.msk [vmem:[%s2054_s3 + $0x138] sm:$0xff] %vm405_vm1, %v754_v43  ;;  %v970_v50 = vpop.f32.mrb[35].mxu0  ;;  %v1045_v51 = vpop.f32.mrb[35].mxu1 }
 0x14e   :  { %v681_v48 = vadd.f32 %v1477_v19, %v625_v44  ;;  %v706_v49 = vadd.f32 %v1477_v19, %v650_v45  ;;  %423 = vst.msk [vmem:[%s2054_s3 + $0x88] sm:$0xff] %vm405_vm1, %v242_v46  ;;  %448 = vst.msk [vmem:[%s2054_s3 + $0x150] sm:$0xff] %vm405_vm1, %v367_v47 }
 0x150   :  { %v730_v52 = vmax.f32 %v681_v48, 0.0  ;;  %v755_v53 = vmax.f32 %v706_v49, 0.0  ;;  %v247_v56 = vpop.f32.mrb[36].mxu0  ;;  %v372_v57 = vpop.f32.mrb[36].mxu1 }
 0x151   :  { %v626_v54 = vld [vmem:[%s2054_s3 + $0x80] sm:$0xff]  ;;  %v651_v55 = vld [vmem:[%s2054_s3 + $0x148] sm:$0xff]  ;;  %424 = vst.msk [vmem:[%s2054_s3 + $0x90] sm:$0xff] %vm405_vm1, %v247_v56  ;;  %v973_v60 = vpop.f32.mrb[37].mxu0  ;;  %449 = vst.msk [vmem:[%s2054_s3 + $0x158] sm:$0xff] %vm405_vm1, %v372_v57  ;;  %v1048_v61 = vpop.f32.mrb[37].mxu1 }
 0x152   :  { %780 = vst.msk [vmem:[%s2054_s3 + $0x78] sm:$0xff] %vm405_vm1, %v730_v52  ;;  %805 = vst.msk [vmem:[%s2054_s3 + $0x140] sm:$0xff] %vm405_vm1, %v755_v53  ;;  %v682_v58 = vadd.f32 %v1477_v19, %v626_v54  ;;  %v707_v59 = vadd.f32 %v1477_v19, %v651_v55 }
 0x154   :  { %v731_v62 = vmax.f32 %v682_v58, 0.0  ;;  %v756_v63 = vmax.f32 %v707_v59, 0.0  ;;  %v252_v3 = vpop.f32.mrb[38].mxu0  ;;  %v377_v4 = vpop.f32.mrb[38].mxu1 }
 0x155   :  { %v627_v0 = vld [vmem:[%s2054_s3 + $0x88] sm:$0xff]  ;;  %v652_v2 = vld [vmem:[%s2054_s3 + $0x150] sm:$0xff]  ;;  %425 = vst.msk [vmem:[%s2054_s3 + $0x98] sm:$0xff] %vm405_vm1, %v252_v3  ;;  %v976_v7 = vpop.f32.mrb[39].mxu0  ;;  %450 = vst.msk [vmem:[%s2054_s3 + $0x160] sm:$0xff] %vm405_vm1, %v377_v4  ;;  %v1051_v8 = vpop.f32.mrb[39].mxu1 }
 0x156   :  { %781 = vst.msk [vmem:[%s2054_s3 + $0x80] sm:$0xff] %vm405_vm1, %v731_v62  ;;  %806 = vst.msk [vmem:[%s2054_s3 + $0x148] sm:$0xff] %vm405_vm1, %v756_v63  ;;  %v683_v5 = vadd.f32 %v1477_v19, %v627_v0  ;;  %v708_v6 = vadd.f32 %v1477_v19, %v652_v2 }
 0x158   :  { %v732_v9 = vmax.f32 %v683_v5, 0.0  ;;  %v757_v10 = vmax.f32 %v708_v6, 0.0  ;;  %v628_v11 = vld [vmem:[%s2054_s3 + $0x90] sm:$0xff]  ;;  %v653_v12 = vld [vmem:[%s2054_s3 + $0x158] sm:$0xff]  ;;  %v257_v13 = vpop.f32.mrb[40].mxu0  ;;  %v382_v14 = vpop.f32.mrb[40].mxu1 }
 0x159   :  { %v684_v1 = vadd.f32 %v1477_v19, %v628_v11  ;;  %v709_v15 = vadd.f32 %v1477_v19, %v653_v12  ;;  %426 = vst.msk [vmem:[%s2054_s3 + $0xa0] sm:$0xff] %vm405_vm1, %v257_v13  ;;  %v979_v16 = vpop.f32.mrb[41].mxu0  ;;  %451 = vst.msk [vmem:[%s2054_s3 + $0x168] sm:$0xff] %vm405_vm1, %v382_v14  ;;  %v1054_v17 = vpop.f32.mrb[41].mxu1 }
 0x15a   :  { %782 = vst.msk [vmem:[%s2054_s3 + $0x88] sm:$0xff] %vm405_vm1, %v732_v9  ;;  %807 = vst.msk [vmem:[%s2054_s3 + $0x150] sm:$0xff] %vm405_vm1, %v757_v10 }
 0x15b   :  { %v733_v18 = vmax.f32 %v684_v1, 0.0  ;;  %v758_v20 = vmax.f32 %v709_v15, 0.0 }
 0x15c   :  { %v629_v21 = vld [vmem:[%s2054_s3 + $0x98] sm:$0xff]  ;;  %v654_v22 = vld [vmem:[%s2054_s3 + $0x160] sm:$0xff]  ;;  %v262_v23 = vpop.f32.mrb[42].mxu0  ;;  %v387_v24 = vpop.f32.mrb[42].mxu1 }
 0x15d   :  { %783 = vst.msk [vmem:[%s2054_s3 + $0x90] sm:$0xff] %vm405_vm1, %v733_v18  ;;  %808 = vst.msk [vmem:[%s2054_s3 + $0x158] sm:$0xff] %vm405_vm1, %v758_v20  ;;  %v685_v25 = vadd.f32 %v1477_v19, %v629_v21  ;;  %v710_v26 = vadd.f32 %v1477_v19, %v654_v22  ;;  %v982_v27 = vpop.f32.mrb[43].mxu0  ;;  %v1057_v28 = vpop.f32.mrb[43].mxu1 }
 0x15e   :  { %427 = vst.msk [vmem:[%s2054_s3 + $0xa8] sm:$0xff] %vm405_vm1, %v262_v23  ;;  %452 = vst.msk [vmem:[%s2054_s3 + $0x170] sm:$0xff] %vm405_vm1, %v387_v24 }
 0x15f   :  { %v734_v29 = vmax.f32 %v685_v25, 0.0  ;;  %v759_v30 = vmax.f32 %v710_v26, 0.0 }
 0x160   :  { %v630_v31 = vld [vmem:[%s2054_s3 + $0xa0] sm:$0xff]  ;;  %v655_v32 = vld [vmem:[%s2054_s3 + $0x168] sm:$0xff]  ;;  %v267_v33 = vpop.f32.mrb[44].mxu0  ;;  %v392_v34 = vpop.f32.mrb[44].mxu1 }
 0x161   :  { %784 = vst.msk [vmem:[%s2054_s3 + $0x98] sm:$0xff] %vm405_vm1, %v734_v29  ;;  %809 = vst.msk [vmem:[%s2054_s3 + $0x160] sm:$0xff] %vm405_vm1, %v759_v30  ;;  %v686_v35 = vadd.f32 %v1477_v19, %v630_v31  ;;  %v711_v36 = vadd.f32 %v1477_v19, %v655_v32  ;;  %v985_v37 = vpop.f32.mrb[45].mxu0  ;;  %v1060_v38 = vpop.f32.mrb[45].mxu1 }
 0x162   :  { %428 = vst.msk [vmem:[%s2054_s3 + $0xb0] sm:$0xff] %vm405_vm1, %v267_v33  ;;  %453 = vst.msk [vmem:[%s2054_s3 + $0x178] sm:$0xff] %vm405_vm1, %v392_v34 }
 0x163   :  { %v735_v39 = vmax.f32 %v686_v35, 0.0  ;;  %v760_v40 = vmax.f32 %v711_v36, 0.0 }
 0x164   :  { %v272_v43 = vpop.f32.mrb[46].mxu0  ;;  %v397_v44 = vpop.f32.mrb[46].mxu1 }
 0x165   :  { %v631_v41 = vld [vmem:[%s2054_s3 + $0xa8] sm:$0xff]  ;;  %v656_v42 = vld [vmem:[%s2054_s3 + $0x170] sm:$0xff]  ;;  %785 = vst.msk [vmem:[%s2054_s3 + $0xa0] sm:$0xff] %vm405_vm1, %v735_v39  ;;  %810 = vst.msk [vmem:[%s2054_s3 + $0x168] sm:$0xff] %vm405_vm1, %v760_v40  ;;  %v988_v47 = vpop.f32.mrb[47].mxu0  ;;  %v1063_v48 = vpop.f32.mrb[47].mxu1 }
 0x166   :  { %v687_v45 = vadd.f32 %v1477_v19, %v631_v41  ;;  %v712_v46 = vadd.f32 %v1477_v19, %v656_v42  ;;  %429 = vst.msk [vmem:[%s2054_s3 + $0xb8] sm:$0xff] %vm405_vm1, %v272_v43  ;;  %454 = vst.msk [vmem:[%s2054_s3 + $0x180] sm:$0xff] %vm405_vm1, %v397_v44 }
 0x168   :  { %v736_v49 = vmax.f32 %v687_v45, 0.0  ;;  %v761_v50 = vmax.f32 %v712_v46, 0.0  ;;  %v277_v53 = vpop.f32.mrb[48].mxu0 }
 0x169   :  { %v632_v51 = vld [vmem:[%s2054_s3 + $0xb0] sm:$0xff]  ;;  %v657_v52 = vld [vmem:[%s2054_s3 + $0x178] sm:$0xff]  ;;  %430 = vst.msk [vmem:[%s2054_s3 + $0xc0] sm:$0xff] %vm405_vm1, %v277_v53  ;;  %v991_v56 = vpop.f32.mrb[49].mxu0 }
 0x16a   :  { %786 = vst.msk [vmem:[%s2054_s3 + $0xa8] sm:$0xff] %vm405_vm1, %v736_v49  ;;  %811 = vst.msk [vmem:[%s2054_s3 + $0x170] sm:$0xff] %vm405_vm1, %v761_v50  ;;  %v688_v54 = vadd.f32 %v1477_v19, %v632_v51  ;;  %v713_v55 = vadd.f32 %v1477_v19, %v657_v52 }
 0x16c   :  { %v737_v57 = vmax.f32 %v688_v54, 0.0  ;;  %v762_v58 = vmax.f32 %v713_v55, 0.0 }
 0x16d   :  { %v633_v59 = vld [vmem:[%s2054_s3 + $0xb8] sm:$0xff]  ;;  %v658_v60 = vld [vmem:[%s2054_s3 + $0x180] sm:$0xff] }
 0x16e   :  { %787 = vst.msk [vmem:[%s2054_s3 + $0xb0] sm:$0xff] %vm405_vm1, %v737_v57  ;;  %812 = vst.msk [vmem:[%s2054_s3 + $0x178] sm:$0xff] %vm405_vm1, %v762_v58  ;;  %v689_v61 = vadd.f32 %v1477_v19, %v633_v59  ;;  %v714_v62 = vadd.f32 %v1477_v19, %v658_v60 }
 0x170   :  { %v738_v63 = vmax.f32 %v689_v61, 0.0  ;;  %v763_v0 = vmax.f32 %v714_v62, 0.0  ;;  %v634_v2 = vld [vmem:[%s2054_s3 + $0xc0] sm:$0xff] }
 0x171   :  { %v690_v3 = vadd.f32 %v1477_v19, %v634_v2 }
 0x172   :  { %788 = vst.msk [vmem:[%s2054_s3 + $0xb8] sm:$0xff] %vm405_vm1, %v738_v63  ;;  %813 = vst.msk [vmem:[%s2054_s3 + $0x180] sm:$0xff] %vm405_vm1, %v763_v0 }
 0x173   :  { %v739_v4 = vmax.f32 %v690_v3, 0.0 }
 0x175   :  { %789 = vst.msk [vmem:[%s2054_s3 + $0xc0] sm:$0xff] %vm405_vm1, %v739_v4 }
 0x176   :  { %818 = vsyncpa [#allocation3], 1 }

// kernel: cnn_forward.5
= control target key start
LH: loop header
LB: loop body
LE: loop exit
PB: predicated region body
PF: predicated region fallthrough
CT: control target
= control target key end

     0   :  { %8 = vsyncpa [#allocation3], 0  ;;  %s1414_s12 = smov [#allocation2]   ;;  %s2484_s0 = inlined_call_operand.vmem [shape: f32[456,16], index: 0, kind: input, shape index: {}]   ;;  %s2485_s1 = inlined_call_operand.vmem [shape: f32[16,32], index: 1, kind: input, shape index: {}]   ;;  %s2486_s2 = inlined_call_operand.hbm [shape: f32[1,32], index: 2, kind: input, shape index: {}]   ;;  %s2487_s3 = inlined_call_operand.vmem [shape: f32[456,32], index: 3, kind: output, shape index: {}]  }
   0x1   :  { %s19_s13 = sshll.u32 %s1414_s12, 4  ;;  %s1390_s16 = scalar_lea.hbm %s2486_s2, 16  ;;  %s20_s13 = int_to_ptr.vmem [resolvable:$true] %s19_s13 }
   0x2   :  { %p1391_p0 = scmp.ne.s32.totalorder %s2486_s2, %s1390_s16  ;;  %p1394_p1 = scmp.lt.u32.totalorder %s1390_s16, %s2486_s2 }
   0x4   :  { %p1396_p2 = pnand %p1394_p1, %p1391_p0 }
   0x6   :  { %1399 = shalt.err (!%p1396_p2)
}
   0x7   :  { %s1400_s21 = scalar_lea.vmem %s20_s13, 16  ;;  %s1404_s22 = scalar_lea.vmem %s20_s13, 32 }
   0x8   :  { %p1401_p3 = scmp.ne.s32.totalorder %s20_s13, %s1400_s21  ;;  %p1405_p4 = scmp.lt.s32.totalorder %s20_s13, %s20_s13 }
   0x9   :  { %p1406_p5 = scmp.lt.s32.totalorder %s1404_s22, %s1400_s21 }
   0xb   :  { %p1407_p6 = por %p1406_p5, %p1405_p4 }
   0xd   :  { %p1408_p7 = pnand %p1407_p6, %p1401_p3 }
   0xf   :  { %1411 = shalt.err (!%p1408_p7)
}
  0x10   :  { %22 = dma.hbm_to_vmem [thread:$0]  %s2486_s2, 16, %s20_s13, [#allocation3]  }
  0x11   :  { %1412 = dma.done.wait [#allocation3], 16  }
  0x12   :  { %1413 = vsyncadd [#allocation3], 4294967280  ;;  %v1415_v0 = vmov 0.0|0.0   ;;  %vm1416_vm0 = vmmov 0   ;;  %v1417_v1 = vmov 0.0   ;;  %v83_v2 = vld [vmem:[%s2485_s1] sm:$0xff] }
  0x13   :  { %1381 = vmatprep.subr.bf16.mxu0 %v1415_v0  ;;  %1384 = vmatprep.subr.bf16.mxu1 %v1415_v0  ;;  %v84_v3 = vld [vmem:[%s2485_s1 + $0x8] sm:$0xff]  ;;  %v26_v5 = vld [vmem:[%s2484_s0] sm:$0xff]  ;;  %vm85_vm1 = vcmask 130048   ;;  %v56_v8 = vld [vmem:[%s2484_s0 + $0xf0] sm:$0xff]  ;;  %vm611_vm2 = vcmask 261120  }
  0x14   :  { %1210 = vmatprep.mubr.msk.f32.mxu0 %vm1416_vm0, %v1417_v1  ;;  %1297 = vmatprep.mubr.msk.f32.mxu1 %vm1416_vm0, %v1417_v1  ;;  %v1382_v4 = vpack.c.bf16 %v84_v3, %v83_v2  ;;  %v55_v6 = vld [vmem:[%s2484_s0 + $0xe8] sm:$0xff]  ;;  %v28_v9 = vld [vmem:[%s2484_s0 + $0x10] sm:$0xff]  ;;  %v57_v10 = vld [vmem:[%s2484_s0 + $0xf8] sm:$0xff] }
  0x15   :  { %v27_v7 = vld [vmem:[%s2484_s0 + $0x8] sm:$0xff]  ;;  %v29_v11 = vld [vmem:[%s2484_s0 + $0x18] sm:$0xff]  ;;  %v58_v12 = vld [vmem:[%s2484_s0 + $0x100] sm:$0xff] }
  0x16   :  { %1383 = vmatpush3.bf16.msra.mxu0 %v1382_v4  ;;  %1385 = vmatpush3.bf16.msra.mxu1 %v1382_v4  ;;  %v30_v13 = vld [vmem:[%s2484_s0 + $0x20] sm:$0xff]  ;;  %v59_v14 = vld [vmem:[%s2484_s0 + $0x108] sm:$0xff]  ;;  %v60_v16 = vld [vmem:[%s2484_s0 + $0x110] sm:$0xff] }
  0x17   :  { %v31_v15 = vld [vmem:[%s2484_s0 + $0x28] sm:$0xff]  ;;  %v32_v17 = vld [vmem:[%s2484_s0 + $0x30] sm:$0xff]  ;;  %v61_v18 = vld [vmem:[%s2484_s0 + $0x118] sm:$0xff] }
  0x18   :  { %v33_v19 = vld [vmem:[%s2484_s0 + $0x38] sm:$0xff]  ;;  %v62_v20 = vld [vmem:[%s2484_s0 + $0x120] sm:$0xff]  ;;  %v63_v22 = vld [vmem:[%s2484_s0 + $0x128] sm:$0xff] }
  0x19   :  { %1211 = vmatmul.mubr.msk.f32.vlgmr.msra.gmra.mrb[0].mxu0 %vm85_vm1, %v26_v5  ;;  %1298 = vmatmul.mubr.msk.f32.vlgmr.msra.gmra.mrb[0].mxu1 %vm85_vm1, %v55_v6  ;;  %v34_v21 = vld [vmem:[%s2484_s0 + $0x40] sm:$0xff]  ;;  %v35_v23 = vld [vmem:[%s2484_s0 + $0x48] sm:$0xff]  ;;  %v64_v24 = vld [vmem:[%s2484_s0 + $0x130] sm:$0xff] }
  0x1a   :  { %1213 = vmatprep.mubr.msk.f32.mxu0 %vm1416_vm0, %v1417_v1  ;;  %1300 = vmatprep.mubr.msk.f32.mxu1 %vm1416_vm0, %v1417_v1  ;;  %v36_v25 = vld [vmem:[%s2484_s0 + $0x50] sm:$0xff]  ;;  %v65_v26 = vld [vmem:[%s2484_s0 + $0x138] sm:$0xff]  ;;  %v66_v28 = vld [vmem:[%s2484_s0 + $0x140] sm:$0xff] }
  0x1b   :  { %v37_v27 = vld [vmem:[%s2484_s0 + $0x58] sm:$0xff]  ;;  %v38_v29 = vld [vmem:[%s2484_s0 + $0x60] sm:$0xff]  ;;  %v67_v30 = vld [vmem:[%s2484_s0 + $0x148] sm:$0xff] }
  0x1c   :  { %v39_v31 = vld [vmem:[%s2484_s0 + $0x68] sm:$0xff]  ;;  %v68_v32 = vld [vmem:[%s2484_s0 + $0x150] sm:$0xff]  ;;  %v69_v34 = vld [vmem:[%s2484_s0 + $0x158] sm:$0xff] }
  0x1d   :  { %1214 = vmatmul.mubr.msk.f32.gmra.mrb[2].mxu0 %vm85_vm1, %v27_v7  ;;  %1301 = vmatmul.mubr.msk.f32.gmra.mrb[2].mxu1 %vm85_vm1, %v56_v8  ;;  %v40_v33 = vld [vmem:[%s2484_s0 + $0x70] sm:$0xff]  ;;  %v41_v35 = vld [vmem:[%s2484_s0 + $0x78] sm:$0xff]  ;;  %v70_v36 = vld [vmem:[%s2484_s0 + $0x160] sm:$0xff] }
  0x1e   :  { %1216 = vmatprep.mubr.msk.f32.mxu0 %vm1416_vm0, %v1417_v1  ;;  %1303 = vmatprep.mubr.msk.f32.mxu1 %vm1416_vm0, %v1417_v1  ;;  %v42_v37 = vld [vmem:[%s2484_s0 + $0x80] sm:$0xff]  ;;  %v71_v38 = vld [vmem:[%s2484_s0 + $0x168] sm:$0xff]  ;;  %v72_v40 = vld [vmem:[%s2484_s0 + $0x170] sm:$0xff] }
  0x1f   :  { %v43_v39 = vld [vmem:[%s2484_s0 + $0x88] sm:$0xff]  ;;  %v44_v41 = vld [vmem:[%s2484_s0 + $0x90] sm:$0xff]  ;;  %v73_v42 = vld [vmem:[%s2484_s0 + $0x178] sm:$0xff] }
  0x20   :  { %v45_v43 = vld [vmem:[%s2484_s0 + $0x98] sm:$0xff]  ;;  %v74_v44 = vld [vmem:[%s2484_s0 + $0x180] sm:$0xff]  ;;  %v75_v46 = vld [vmem:[%s2484_s0 + $0x188] sm:$0xff] }
  0x21   :  { %1217 = vmatmul.mubr.msk.f32.gmra.mrb[4].mxu0 %vm85_vm1, %v28_v9  ;;  %1304 = vmatmul.mubr.msk.f32.gmra.mrb[4].mxu1 %vm85_vm1, %v57_v10  ;;  %v46_v45 = vld [vmem:[%s2484_s0 + $0xa0] sm:$0xff]  ;;  %v47_v47 = vld [vmem:[%s2484_s0 + $0xa8] sm:$0xff]  ;;  %v76_v48 = vld [vmem:[%s2484_s0 + $0x190] sm:$0xff] }
  0x22   :  { %1219 = vmatprep.mubr.msk.f32.mxu0 %vm1416_vm0, %v1417_v1  ;;  %1306 = vmatprep.mubr.msk.f32.mxu1 %vm1416_vm0, %v1417_v1  ;;  %v48_v49 = vld [vmem:[%s2484_s0 + $0xb0] sm:$0xff]  ;;  %v77_v50 = vld [vmem:[%s2484_s0 + $0x198] sm:$0xff]  ;;  %v78_v52 = vld [vmem:[%s2484_s0 + $0x1a0] sm:$0xff] }
  0x23   :  { %v49_v51 = vld [vmem:[%s2484_s0 + $0xb8] sm:$0xff]  ;;  %v50_v53 = vld [vmem:[%s2484_s0 + $0xc0] sm:$0xff]  ;;  %v79_v54 = vld [vmem:[%s2484_s0 + $0x1a8] sm:$0xff] }
  0x24   :  { %v51_v55 = vld [vmem:[%s2484_s0 + $0xc8] sm:$0xff]  ;;  %v80_v56 = vld [vmem:[%s2484_s0 + $0x1b0] sm:$0xff]  ;;  %v81_v58 = vld [vmem:[%s2484_s0 + $0x1b8] sm:$0xff] }
  0x25   :  { %1220 = vmatmul.mubr.msk.f32.gmra.mrb[6].mxu0 %vm85_vm1, %v29_v11  ;;  %1307 = vmatmul.mubr.msk.f32.gmra.mrb[6].mxu1 %vm85_vm1, %v58_v12  ;;  %v52_v57 = vld [vmem:[%s2484_s0 + $0xd0] sm:$0xff]  ;;  %v53_v59 = vld [vmem:[%s2484_s0 + $0xd8] sm:$0xff]  ;;  %v82_v60 = vld [vmem:[%s2484_s0 + $0x1c0] sm:$0xff] }
  0x26   :  { %1222 = vmatprep.mubr.msk.f32.mxu0 %vm1416_vm0, %v1417_v1  ;;  %1309 = vmatprep.mubr.msk.f32.mxu1 %vm1416_vm0, %v1417_v1  ;;  %v54_v61 = vld [vmem:[%s2484_s0 + $0xe0] sm:$0xff] }
  0x27   :  { %v1814_v6 = vld [vmem:[#allocation2] ss:$0 sm:$0xff] }
  0x29   :  { %1223 = vmatmul.mubr.msk.f32.gmra.mrb[8].mxu0 %vm85_vm1, %v30_v13  ;;  %1310 = vmatmul.mubr.msk.f32.gmra.mrb[8].mxu1 %vm85_vm1, %v59_v14 }
  0x2a   :  { %1225 = vmatprep.mubr.msk.f32.mxu0 %vm1416_vm0, %v1417_v1  ;;  %1312 = vmatprep.mubr.msk.f32.mxu1 %vm1416_vm0, %v1417_v1 }
  0x2d   :  { %1226 = vmatmul.mubr.msk.f32.gmra.mrb[10].mxu0 %vm85_vm1, %v31_v15  ;;  %1313 = vmatmul.mubr.msk.f32.gmra.mrb[10].mxu1 %vm85_vm1, %v60_v16 }
  0x2e   :  { %1228 = vmatprep.mubr.msk.f32.mxu0 %vm1416_vm0, %v1417_v1  ;;  %1315 = vmatprep.mubr.msk.f32.mxu1 %vm1416_vm0, %v1417_v1 }
  0x31   :  { %1229 = vmatmul.mubr.msk.f32.gmra.mrb[12].mxu0 %vm85_vm1, %v32_v17  ;;  %1316 = vmatmul.mubr.msk.f32.gmra.mrb[12].mxu1 %vm85_vm1, %v61_v18 }
  0x32   :  { %1231 = vmatprep.mubr.msk.f32.mxu0 %vm1416_vm0, %v1417_v1  ;;  %1318 = vmatprep.mubr.msk.f32.mxu1 %vm1416_vm0, %v1417_v1 }
  0x35   :  { %1232 = vmatmul.mubr.msk.f32.gmra.mrb[14].mxu0 %vm85_vm1, %v33_v19  ;;  %1319 = vmatmul.mubr.msk.f32.gmra.mrb[14].mxu1 %vm85_vm1, %v62_v20 }
  0x36   :  { %1234 = vmatprep.mubr.msk.f32.mxu0 %vm1416_vm0, %v1417_v1  ;;  %1321 = vmatprep.mubr.msk.f32.mxu1 %vm1416_vm0, %v1417_v1 }
  0x39   :  { %1235 = vmatmul.mubr.msk.f32.gmra.mrb[16].mxu0 %vm85_vm1, %v34_v21  ;;  %1322 = vmatmul.mubr.msk.f32.gmra.mrb[16].mxu1 %vm85_vm1, %v63_v22 }
  0x3a   :  { %1237 = vmatprep.mubr.msk.f32.mxu0 %vm1416_vm0, %v1417_v1  ;;  %1324 = vmatprep.mubr.msk.f32.mxu1 %vm1416_vm0, %v1417_v1 }
  0x3d   :  { %1238 = vmatmul.mubr.msk.f32.gmra.mrb[18].mxu0 %vm85_vm1, %v35_v23  ;;  %1325 = vmatmul.mubr.msk.f32.gmra.mrb[18].mxu1 %vm85_vm1, %v64_v24 }
  0x3e   :  { %1240 = vmatprep.mubr.msk.f32.mxu0 %vm1416_vm0, %v1417_v1  ;;  %1327 = vmatprep.mubr.msk.f32.mxu1 %vm1416_vm0, %v1417_v1 }
  0x41   :  { %1241 = vmatmul.mubr.msk.f32.gmra.mrb[20].mxu0 %vm85_vm1, %v36_v25  ;;  %1328 = vmatmul.mubr.msk.f32.gmra.mrb[20].mxu1 %vm85_vm1, %v65_v26 }
  0x42   :  { %1243 = vmatprep.mubr.msk.f32.mxu0 %vm1416_vm0, %v1417_v1  ;;  %1330 = vmatprep.mubr.msk.f32.mxu1 %vm1416_vm0, %v1417_v1 }
  0x45   :  { %1244 = vmatmul.mubr.msk.f32.gmra.mrb[22].mxu0 %vm85_vm1, %v37_v27  ;;  %1331 = vmatmul.mubr.msk.f32.gmra.mrb[22].mxu1 %vm85_vm1, %v66_v28 }
  0x46   :  { %1246 = vmatprep.mubr.msk.f32.mxu0 %vm1416_vm0, %v1417_v1  ;;  %1333 = vmatprep.mubr.msk.f32.mxu1 %vm1416_vm0, %v1417_v1 }
  0x49   :  { %1247 = vmatmul.mubr.msk.f32.gmra.mrb[24].mxu0 %vm85_vm1, %v38_v29  ;;  %1334 = vmatmul.mubr.msk.f32.gmra.mrb[24].mxu1 %vm85_vm1, %v67_v30 }
  0x4a   :  { %1249 = vmatprep.mubr.msk.f32.mxu0 %vm1416_vm0, %v1417_v1  ;;  %1336 = vmatprep.mubr.msk.f32.mxu1 %vm1416_vm0, %v1417_v1 }
  0x4d   :  { %1250 = vmatmul.mubr.msk.f32.gmra.mrb[26].mxu0 %vm85_vm1, %v39_v31  ;;  %1337 = vmatmul.mubr.msk.f32.gmra.mrb[26].mxu1 %vm85_vm1, %v68_v32 }
  0x4e   :  { %1252 = vmatprep.mubr.msk.f32.mxu0 %vm1416_vm0, %v1417_v1  ;;  %1339 = vmatprep.mubr.msk.f32.mxu1 %vm1416_vm0, %v1417_v1 }
  0x51   :  { %1253 = vmatmul.mubr.msk.f32.gmra.mrb[28].mxu0 %vm85_vm1, %v40_v33  ;;  %1340 = vmatmul.mubr.msk.f32.gmra.mrb[28].mxu1 %vm85_vm1, %v69_v34 }
  0x52   :  { %1255 = vmatprep.mubr.msk.f32.mxu0 %vm1416_vm0, %v1417_v1  ;;  %1342 = vmatprep.mubr.msk.f32.mxu1 %vm1416_vm0, %v1417_v1 }
  0x55   :  { %1256 = vmatmul.mubr.msk.f32.gmra.mrb[30].mxu0 %vm85_vm1, %v41_v35  ;;  %1343 = vmatmul.mubr.msk.f32.gmra.mrb[30].mxu1 %vm85_vm1, %v70_v36 }
  0x56   :  { %1258 = vmatprep.mubr.msk.f32.mxu0 %vm1416_vm0, %v1417_v1  ;;  %1345 = vmatprep.mubr.msk.f32.mxu1 %vm1416_vm0, %v1417_v1 }
  0x59   :  { %1259 = vmatmul.mubr.msk.f32.gmra.mrb[32].mxu0 %vm85_vm1, %v42_v37  ;;  %1346 = vmatmul.mubr.msk.f32.gmra.mrb[32].mxu1 %vm85_vm1, %v71_v38 }
  0x5a   :  { %1261 = vmatprep.mubr.msk.f32.mxu0 %vm1416_vm0, %v1417_v1  ;;  %1348 = vmatprep.mubr.msk.f32.mxu1 %vm1416_vm0, %v1417_v1 }
  0x5d   :  { %1262 = vmatmul.mubr.msk.f32.gmra.mrb[34].mxu0 %vm85_vm1, %v43_v39  ;;  %1349 = vmatmul.mubr.msk.f32.gmra.mrb[34].mxu1 %vm85_vm1, %v72_v40 }
  0x5e   :  { %1264 = vmatprep.mubr.msk.f32.mxu0 %vm1416_vm0, %v1417_v1  ;;  %1351 = vmatprep.mubr.msk.f32.mxu1 %vm1416_vm0, %v1417_v1 }
  0x61   :  { %1265 = vmatmul.mubr.msk.f32.gmra.mrb[36].mxu0 %vm85_vm1, %v44_v41  ;;  %1352 = vmatmul.mubr.msk.f32.gmra.mrb[36].mxu1 %vm85_vm1, %v73_v42 }
  0x62   :  { %1267 = vmatprep.mubr.msk.f32.mxu0 %vm1416_vm0, %v1417_v1  ;;  %1354 = vmatprep.mubr.msk.f32.mxu1 %vm1416_vm0, %v1417_v1 }
  0x65   :  { %1268 = vmatmul.mubr.msk.f32.gmra.mrb[38].mxu0 %vm85_vm1, %v45_v43  ;;  %1355 = vmatmul.mubr.msk.f32.gmra.mrb[38].mxu1 %vm85_vm1, %v74_v44 }
  0x66   :  { %1270 = vmatprep.mubr.msk.f32.mxu0 %vm1416_vm0, %v1417_v1  ;;  %1357 = vmatprep.mubr.msk.f32.mxu1 %vm1416_vm0, %v1417_v1 }
  0x69   :  { %1271 = vmatmul.mubr.msk.f32.gmra.mrb[40].mxu0 %vm85_vm1, %v46_v45  ;;  %1358 = vmatmul.mubr.msk.f32.gmra.mrb[40].mxu1 %vm85_vm1, %v75_v46 }
  0x6a   :  { %1273 = vmatprep.mubr.msk.f32.mxu0 %vm1416_vm0, %v1417_v1  ;;  %1360 = vmatprep.mubr.msk.f32.mxu1 %vm1416_vm0, %v1417_v1 }
  0x6d   :  { %1274 = vmatmul.mubr.msk.f32.gmra.mrb[42].mxu0 %vm85_vm1, %v47_v47  ;;  %1361 = vmatmul.mubr.msk.f32.gmra.mrb[42].mxu1 %vm85_vm1, %v76_v48 }
  0x6e   :  { %1276 = vmatprep.mubr.msk.f32.mxu0 %vm1416_vm0, %v1417_v1  ;;  %1363 = vmatprep.mubr.msk.f32.mxu1 %vm1416_vm0, %v1417_v1 }
  0x71   :  { %1277 = vmatmul.mubr.msk.f32.gmra.mrb[44].mxu0 %vm85_vm1, %v48_v49  ;;  %1364 = vmatmul.mubr.msk.f32.gmra.mrb[44].mxu1 %vm85_vm1, %v77_v50 }
  0x72   :  { %1279 = vmatprep.mubr.msk.f32.mxu0 %vm1416_vm0, %v1417_v1  ;;  %1366 = vmatprep.mubr.msk.f32.mxu1 %vm1416_vm0, %v1417_v1 }
  0x75   :  { %1280 = vmatmul.mubr.msk.f32.gmra.mrb[46].mxu0 %vm85_vm1, %v49_v51  ;;  %1367 = vmatmul.mubr.msk.f32.gmra.mrb[46].mxu1 %vm85_vm1, %v78_v52 }
  0x76   :  { %1282 = vmatprep.mubr.msk.f32.mxu0 %vm1416_vm0, %v1417_v1  ;;  %1369 = vmatprep.mubr.msk.f32.mxu1 %vm1416_vm0, %v1417_v1 }
  0x79   :  { %1283 = vmatmul.mubr.msk.f32.gmra.mrb[48].mxu0 %vm85_vm1, %v50_v53  ;;  %1370 = vmatmul.mubr.msk.f32.gmra.mrb[48].mxu1 %vm85_vm1, %v79_v54 }
  0x7a   :  { %1285 = vmatprep.mubr.msk.f32.mxu0 %vm1416_vm0, %v1417_v1  ;;  %1372 = vmatprep.mubr.msk.f32.mxu1 %vm1416_vm0, %v1417_v1 }
  0x7d   :  { %1286 = vmatmul.mubr.msk.f32.gmra.mrb[50].mxu0 %vm85_vm1, %v51_v55  ;;  %1373 = vmatmul.mubr.msk.f32.gmra.mrb[50].mxu1 %vm85_vm1, %v80_v56 }
  0x7e   :  { %1288 = vmatprep.mubr.msk.f32.mxu0 %vm1416_vm0, %v1417_v1  ;;  %1375 = vmatprep.mubr.msk.f32.mxu1 %vm1416_vm0, %v1417_v1 }
  0x81   :  { %1289 = vmatmul.mubr.msk.f32.gmra.mrb[52].mxu0 %vm85_vm1, %v52_v57  ;;  %1376 = vmatmul.mubr.msk.f32.gmra.mrb[52].mxu1 %vm85_vm1, %v81_v58 }
  0x82   :  { %1291 = vmatprep.mubr.msk.f32.mxu0 %vm1416_vm0, %v1417_v1  ;;  %1378 = vmatprep.mubr.msk.f32.mxu1 %vm1416_vm0, %v1417_v1 }
  0x85   :  { %1292 = vmatmul.mubr.msk.f32.gmra.mrb[54].mxu0 %vm85_vm1, %v53_v59  ;;  %1379 = vmatmul.mubr.msk.f32.gmra.mrb[54].mxu1 %vm85_vm1, %v82_v60 }
  0x86   :  { %1294 = vmatprep.mubr.msk.f32.mxu0 %vm1416_vm0, %v1417_v1 }
  0x89   :  { %1295 = vmatmul.mubr.msk.f32.gmra.mrb[56].mxu0 %vm85_vm1, %v54_v61 }
  0xec   :  { %v323_v62 = vpop.f32.mrb[0].mxu0  ;;  %v468_v63 = vpop.f32.mrb[0].mxu1 }
  0xed   :  { %612 = vst.msk [vmem:[%s2487_s3] sm:$0xff] %vm611_vm2, %v323_v62  ;;  %v1212_v0 = vpop.f32.mrb[1].mxu0  ;;  %641 = vst.msk [vmem:[%s2487_s3 + $0xe8] sm:$0xff] %vm611_vm2, %v468_v63  ;;  %v1299_v1 = vpop.f32.mrb[1].mxu1 }
  0xf0   :  { %v328_v2 = vpop.f32.mrb[2].mxu0  ;;  %v473_v3 = vpop.f32.mrb[2].mxu1 }
  0xf1   :  { %613 = vst.msk [vmem:[%s2487_s3 + $0x8] sm:$0xff] %vm611_vm2, %v328_v2  ;;  %v1215_v4 = vpop.f32.mrb[3].mxu0  ;;  %642 = vst.msk [vmem:[%s2487_s3 + $0xf0] sm:$0xff] %vm611_vm2, %v473_v3  ;;  %v1302_v5 = vpop.f32.mrb[3].mxu1 }
  0xf4   :  { %v848_v7 = vld [vmem:[%s2487_s3] sm:$0xff]  ;;  %v877_v8 = vld [vmem:[%s2487_s3 + $0xe8] sm:$0xff]  ;;  %v333_v9 = vpop.f32.mrb[4].mxu0  ;;  %v478_v10 = vpop.f32.mrb[4].mxu1 }
  0xf5   :  { %v912_v11 = vadd.f32 %v1814_v6, %v848_v7  ;;  %v941_v12 = vadd.f32 %v1814_v6, %v877_v8  ;;  %614 = vst.msk [vmem:[%s2487_s3 + $0x10] sm:$0xff] %vm611_vm2, %v333_v9  ;;  %v1218_v13 = vpop.f32.mrb[5].mxu0  ;;  %643 = vst.msk [vmem:[%s2487_s3 + $0xf8] sm:$0xff] %vm611_vm2, %v478_v10  ;;  %v1305_v14 = vpop.f32.mrb[5].mxu1 }
  0xf7   :  { %v969_v15 = vmax.f32 %v912_v11, 0.0  ;;  %v998_v16 = vmax.f32 %v941_v12, 0.0 }
  0xf8   :  { %v849_v17 = vld [vmem:[%s2487_s3 + $0x8] sm:$0xff]  ;;  %v878_v18 = vld [vmem:[%s2487_s3 + $0xf0] sm:$0xff]  ;;  %v338_v19 = vpop.f32.mrb[6].mxu0  ;;  %v483_v20 = vpop.f32.mrb[6].mxu1 }
  0xf9   :  { %1027 = vst.msk [vmem:[%s2487_s3] sm:$0xff] %vm611_vm2, %v969_v15  ;;  %1056 = vst.msk [vmem:[%s2487_s3 + $0xe8] sm:$0xff] %vm611_vm2, %v998_v16  ;;  %v913_v21 = vadd.f32 %v1814_v6, %v849_v17  ;;  %v942_v22 = vadd.f32 %v1814_v6, %v878_v18  ;;  %v1221_v23 = vpop.f32.mrb[7].mxu0  ;;  %v1308_v24 = vpop.f32.mrb[7].mxu1 }
  0xfa   :  { %615 = vst.msk [vmem:[%s2487_s3 + $0x18] sm:$0xff] %vm611_vm2, %v338_v19  ;;  %644 = vst.msk [vmem:[%s2487_s3 + $0x100] sm:$0xff] %vm611_vm2, %v483_v20 }
  0xfb   :  { %v970_v25 = vmax.f32 %v913_v21, 0.0  ;;  %v999_v26 = vmax.f32 %v942_v22, 0.0 }
  0xfc   :  { %v850_v27 = vld [vmem:[%s2487_s3 + $0x10] sm:$0xff]  ;;  %v879_v28 = vld [vmem:[%s2487_s3 + $0xf8] sm:$0xff]  ;;  %v343_v29 = vpop.f32.mrb[8].mxu0  ;;  %v488_v30 = vpop.f32.mrb[8].mxu1 }
  0xfd   :  { %1028 = vst.msk [vmem:[%s2487_s3 + $0x8] sm:$0xff] %vm611_vm2, %v970_v25  ;;  %1057 = vst.msk [vmem:[%s2487_s3 + $0xf0] sm:$0xff] %vm611_vm2, %v999_v26  ;;  %v914_v31 = vadd.f32 %v1814_v6, %v850_v27  ;;  %v943_v32 = vadd.f32 %v1814_v6, %v879_v28  ;;  %v1224_v33 = vpop.f32.mrb[9].mxu0  ;;  %v1311_v34 = vpop.f32.mrb[9].mxu1 }
  0xfe   :  { %616 = vst.msk [vmem:[%s2487_s3 + $0x20] sm:$0xff] %vm611_vm2, %v343_v29  ;;  %645 = vst.msk [vmem:[%s2487_s3 + $0x108] sm:$0xff] %vm611_vm2, %v488_v30 }
  0xff   :  { %v971_v35 = vmax.f32 %v914_v31, 0.0  ;;  %v1000_v36 = vmax.f32 %v943_v32, 0.0 }
 0x100   :  { %v348_v39 = vpop.f32.mrb[10].mxu0  ;;  %v493_v40 = vpop.f32.mrb[10].mxu1 }
 0x101   :  { %v851_v37 = vld [vmem:[%s2487_s3 + $0x18] sm:$0xff]  ;;  %v880_v38 = vld [vmem:[%s2487_s3 + $0x100] sm:$0xff]  ;;  %1029 = vst.msk [vmem:[%s2487_s3 + $0x10] sm:$0xff] %vm611_vm2, %v971_v35  ;;  %1058 = vst.msk [vmem:[%s2487_s3 + $0xf8] sm:$0xff] %vm611_vm2, %v1000_v36  ;;  %v1227_v43 = vpop.f32.mrb[11].mxu0  ;;  %v1314_v44 = vpop.f32.mrb[11].mxu1 }
 0x102   :  { %v915_v41 = vadd.f32 %v1814_v6, %v851_v37  ;;  %v944_v42 = vadd.f32 %v1814_v6, %v880_v38  ;;  %617 = vst.msk [vmem:[%s2487_s3 + $0x28] sm:$0xff] %vm611_vm2, %v348_v39  ;;  %646 = vst.msk [vmem:[%s2487_s3 + $0x110] sm:$0xff] %vm611_vm2, %v493_v40 }
 0x104   :  { %v972_v45 = vmax.f32 %v915_v41, 0.0  ;;  %v1001_v46 = vmax.f32 %v944_v42, 0.0  ;;  %v353_v49 = vpop.f32.mrb[12].mxu0  ;;  %v498_v50 = vpop.f32.mrb[12].mxu1 }
 0x105   :  { %v852_v47 = vld [vmem:[%s2487_s3 + $0x20] sm:$0xff]  ;;  %v881_v48 = vld [vmem:[%s2487_s3 + $0x108] sm:$0xff]  ;;  %618 = vst.msk [vmem:[%s2487_s3 + $0x30] sm:$0xff] %vm611_vm2, %v353_v49  ;;  %v1230_v53 = vpop.f32.mrb[13].mxu0  ;;  %647 = vst.msk [vmem:[%s2487_s3 + $0x118] sm:$0xff] %vm611_vm2, %v498_v50  ;;  %v1317_v54 = vpop.f32.mrb[13].mxu1 }
 0x106   :  { %1030 = vst.msk [vmem:[%s2487_s3 + $0x18] sm:$0xff] %vm611_vm2, %v972_v45  ;;  %1059 = vst.msk [vmem:[%s2487_s3 + $0x100] sm:$0xff] %vm611_vm2, %v1001_v46  ;;  %v916_v51 = vadd.f32 %v1814_v6, %v852_v47  ;;  %v945_v52 = vadd.f32 %v1814_v6, %v881_v48 }
 0x108   :  { %v973_v55 = vmax.f32 %v916_v51, 0.0  ;;  %v1002_v56 = vmax.f32 %v945_v52, 0.0  ;;  %v358_v59 = vpop.f32.mrb[14].mxu0  ;;  %v503_v60 = vpop.f32.mrb[14].mxu1 }
 0x109   :  { %v853_v57 = vld [vmem:[%s2487_s3 + $0x28] sm:$0xff]  ;;  %v882_v58 = vld [vmem:[%s2487_s3 + $0x110] sm:$0xff]  ;;  %619 = vst.msk [vmem:[%s2487_s3 + $0x38] sm:$0xff] %vm611_vm2, %v358_v59  ;;  %v1233_v63 = vpop.f32.mrb[15].mxu0  ;;  %648 = vst.msk [vmem:[%s2487_s3 + $0x120] sm:$0xff] %vm611_vm2, %v503_v60  ;;  %v1320_v0 = vpop.f32.mrb[15].mxu1 }
 0x10a   :  { %1031 = vst.msk [vmem:[%s2487_s3 + $0x20] sm:$0xff] %vm611_vm2, %v973_v55  ;;  %1060 = vst.msk [vmem:[%s2487_s3 + $0x108] sm:$0xff] %vm611_vm2, %v1002_v56  ;;  %v917_v61 = vadd.f32 %v1814_v6, %v853_v57  ;;  %v946_v62 = vadd.f32 %v1814_v6, %v882_v58 }
 0x10c   :  { %v974_v1 = vmax.f32 %v917_v61, 0.0  ;;  %v1003_v2 = vmax.f32 %v946_v62, 0.0  ;;  %v854_v3 = vld [vmem:[%s2487_s3 + $0x30] sm:$0xff]  ;;  %v883_v4 = vld [vmem:[%s2487_s3 + $0x118] sm:$0xff]  ;;  %v363_v5 = vpop.f32.mrb[16].mxu0  ;;  %v508_v7 = vpop.f32.mrb[16].mxu1 }
 0x10d   :  { %v918_v8 = vadd.f32 %v1814_v6, %v854_v3  ;;  %v947_v9 = vadd.f32 %v1814_v6, %v883_v4  ;;  %620 = vst.msk [vmem:[%s2487_s3 + $0x40] sm:$0xff] %vm611_vm2, %v363_v5  ;;  %v1236_v10 = vpop.f32.mrb[17].mxu0  ;;  %649 = vst.msk [vmem:[%s2487_s3 + $0x128] sm:$0xff] %vm611_vm2, %v508_v7  ;;  %v1323_v11 = vpop.f32.mrb[17].mxu1 }
 0x10e   :  { %1032 = vst.msk [vmem:[%s2487_s3 + $0x28] sm:$0xff] %vm611_vm2, %v974_v1  ;;  %1061 = vst.msk [vmem:[%s2487_s3 + $0x110] sm:$0xff] %vm611_vm2, %v1003_v2 }
 0x10f   :  { %v975_v12 = vmax.f32 %v918_v8, 0.0  ;;  %v1004_v13 = vmax.f32 %v947_v9, 0.0 }
 0x110   :  { %v855_v14 = vld [vmem:[%s2487_s3 + $0x38] sm:$0xff]  ;;  %v884_v15 = vld [vmem:[%s2487_s3 + $0x120] sm:$0xff]  ;;  %v368_v16 = vpop.f32.mrb[18].mxu0  ;;  %v513_v17 = vpop.f32.mrb[18].mxu1 }
 0x111   :  { %1033 = vst.msk [vmem:[%s2487_s3 + $0x30] sm:$0xff] %vm611_vm2, %v975_v12  ;;  %1062 = vst.msk [vmem:[%s2487_s3 + $0x118] sm:$0xff] %vm611_vm2, %v1004_v13  ;;  %v919_v18 = vadd.f32 %v1814_v6, %v855_v14  ;;  %v948_v19 = vadd.f32 %v1814_v6, %v884_v15  ;;  %v1239_v20 = vpop.f32.mrb[19].mxu0  ;;  %v1326_v21 = vpop.f32.mrb[19].mxu1 }
 0x112   :  { %621 = vst.msk [vmem:[%s2487_s3 + $0x48] sm:$0xff] %vm611_vm2, %v368_v16  ;;  %650 = vst.msk [vmem:[%s2487_s3 + $0x130] sm:$0xff] %vm611_vm2, %v513_v17 }
 0x113   :  { %v976_v22 = vmax.f32 %v919_v18, 0.0  ;;  %v1005_v23 = vmax.f32 %v948_v19, 0.0 }
 0x114   :  { %v856_v24 = vld [vmem:[%s2487_s3 + $0x40] sm:$0xff]  ;;  %v885_v25 = vld [vmem:[%s2487_s3 + $0x128] sm:$0xff]  ;;  %v373_v26 = vpop.f32.mrb[20].mxu0  ;;  %v518_v27 = vpop.f32.mrb[20].mxu1 }
 0x115   :  { %1034 = vst.msk [vmem:[%s2487_s3 + $0x38] sm:$0xff] %vm611_vm2, %v976_v22  ;;  %1063 = vst.msk [vmem:[%s2487_s3 + $0x120] sm:$0xff] %vm611_vm2, %v1005_v23  ;;  %v920_v28 = vadd.f32 %v1814_v6, %v856_v24  ;;  %v949_v29 = vadd.f32 %v1814_v6, %v885_v25  ;;  %v1242_v30 = vpop.f32.mrb[21].mxu0  ;;  %v1329_v31 = vpop.f32.mrb[21].mxu1 }
 0x116   :  { %622 = vst.msk [vmem:[%s2487_s3 + $0x50] sm:$0xff] %vm611_vm2, %v373_v26  ;;  %651 = vst.msk [vmem:[%s2487_s3 + $0x138] sm:$0xff] %vm611_vm2, %v518_v27 }
 0x117   :  { %v977_v32 = vmax.f32 %v920_v28, 0.0  ;;  %v1006_v33 = vmax.f32 %v949_v29, 0.0 }
 0x118   :  { %v378_v36 = vpop.f32.mrb[22].mxu0  ;;  %v523_v37 = vpop.f32.mrb[22].mxu1 }
 0x119   :  { %v857_v34 = vld [vmem:[%s2487_s3 + $0x48] sm:$0xff]  ;;  %v886_v35 = vld [vmem:[%s2487_s3 + $0x130] sm:$0xff]  ;;  %1035 = vst.msk [vmem:[%s2487_s3 + $0x40] sm:$0xff] %vm611_vm2, %v977_v32  ;;  %1064 = vst.msk [vmem:[%s2487_s3 + $0x128] sm:$0xff] %vm611_vm2, %v1006_v33  ;;  %v1245_v40 = vpop.f32.mrb[23].mxu0  ;;  %v1332_v41 = vpop.f32.mrb[23].mxu1 }
 0x11a   :  { %v921_v38 = vadd.f32 %v1814_v6, %v857_v34  ;;  %v950_v39 = vadd.f32 %v1814_v6, %v886_v35  ;;  %623 = vst.msk [vmem:[%s2487_s3 + $0x58] sm:$0xff] %vm611_vm2, %v378_v36  ;;  %652 = vst.msk [vmem:[%s2487_s3 + $0x140] sm:$0xff] %vm611_vm2, %v523_v37 }
 0x11c   :  { %v978_v42 = vmax.f32 %v921_v38, 0.0  ;;  %v1007_v43 = vmax.f32 %v950_v39, 0.0  ;;  %v383_v46 = vpop.f32.mrb[24].mxu0  ;;  %v528_v47 = vpop.f32.mrb[24].mxu1 }
 0x11d   :  { %v858_v44 = vld [vmem:[%s2487_s3 + $0x50] sm:$0xff]  ;;  %v887_v45 = vld [vmem:[%s2487_s3 + $0x138] sm:$0xff]  ;;  %624 = vst.msk [vmem:[%s2487_s3 + $0x60] sm:$0xff] %vm611_vm2, %v383_v46  ;;  %v1248_v50 = vpop.f32.mrb[25].mxu0  ;;  %653 = vst.msk [vmem:[%s2487_s3 + $0x148] sm:$0xff] %vm611_vm2, %v528_v47  ;;  %v1335_v51 = vpop.f32.mrb[25].mxu1 }
 0x11e   :  { %1036 = vst.msk [vmem:[%s2487_s3 + $0x48] sm:$0xff] %vm611_vm2, %v978_v42  ;;  %1065 = vst.msk [vmem:[%s2487_s3 + $0x130] sm:$0xff] %vm611_vm2, %v1007_v43  ;;  %v922_v48 = vadd.f32 %v1814_v6, %v858_v44  ;;  %v951_v49 = vadd.f32 %v1814_v6, %v887_v45 }
 0x120   :  { %v979_v52 = vmax.f32 %v922_v48, 0.0  ;;  %v1008_v53 = vmax.f32 %v951_v49, 0.0  ;;  %v388_v56 = vpop.f32.mrb[26].mxu0  ;;  %v533_v57 = vpop.f32.mrb[26].mxu1 }
 0x121   :  { %v859_v54 = vld [vmem:[%s2487_s3 + $0x58] sm:$0xff]  ;;  %v888_v55 = vld [vmem:[%s2487_s3 + $0x140] sm:$0xff]  ;;  %625 = vst.msk [vmem:[%s2487_s3 + $0x68] sm:$0xff] %vm611_vm2, %v388_v56  ;;  %v1251_v60 = vpop.f32.mrb[27].mxu0  ;;  %654 = vst.msk [vmem:[%s2487_s3 + $0x150] sm:$0xff] %vm611_vm2, %v533_v57  ;;  %v1338_v61 = vpop.f32.mrb[27].mxu1 }
 0x122   :  { %1037 = vst.msk [vmem:[%s2487_s3 + $0x50] sm:$0xff] %vm611_vm2, %v979_v52  ;;  %1066 = vst.msk [vmem:[%s2487_s3 + $0x138] sm:$0xff] %vm611_vm2, %v1008_v53  ;;  %v923_v58 = vadd.f32 %v1814_v6, %v859_v54  ;;  %v952_v59 = vadd.f32 %v1814_v6, %v888_v55 }
 0x124   :  { %v980_v62 = vmax.f32 %v923_v58, 0.0  ;;  %v1009_v63 = vmax.f32 %v952_v59, 0.0  ;;  %v860_v0 = vld [vmem:[%s2487_s3 + $0x60] sm:$0xff]  ;;  %v889_v1 = vld [vmem:[%s2487_s3 + $0x148] sm:$0xff]  ;;  %v393_v2 = vpop.f32.mrb[28].mxu0  ;;  %v538_v3 = vpop.f32.mrb[28].mxu1 }
 0x125   :  { %v924_v4 = vadd.f32 %v1814_v6, %v860_v0  ;;  %v953_v5 = vadd.f32 %v1814_v6, %v889_v1  ;;  %626 = vst.msk [vmem:[%s2487_s3 + $0x70] sm:$0xff] %vm611_vm2, %v393_v2  ;;  %v1254_v7 = vpop.f32.mrb[29].mxu0  ;;  %655 = vst.msk [vmem:[%s2487_s3 + $0x158] sm:$0xff] %vm611_vm2, %v538_v3  ;;  %v1341_v8 = vpop.f32.mrb[29].mxu1 }
 0x126   :  { %1038 = vst.msk [vmem:[%s2487_s3 + $0x58] sm:$0xff] %vm611_vm2, %v980_v62  ;;  %1067 = vst.msk [vmem:[%s2487_s3 + $0x140] sm:$0xff] %vm611_vm2, %v1009_v63 }
 0x127   :  { %v981_v9 = vmax.f32 %v924_v4, 0.0  ;;  %v1010_v10 = vmax.f32 %v953_v5, 0.0 }
 0x128   :  { %v861_v11 = vld [vmem:[%s2487_s3 + $0x68] sm:$0xff]  ;;  %v890_v12 = vld [vmem:[%s2487_s3 + $0x150] sm:$0xff]  ;;  %v398_v13 = vpop.f32.mrb[30].mxu0  ;;  %v543_v14 = vpop.f32.mrb[30].mxu1 }
 0x129   :  { %1039 = vst.msk [vmem:[%s2487_s3 + $0x60] sm:$0xff] %vm611_vm2, %v981_v9  ;;  %1068 = vst.msk [vmem:[%s2487_s3 + $0x148] sm:$0xff] %vm611_vm2, %v1010_v10  ;;  %v925_v15 = vadd.f32 %v1814_v6, %v861_v11  ;;  %v954_v16 = vadd.f32 %v1814_v6, %v890_v12  ;;  %v1257_v17 = vpop.f32.mrb[31].mxu0  ;;  %v1344_v18 = vpop.f32.mrb[31].mxu1 }
 0x12a   :  { %627 = vst.msk [vmem:[%s2487_s3 + $0x78] sm:$0xff] %vm611_vm2, %v398_v13  ;;  %656 = vst.msk [vmem:[%s2487_s3 + $0x160] sm:$0xff] %vm611_vm2, %v543_v14 }
 0x12b   :  { %v982_v19 = vmax.f32 %v925_v15, 0.0  ;;  %v1011_v20 = vmax.f32 %v954_v16, 0.0 }
 0x12c   :  { %v862_v21 = vld [vmem:[%s2487_s3 + $0x70] sm:$0xff]  ;;  %v891_v22 = vld [vmem:[%s2487_s3 + $0x158] sm:$0xff]  ;;  %v403_v23 = vpop.f32.mrb[32].mxu0  ;;  %v548_v24 = vpop.f32.mrb[32].mxu1 }
 0x12d   :  { %1040 = vst.msk [vmem:[%s2487_s3 + $0x68] sm:$0xff] %vm611_vm2, %v982_v19  ;;  %1069 = vst.msk [vmem:[%s2487_s3 + $0x150] sm:$0xff] %vm611_vm2, %v1011_v20  ;;  %v926_v25 = vadd.f32 %v1814_v6, %v862_v21  ;;  %v955_v26 = vadd.f32 %v1814_v6, %v891_v22  ;;  %v1260_v27 = vpop.f32.mrb[33].mxu0  ;;  %v1347_v28 = vpop.f32.mrb[33].mxu1 }
 0x12e   :  { %628 = vst.msk [vmem:[%s2487_s3 + $0x80] sm:$0xff] %vm611_vm2, %v403_v23  ;;  %657 = vst.msk [vmem:[%s2487_s3 + $0x168] sm:$0xff] %vm611_vm2, %v548_v24 }
 0x12f   :  { %v983_v29 = vmax.f32 %v926_v25, 0.0  ;;  %v1012_v30 = vmax.f32 %v955_v26, 0.0 }
 0x130   :  { %v408_v33 = vpop.f32.mrb[34].mxu0  ;;  %v553_v34 = vpop.f32.mrb[34].mxu1 }
 0x131   :  { %v863_v31 = vld [vmem:[%s2487_s3 + $0x78] sm:$0xff]  ;;  %v892_v32 = vld [vmem:[%s2487_s3 + $0x160] sm:$0xff]  ;;  %1041 = vst.msk [vmem:[%s2487_s3 + $0x70] sm:$0xff] %vm611_vm2, %v983_v29  ;;  %1070 = vst.msk [vmem:[%s2487_s3 + $0x158] sm:$0xff] %vm611_vm2, %v1012_v30  ;;  %v1263_v37 = vpop.f32.mrb[35].mxu0  ;;  %v1350_v38 = vpop.f32.mrb[35].mxu1 }
 0x132   :  { %v927_v35 = vadd.f32 %v1814_v6, %v863_v31  ;;  %v956_v36 = vadd.f32 %v1814_v6, %v892_v32  ;;  %629 = vst.msk [vmem:[%s2487_s3 + $0x88] sm:$0xff] %vm611_vm2, %v408_v33  ;;  %658 = vst.msk [vmem:[%s2487_s3 + $0x170] sm:$0xff] %vm611_vm2, %v553_v34 }
 0x134   :  { %v984_v39 = vmax.f32 %v927_v35, 0.0  ;;  %v1013_v40 = vmax.f32 %v956_v36, 0.0  ;;  %v413_v43 = vpop.f32.mrb[36].mxu0  ;;  %v558_v44 = vpop.f32.mrb[36].mxu1 }
 0x135   :  { %v864_v41 = vld [vmem:[%s2487_s3 + $0x80] sm:$0xff]  ;;  %v893_v42 = vld [vmem:[%s2487_s3 + $0x168] sm:$0xff]  ;;  %630 = vst.msk [vmem:[%s2487_s3 + $0x90] sm:$0xff] %vm611_vm2, %v413_v43  ;;  %v1266_v47 = vpop.f32.mrb[37].mxu0  ;;  %659 = vst.msk [vmem:[%s2487_s3 + $0x178] sm:$0xff] %vm611_vm2, %v558_v44  ;;  %v1353_v48 = vpop.f32.mrb[37].mxu1 }
 0x136   :  { %1042 = vst.msk [vmem:[%s2487_s3 + $0x78] sm:$0xff] %vm611_vm2, %v984_v39  ;;  %1071 = vst.msk [vmem:[%s2487_s3 + $0x160] sm:$0xff] %vm611_vm2, %v1013_v40  ;;  %v928_v45 = vadd.f32 %v1814_v6, %v864_v41  ;;  %v957_v46 = vadd.f32 %v1814_v6, %v893_v42 }
 0x138   :  { %v985_v49 = vmax.f32 %v928_v45, 0.0  ;;  %v1014_v50 = vmax.f32 %v957_v46, 0.0  ;;  %v418_v53 = vpop.f32.mrb[38].mxu0  ;;  %v563_v54 = vpop.f32.mrb[38].mxu1 }
 0x139   :  { %v865_v51 = vld [vmem:[%s2487_s3 + $0x88] sm:$0xff]  ;;  %v894_v52 = vld [vmem:[%s2487_s3 + $0x170] sm:$0xff]  ;;  %631 = vst.msk [vmem:[%s2487_s3 + $0x98] sm:$0xff] %vm611_vm2, %v418_v53  ;;  %v1269_v57 = vpop.f32.mrb[39].mxu0  ;;  %660 = vst.msk [vmem:[%s2487_s3 + $0x180] sm:$0xff] %vm611_vm2, %v563_v54  ;;  %v1356_v58 = vpop.f32.mrb[39].mxu1 }
 0x13a   :  { %1043 = vst.msk [vmem:[%s2487_s3 + $0x80] sm:$0xff] %vm611_vm2, %v985_v49  ;;  %1072 = vst.msk [vmem:[%s2487_s3 + $0x168] sm:$0xff] %vm611_vm2, %v1014_v50  ;;  %v929_v55 = vadd.f32 %v1814_v6, %v865_v51  ;;  %v958_v56 = vadd.f32 %v1814_v6, %v894_v52 }
 0x13c   :  { %v986_v59 = vmax.f32 %v929_v55, 0.0  ;;  %v1015_v60 = vmax.f32 %v958_v56, 0.0  ;;  %v866_v61 = vld [vmem:[%s2487_s3 + $0x90] sm:$0xff]  ;;  %v895_v62 = vld [vmem:[%s2487_s3 + $0x178] sm:$0xff]  ;;  %v423_v63 = vpop.f32.mrb[40].mxu0  ;;  %v568_v0 = vpop.f32.mrb[40].mxu1 }
 0x13d   :  { %v930_v1 = vadd.f32 %v1814_v6, %v866_v61  ;;  %v959_v2 = vadd.f32 %v1814_v6, %v895_v62  ;;  %632 = vst.msk [vmem:[%s2487_s3 + $0xa0] sm:$0xff] %vm611_vm2, %v423_v63  ;;  %v1272_v3 = vpop.f32.mrb[41].mxu0  ;;  %661 = vst.msk [vmem:[%s2487_s3 + $0x188] sm:$0xff] %vm611_vm2, %v568_v0  ;;  %v1359_v4 = vpop.f32.mrb[41].mxu1 }
 0x13e   :  { %1044 = vst.msk [vmem:[%s2487_s3 + $0x88] sm:$0xff] %vm611_vm2, %v986_v59  ;;  %1073 = vst.msk [vmem:[%s2487_s3 + $0x170] sm:$0xff] %vm611_vm2, %v1015_v60 }
 0x13f   :  { %v987_v5 = vmax.f32 %v930_v1, 0.0  ;;  %v1016_v7 = vmax.f32 %v959_v2, 0.0 }
 0x140   :  { %v867_v8 = vld [vmem:[%s2487_s3 + $0x98] sm:$0xff]  ;;  %v896_v9 = vld [vmem:[%s2487_s3 + $0x180] sm:$0xff]  ;;  %v428_v10 = vpop.f32.mrb[42].mxu0  ;;  %v573_v11 = vpop.f32.mrb[42].mxu1 }
 0x141   :  { %1045 = vst.msk [vmem:[%s2487_s3 + $0x90] sm:$0xff] %vm611_vm2, %v987_v5  ;;  %1074 = vst.msk [vmem:[%s2487_s3 + $0x178] sm:$0xff] %vm611_vm2, %v1016_v7  ;;  %v931_v12 = vadd.f32 %v1814_v6, %v867_v8  ;;  %v960_v13 = vadd.f32 %v1814_v6, %v896_v9  ;;  %v1275_v14 = vpop.f32.mrb[43].mxu0  ;;  %v1362_v15 = vpop.f32.mrb[43].mxu1 }
 0x142   :  { %633 = vst.msk [vmem:[%s2487_s3 + $0xa8] sm:$0xff] %vm611_vm2, %v428_v10  ;;  %662 = vst.msk [vmem:[%s2487_s3 + $0x190] sm:$0xff] %vm611_vm2, %v573_v11 }
 0x143   :  { %v988_v16 = vmax.f32 %v931_v12, 0.0  ;;  %v1017_v17 = vmax.f32 %v960_v13, 0.0 }
 0x144   :  { %v868_v18 = vld [vmem:[%s2487_s3 + $0xa0] sm:$0xff]  ;;  %v897_v19 = vld [vmem:[%s2487_s3 + $0x188] sm:$0xff]  ;;  %v433_v20 = vpop.f32.mrb[44].mxu0  ;;  %v578_v21 = vpop.f32.mrb[44].mxu1 }
 0x145   :  { %1046 = vst.msk [vmem:[%s2487_s3 + $0x98] sm:$0xff] %vm611_vm2, %v988_v16  ;;  %1075 = vst.msk [vmem:[%s2487_s3 + $0x180] sm:$0xff] %vm611_vm2, %v1017_v17  ;;  %v932_v22 = vadd.f32 %v1814_v6, %v868_v18  ;;  %v961_v23 = vadd.f32 %v1814_v6, %v897_v19  ;;  %v1278_v24 = vpop.f32.mrb[45].mxu0  ;;  %v1365_v25 = vpop.f32.mrb[45].mxu1 }
 0x146   :  { %634 = vst.msk [vmem:[%s2487_s3 + $0xb0] sm:$0xff] %vm611_vm2, %v433_v20  ;;  %663 = vst.msk [vmem:[%s2487_s3 + $0x198] sm:$0xff] %vm611_vm2, %v578_v21 }
 0x147   :  { %v989_v26 = vmax.f32 %v932_v22, 0.0  ;;  %v1018_v27 = vmax.f32 %v961_v23, 0.0 }
 0x148   :  { %v438_v30 = vpop.f32.mrb[46].mxu0  ;;  %v583_v31 = vpop.f32.mrb[46].mxu1 }
 0x149   :  { %v869_v28 = vld [vmem:[%s2487_s3 + $0xa8] sm:$0xff]  ;;  %v898_v29 = vld [vmem:[%s2487_s3 + $0x190] sm:$0xff]  ;;  %1047 = vst.msk [vmem:[%s2487_s3 + $0xa0] sm:$0xff] %vm611_vm2, %v989_v26  ;;  %1076 = vst.msk [vmem:[%s2487_s3 + $0x188] sm:$0xff] %vm611_vm2, %v1018_v27  ;;  %v1281_v34 = vpop.f32.mrb[47].mxu0  ;;  %v1368_v35 = vpop.f32.mrb[47].mxu1 }
 0x14a   :  { %v933_v32 = vadd.f32 %v1814_v6, %v869_v28  ;;  %v962_v33 = vadd.f32 %v1814_v6, %v898_v29  ;;  %635 = vst.msk [vmem:[%s2487_s3 + $0xb8] sm:$0xff] %vm611_vm2, %v438_v30  ;;  %664 = vst.msk [vmem:[%s2487_s3 + $0x1a0] sm:$0xff] %vm611_vm2, %v583_v31 }
 0x14c   :  { %v990_v36 = vmax.f32 %v933_v32, 0.0  ;;  %v1019_v37 = vmax.f32 %v962_v33, 0.0  ;;  %v443_v40 = vpop.f32.mrb[48].mxu0  ;;  %v588_v41 = vpop.f32.mrb[48].mxu1 }
 0x14d   :  { %v870_v38 = vld [vmem:[%s2487_s3 + $0xb0] sm:$0xff]  ;;  %v899_v39 = vld [vmem:[%s2487_s3 + $0x198] sm:$0xff]  ;;  %636 = vst.msk [vmem:[%s2487_s3 + $0xc0] sm:$0xff] %vm611_vm2, %v443_v40  ;;  %v1284_v44 = vpop.f32.mrb[49].mxu0  ;;  %665 = vst.msk [vmem:[%s2487_s3 + $0x1a8] sm:$0xff] %vm611_vm2, %v588_v41  ;;  %v1371_v45 = vpop.f32.mrb[49].mxu1 }
 0x14e   :  { %1048 = vst.msk [vmem:[%s2487_s3 + $0xa8] sm:$0xff] %vm611_vm2, %v990_v36  ;;  %1077 = vst.msk [vmem:[%s2487_s3 + $0x190] sm:$0xff] %vm611_vm2, %v1019_v37  ;;  %v934_v42 = vadd.f32 %v1814_v6, %v870_v38  ;;  %v963_v43 = vadd.f32 %v1814_v6, %v899_v39 }
 0x150   :  { %v991_v46 = vmax.f32 %v934_v42, 0.0  ;;  %v1020_v47 = vmax.f32 %v963_v43, 0.0  ;;  %v448_v50 = vpop.f32.mrb[50].mxu0  ;;  %v593_v51 = vpop.f32.mrb[50].mxu1 }
 0x151   :  { %v871_v48 = vld [vmem:[%s2487_s3 + $0xb8] sm:$0xff]  ;;  %v900_v49 = vld [vmem:[%s2487_s3 + $0x1a0] sm:$0xff]  ;;  %637 = vst.msk [vmem:[%s2487_s3 + $0xc8] sm:$0xff] %vm611_vm2, %v448_v50  ;;  %v1287_v54 = vpop.f32.mrb[51].mxu0  ;;  %666 = vst.msk [vmem:[%s2487_s3 + $0x1b0] sm:$0xff] %vm611_vm2, %v593_v51  ;;  %v1374_v55 = vpop.f32.mrb[51].mxu1 }
 0x152   :  { %1049 = vst.msk [vmem:[%s2487_s3 + $0xb0] sm:$0xff] %vm611_vm2, %v991_v46  ;;  %1078 = vst.msk [vmem:[%s2487_s3 + $0x198] sm:$0xff] %vm611_vm2, %v1020_v47  ;;  %v935_v52 = vadd.f32 %v1814_v6, %v871_v48  ;;  %v964_v53 = vadd.f32 %v1814_v6, %v900_v49 }
 0x154   :  { %v992_v56 = vmax.f32 %v935_v52, 0.0  ;;  %v1021_v57 = vmax.f32 %v964_v53, 0.0  ;;  %v872_v58 = vld [vmem:[%s2487_s3 + $0xc0] sm:$0xff]  ;;  %v901_v59 = vld [vmem:[%s2487_s3 + $0x1a8] sm:$0xff]  ;;  %v453_v60 = vpop.f32.mrb[52].mxu0  ;;  %v598_v61 = vpop.f32.mrb[52].mxu1 }
 0x155   :  { %v936_v62 = vadd.f32 %v1814_v6, %v872_v58  ;;  %v965_v63 = vadd.f32 %v1814_v6, %v901_v59  ;;  %638 = vst.msk [vmem:[%s2487_s3 + $0xd0] sm:$0xff] %vm611_vm2, %v453_v60  ;;  %v1290_v0 = vpop.f32.mrb[53].mxu0  ;;  %667 = vst.msk [vmem:[%s2487_s3 + $0x1b8] sm:$0xff] %vm611_vm2, %v598_v61  ;;  %v1377_v1 = vpop.f32.mrb[53].mxu1 }
 0x156   :  { %1050 = vst.msk [vmem:[%s2487_s3 + $0xb8] sm:$0xff] %vm611_vm2, %v992_v56  ;;  %1079 = vst.msk [vmem:[%s2487_s3 + $0x1a0] sm:$0xff] %vm611_vm2, %v1021_v57 }
 0x157   :  { %v993_v2 = vmax.f32 %v936_v62, 0.0  ;;  %v1022_v3 = vmax.f32 %v965_v63, 0.0 }
 0x158   :  { %v873_v4 = vld [vmem:[%s2487_s3 + $0xc8] sm:$0xff]  ;;  %v902_v5 = vld [vmem:[%s2487_s3 + $0x1b0] sm:$0xff]  ;;  %v458_v7 = vpop.f32.mrb[54].mxu0  ;;  %v603_v8 = vpop.f32.mrb[54].mxu1 }
 0x159   :  { %1051 = vst.msk [vmem:[%s2487_s3 + $0xc0] sm:$0xff] %vm611_vm2, %v993_v2  ;;  %1080 = vst.msk [vmem:[%s2487_s3 + $0x1a8] sm:$0xff] %vm611_vm2, %v1022_v3  ;;  %v937_v9 = vadd.f32 %v1814_v6, %v873_v4  ;;  %v966_v10 = vadd.f32 %v1814_v6, %v902_v5  ;;  %v1293_v11 = vpop.f32.mrb[55].mxu0  ;;  %v1380_v12 = vpop.f32.mrb[55].mxu1 }
 0x15a   :  { %639 = vst.msk [vmem:[%s2487_s3 + $0xd8] sm:$0xff] %vm611_vm2, %v458_v7  ;;  %668 = vst.msk [vmem:[%s2487_s3 + $0x1c0] sm:$0xff] %vm611_vm2, %v603_v8 }
 0x15b   :  { %v994_v13 = vmax.f32 %v937_v9, 0.0  ;;  %v1023_v14 = vmax.f32 %v966_v10, 0.0 }
 0x15c   :  { %v874_v15 = vld [vmem:[%s2487_s3 + $0xd0] sm:$0xff]  ;;  %v903_v16 = vld [vmem:[%s2487_s3 + $0x1b8] sm:$0xff]  ;;  %v463_v17 = vpop.f32.mrb[56].mxu0 }
 0x15d   :  { %1052 = vst.msk [vmem:[%s2487_s3 + $0xc8] sm:$0xff] %vm611_vm2, %v994_v13  ;;  %1081 = vst.msk [vmem:[%s2487_s3 + $0x1b0] sm:$0xff] %vm611_vm2, %v1023_v14  ;;  %v938_v18 = vadd.f32 %v1814_v6, %v874_v15  ;;  %v967_v19 = vadd.f32 %v1814_v6, %v903_v16  ;;  %v1296_v20 = vpop.f32.mrb[57].mxu0 }
 0x15e   :  { %640 = vst.msk [vmem:[%s2487_s3 + $0xe0] sm:$0xff] %vm611_vm2, %v463_v17 }
 0x15f   :  { %v995_v21 = vmax.f32 %v938_v18, 0.0  ;;  %v1024_v22 = vmax.f32 %v967_v19, 0.0 }
 0x161   :  { %v875_v23 = vld [vmem:[%s2487_s3 + $0xd8] sm:$0xff]  ;;  %v904_v24 = vld [vmem:[%s2487_s3 + $0x1c0] sm:$0xff]  ;;  %1053 = vst.msk [vmem:[%s2487_s3 + $0xd0] sm:$0xff] %vm611_vm2, %v995_v21  ;;  %1082 = vst.msk [vmem:[%s2487_s3 + $0x1b8] sm:$0xff] %vm611_vm2, %v1024_v22 }
 0x162   :  { %v939_v25 = vadd.f32 %v1814_v6, %v875_v23  ;;  %v968_v26 = vadd.f32 %v1814_v6, %v904_v24 }
 0x164   :  { %v996_v27 = vmax.f32 %v939_v25, 0.0  ;;  %v1025_v28 = vmax.f32 %v968_v26, 0.0 }
 0x165   :  { %v876_v29 = vld [vmem:[%s2487_s3 + $0xe0] sm:$0xff] }
 0x166   :  { %1054 = vst.msk [vmem:[%s2487_s3 + $0xd8] sm:$0xff] %vm611_vm2, %v996_v27  ;;  %1083 = vst.msk [vmem:[%s2487_s3 + $0x1c0] sm:$0xff] %vm611_vm2, %v1025_v28  ;;  %v940_v30 = vadd.f32 %v1814_v6, %v876_v29 }
 0x168   :  { %v997_v31 = vmax.f32 %v940_v30, 0.0 }
 0x16a   :  { %1055 = vst.msk [vmem:[%s2487_s3 + $0xe0] sm:$0xff] %vm611_vm2, %v997_v31 }
 0x16b   :  { %1088 = vsyncpa [#allocation3], 1 }

// kernel: cnn_forward.7
= control target key start
LH: loop header
LB: loop body
LE: loop exit
PB: predicated region body
PF: predicated region fallthrough
CT: control target
= control target key end

     0   :  { %8 = vsyncpa [#allocation3], 0  ;;  %s1274_s12 = smov [#allocation2]   ;;  %s2218_s0 = inlined_call_operand.vmem [shape: f32[392,64], index: 0, kind: input, shape index: {}]   ;;  %s2219_s1 = inlined_call_operand.vmem [shape: f32[64,64], index: 1, kind: input, shape index: {}]   ;;  %s2220_s2 = inlined_call_operand.hbm [shape: f32[1,64], index: 2, kind: input, shape index: {}]   ;;  %s2221_s3 = inlined_call_operand.vmem [shape: f32[392,64], index: 3, kind: output, shape index: {}]  }
   0x1   :  { %s19_s13 = sshll.u32 %s1274_s12, 4  ;;  %s1250_s16 = scalar_lea.hbm %s2220_s2, 16  ;;  %s20_s13 = int_to_ptr.vmem [resolvable:$true] %s19_s13 }
   0x2   :  { %p1251_p0 = scmp.ne.s32.totalorder %s2220_s2, %s1250_s16  ;;  %p1254_p1 = scmp.lt.u32.totalorder %s1250_s16, %s2220_s2 }
   0x4   :  { %p1256_p2 = pnand %p1254_p1, %p1251_p0 }
   0x6   :  { %1259 = shalt.err (!%p1256_p2)
}
   0x7   :  { %s1260_s21 = scalar_lea.vmem %s20_s13, 16  ;;  %s1264_s22 = scalar_lea.vmem %s20_s13, 32 }
   0x8   :  { %p1261_p3 = scmp.ne.s32.totalorder %s20_s13, %s1260_s21  ;;  %p1265_p4 = scmp.lt.s32.totalorder %s20_s13, %s20_s13 }
   0x9   :  { %p1266_p5 = scmp.lt.s32.totalorder %s1264_s22, %s1260_s21 }
   0xb   :  { %p1267_p6 = por %p1266_p5, %p1265_p4 }
   0xd   :  { %p1268_p7 = pnand %p1267_p6, %p1261_p3 }
   0xf   :  { %1271 = shalt.err (!%p1268_p7)
}
  0x10   :  { %22 = dma.hbm_to_vmem [thread:$0]  %s2220_s2, 16, %s20_s13, [#allocation3]  }
  0x11   :  { %1272 = dma.done.wait [#allocation3], 16  }
  0x12   :  { %1273 = vsyncadd [#allocation3], 4294967280  ;;  %v1275_v0 = vmov 0.0|0.0   ;;  %vm1276_vm0 = vmmov 0   ;;  %v1277_v1 = vmov 0.0   ;;  %v75_v2 = vld [vmem:[%s2219_s1] sm:$0xff] }
  0x13   :  { %1226 = vmatprep.subr.bf16.mxu0 %v1275_v0  ;;  %1238 = vmatprep.subr.bf16.mxu1 %v1275_v0  ;;  %v76_v3 = vld [vmem:[%s2219_s1 + $0x8] sm:$0xff]  ;;  %v77_v4 = vld [vmem:[%s2219_s1 + $0x10] sm:$0xff]  ;;  %v78_v6 = vld [vmem:[%s2219_s1 + $0x18] sm:$0xff]  ;;  %vm83_vm1 = vcmask 523264  }
  0x14   :  { %1079 = vmatprep.mubr.msk.f32.mxu0 %vm1276_vm0, %v1277_v1  ;;  %1154 = vmatprep.mubr.msk.f32.mxu1 %vm1276_vm0, %v1277_v1  ;;  %v1227_v5 = vpack.c.bf16 %v76_v3, %v75_v2  ;;  %v1230_v7 = vpack.c.bf16 %v78_v6, %v77_v4  ;;  %v79_v8 = vld [vmem:[%s2219_s1 + $0x20] sm:$0xff]  ;;  %v80_v9 = vld [vmem:[%s2219_s1 + $0x28] sm:$0xff]  ;;  %v81_v11 = vld [vmem:[%s2219_s1 + $0x30] sm:$0xff] }
  0x15   :  { %v1233_v10 = vpack.c.bf16 %v80_v9, %v79_v8  ;;  %v82_v12 = vld [vmem:[%s2219_s1 + $0x38] sm:$0xff]  ;;  %v26_v14 = vld [vmem:[%s2218_s0] sm:$0xff]  ;;  %v51_v15 = vld [vmem:[%s2218_s0 + $0xc8] sm:$0xff] }
  0x16   :  { %1228 = vmatpush3.bf16.msra.mxu0 %v1227_v5  ;;  %1242 = vmatpush3.bf16.msra.mxu1 %v1227_v5  ;;  %v1236_v13 = vpack.c.bf16 %v82_v12, %v81_v11  ;;  %v27_v16 = vld [vmem:[%s2218_s0 + $0x8] sm:$0xff]  ;;  %v52_v17 = vld [vmem:[%s2218_s0 + $0xd0] sm:$0xff]  ;;  %v53_v19 = vld [vmem:[%s2218_s0 + $0xd8] sm:$0xff] }
  0x17   :  { %1229 = vmatprep.subr.bf16.mxu0 %v1275_v0  ;;  %1239 = vmatprep.subr.bf16.mxu1 %v1275_v0  ;;  %v28_v18 = vld [vmem:[%s2218_s0 + $0x10] sm:$0xff]  ;;  %v29_v20 = vld [vmem:[%s2218_s0 + $0x18] sm:$0xff]  ;;  %v54_v21 = vld [vmem:[%s2218_s0 + $0xe0] sm:$0xff] }
  0x18   :  { %v30_v22 = vld [vmem:[%s2218_s0 + $0x20] sm:$0xff]  ;;  %v55_v23 = vld [vmem:[%s2218_s0 + $0xe8] sm:$0xff]  ;;  %v56_v25 = vld [vmem:[%s2218_s0 + $0xf0] sm:$0xff] }
  0x19   :  { %v31_v24 = vld [vmem:[%s2218_s0 + $0x28] sm:$0xff]  ;;  %v32_v26 = vld [vmem:[%s2218_s0 + $0x30] sm:$0xff]  ;;  %v57_v27 = vld [vmem:[%s2218_s0 + $0xf8] sm:$0xff] }
  0x1a   :  { %1231 = vmatpush3.bf16.msra.mxu0 %v1230_v7  ;;  %1243 = vmatpush3.bf16.msra.mxu1 %v1230_v7  ;;  %v33_v28 = vld [vmem:[%s2218_s0 + $0x38] sm:$0xff]  ;;  %v58_v29 = vld [vmem:[%s2218_s0 + $0x100] sm:$0xff]  ;;  %v59_v31 = vld [vmem:[%s2218_s0 + $0x108] sm:$0xff] }
  0x1b   :  { %1232 = vmatprep.subr.bf16.mxu0 %v1275_v0  ;;  %1240 = vmatprep.subr.bf16.mxu1 %v1275_v0  ;;  %v34_v30 = vld [vmem:[%s2218_s0 + $0x40] sm:$0xff]  ;;  %v35_v32 = vld [vmem:[%s2218_s0 + $0x48] sm:$0xff]  ;;  %v60_v33 = vld [vmem:[%s2218_s0 + $0x110] sm:$0xff] }
  0x1c   :  { %v36_v34 = vld [vmem:[%s2218_s0 + $0x50] sm:$0xff]  ;;  %v61_v35 = vld [vmem:[%s2218_s0 + $0x118] sm:$0xff]  ;;  %v62_v37 = vld [vmem:[%s2218_s0 + $0x120] sm:$0xff] }
  0x1d   :  { %v37_v36 = vld [vmem:[%s2218_s0 + $0x58] sm:$0xff]  ;;  %v38_v38 = vld [vmem:[%s2218_s0 + $0x60] sm:$0xff]  ;;  %v63_v39 = vld [vmem:[%s2218_s0 + $0x128] sm:$0xff] }
  0x1e   :  { %1234 = vmatpush3.bf16.msra.mxu0 %v1233_v10  ;;  %1244 = vmatpush3.bf16.msra.mxu1 %v1233_v10  ;;  %v39_v40 = vld [vmem:[%s2218_s0 + $0x68] sm:$0xff]  ;;  %v64_v41 = vld [vmem:[%s2218_s0 + $0x130] sm:$0xff]  ;;  %v65_v43 = vld [vmem:[%s2218_s0 + $0x138] sm:$0xff] }
  0x1f   :  { %1235 = vmatprep.subr.bf16.mxu0 %v1275_v0  ;;  %1241 = vmatprep.subr.bf16.mxu1 %v1275_v0  ;;  %v40_v42 = vld [vmem:[%s2218_s0 + $0x70] sm:$0xff]  ;;  %v41_v44 = vld [vmem:[%s2218_s0 + $0x78] sm:$0xff]  ;;  %v66_v45 = vld [vmem:[%s2218_s0 + $0x140] sm:$0xff] }
  0x20   :  { %v42_v46 = vld [vmem:[%s2218_s0 + $0x80] sm:$0xff]  ;;  %v67_v47 = vld [vmem:[%s2218_s0 + $0x148] sm:$0xff]  ;;  %v68_v49 = vld [vmem:[%s2218_s0 + $0x150] sm:$0xff] }
  0x21   :  { %v43_v48 = vld [vmem:[%s2218_s0 + $0x88] sm:$0xff]  ;;  %v44_v50 = vld [vmem:[%s2218_s0 + $0x90] sm:$0xff]  ;;  %v69_v51 = vld [vmem:[%s2218_s0 + $0x158] sm:$0xff] }
  0x22   :  { %1237 = vmatpush3.bf16.msra.mxu0 %v1236_v13  ;;  %1245 = vmatpush3.bf16.msra.mxu1 %v1236_v13  ;;  %v45_v52 = vld [vmem:[%s2218_s0 + $0x98] sm:$0xff]  ;;  %v70_v53 = vld [vmem:[%s2218_s0 + $0x160] sm:$0xff]  ;;  %v71_v55 = vld [vmem:[%s2218_s0 + $0x168] sm:$0xff] }
  0x23   :  { %v46_v54 = vld [vmem:[%s2218_s0 + $0xa0] sm:$0xff]  ;;  %v47_v56 = vld [vmem:[%s2218_s0 + $0xa8] sm:$0xff]  ;;  %v72_v57 = vld [vmem:[%s2218_s0 + $0x170] sm:$0xff] }
  0x24   :  { %v48_v58 = vld [vmem:[%s2218_s0 + $0xb0] sm:$0xff]  ;;  %v73_v59 = vld [vmem:[%s2218_s0 + $0x178] sm:$0xff]  ;;  %v74_v61 = vld [vmem:[%s2218_s0 + $0x180] sm:$0xff] }
  0x25   :  { %1080 = vmatmul.mubr.msk.f32.vlgmr.msra.gmra.mrb[0].mxu0 %vm83_vm1, %v26_v14  ;;  %1155 = vmatmul.mubr.msk.f32.vlgmr.msra.gmra.mrb[0].mxu1 %vm83_vm1, %v51_v15  ;;  %v49_v60 = vld [vmem:[%s2218_s0 + $0xb8] sm:$0xff]  ;;  %v50_v62 = vld [vmem:[%s2218_s0 + $0xc0] sm:$0xff] }
  0x26   :  { %1082 = vmatprep.mubr.msk.f32.mxu0 %vm1276_vm0, %v1277_v1  ;;  %1157 = vmatprep.mubr.msk.f32.mxu1 %vm1276_vm0, %v1277_v1  ;;  %v1644_v7 = vld [vmem:[#allocation2] ss:$0 sm:$0xff] }
  0x29   :  { %1083 = vmatmul.mubr.msk.f32.gmra.mrb[2].mxu0 %vm83_vm1, %v27_v16  ;;  %1158 = vmatmul.mubr.msk.f32.gmra.mrb[2].mxu1 %vm83_vm1, %v52_v17 }
  0x2a   :  { %1085 = vmatprep.mubr.msk.f32.mxu0 %vm1276_vm0, %v1277_v1  ;;  %1160 = vmatprep.mubr.msk.f32.mxu1 %vm1276_vm0, %v1277_v1 }
  0x2d   :  { %1086 = vmatmul.mubr.msk.f32.gmra.mrb[4].mxu0 %vm83_vm1, %v28_v18  ;;  %1161 = vmatmul.mubr.msk.f32.gmra.mrb[4].mxu1 %vm83_vm1, %v53_v19 }
  0x2e   :  { %1088 = vmatprep.mubr.msk.f32.mxu0 %vm1276_vm0, %v1277_v1  ;;  %1163 = vmatprep.mubr.msk.f32.mxu1 %vm1276_vm0, %v1277_v1 }
  0x31   :  { %1089 = vmatmul.mubr.msk.f32.gmra.mrb[6].mxu0 %vm83_vm1, %v29_v20  ;;  %1164 = vmatmul.mubr.msk.f32.gmra.mrb[6].mxu1 %vm83_vm1, %v54_v21 }
  0x32   :  { %1091 = vmatprep.mubr.msk.f32.mxu0 %vm1276_vm0, %v1277_v1  ;;  %1166 = vmatprep.mubr.msk.f32.mxu1 %vm1276_vm0, %v1277_v1 }
  0x35   :  { %1092 = vmatmul.mubr.msk.f32.gmra.mrb[8].mxu0 %vm83_vm1, %v30_v22  ;;  %1167 = vmatmul.mubr.msk.f32.gmra.mrb[8].mxu1 %vm83_vm1, %v55_v23 }
  0x36   :  { %1094 = vmatprep.mubr.msk.f32.mxu0 %vm1276_vm0, %v1277_v1  ;;  %1169 = vmatprep.mubr.msk.f32.mxu1 %vm1276_vm0, %v1277_v1 }
  0x39   :  { %1095 = vmatmul.mubr.msk.f32.gmra.mrb[10].mxu0 %vm83_vm1, %v31_v24  ;;  %1170 = vmatmul.mubr.msk.f32.gmra.mrb[10].mxu1 %vm83_vm1, %v56_v25 }
  0x3a   :  { %1097 = vmatprep.mubr.msk.f32.mxu0 %vm1276_vm0, %v1277_v1  ;;  %1172 = vmatprep.mubr.msk.f32.mxu1 %vm1276_vm0, %v1277_v1 }
  0x3d   :  { %1098 = vmatmul.mubr.msk.f32.gmra.mrb[12].mxu0 %vm83_vm1, %v32_v26  ;;  %1173 = vmatmul.mubr.msk.f32.gmra.mrb[12].mxu1 %vm83_vm1, %v57_v27 }
  0x3e   :  { %1100 = vmatprep.mubr.msk.f32.mxu0 %vm1276_vm0, %v1277_v1  ;;  %1175 = vmatprep.mubr.msk.f32.mxu1 %vm1276_vm0, %v1277_v1 }
  0x41   :  { %1101 = vmatmul.mubr.msk.f32.gmra.mrb[14].mxu0 %vm83_vm1, %v33_v28  ;;  %1176 = vmatmul.mubr.msk.f32.gmra.mrb[14].mxu1 %vm83_vm1, %v58_v29 }
  0x42   :  { %1103 = vmatprep.mubr.msk.f32.mxu0 %vm1276_vm0, %v1277_v1  ;;  %1178 = vmatprep.mubr.msk.f32.mxu1 %vm1276_vm0, %v1277_v1 }
  0x45   :  { %1104 = vmatmul.mubr.msk.f32.gmra.mrb[16].mxu0 %vm83_vm1, %v34_v30  ;;  %1179 = vmatmul.mubr.msk.f32.gmra.mrb[16].mxu1 %vm83_vm1, %v59_v31 }
  0x46   :  { %1106 = vmatprep.mubr.msk.f32.mxu0 %vm1276_vm0, %v1277_v1  ;;  %1181 = vmatprep.mubr.msk.f32.mxu1 %vm1276_vm0, %v1277_v1 }
  0x49   :  { %1107 = vmatmul.mubr.msk.f32.gmra.mrb[18].mxu0 %vm83_vm1, %v35_v32  ;;  %1182 = vmatmul.mubr.msk.f32.gmra.mrb[18].mxu1 %vm83_vm1, %v60_v33 }
  0x4a   :  { %1109 = vmatprep.mubr.msk.f32.mxu0 %vm1276_vm0, %v1277_v1  ;;  %1184 = vmatprep.mubr.msk.f32.mxu1 %vm1276_vm0, %v1277_v1 }
  0x4d   :  { %1110 = vmatmul.mubr.msk.f32.gmra.mrb[20].mxu0 %vm83_vm1, %v36_v34  ;;  %1185 = vmatmul.mubr.msk.f32.gmra.mrb[20].mxu1 %vm83_vm1, %v61_v35 }
  0x4e   :  { %1112 = vmatprep.mubr.msk.f32.mxu0 %vm1276_vm0, %v1277_v1  ;;  %1187 = vmatprep.mubr.msk.f32.mxu1 %vm1276_vm0, %v1277_v1 }
  0x51   :  { %1113 = vmatmul.mubr.msk.f32.gmra.mrb[22].mxu0 %vm83_vm1, %v37_v36  ;;  %1188 = vmatmul.mubr.msk.f32.gmra.mrb[22].mxu1 %vm83_vm1, %v62_v37 }
  0x52   :  { %1115 = vmatprep.mubr.msk.f32.mxu0 %vm1276_vm0, %v1277_v1  ;;  %1190 = vmatprep.mubr.msk.f32.mxu1 %vm1276_vm0, %v1277_v1 }
  0x55   :  { %1116 = vmatmul.mubr.msk.f32.gmra.mrb[24].mxu0 %vm83_vm1, %v38_v38  ;;  %1191 = vmatmul.mubr.msk.f32.gmra.mrb[24].mxu1 %vm83_vm1, %v63_v39 }
  0x56   :  { %1118 = vmatprep.mubr.msk.f32.mxu0 %vm1276_vm0, %v1277_v1  ;;  %1193 = vmatprep.mubr.msk.f32.mxu1 %vm1276_vm0, %v1277_v1 }
  0x59   :  { %1119 = vmatmul.mubr.msk.f32.gmra.mrb[26].mxu0 %vm83_vm1, %v39_v40  ;;  %1194 = vmatmul.mubr.msk.f32.gmra.mrb[26].mxu1 %vm83_vm1, %v64_v41 }
  0x5a   :  { %1121 = vmatprep.mubr.msk.f32.mxu0 %vm1276_vm0, %v1277_v1  ;;  %1196 = vmatprep.mubr.msk.f32.mxu1 %vm1276_vm0, %v1277_v1 }
  0x5d   :  { %1122 = vmatmul.mubr.msk.f32.gmra.mrb[28].mxu0 %vm83_vm1, %v40_v42  ;;  %1197 = vmatmul.mubr.msk.f32.gmra.mrb[28].mxu1 %vm83_vm1, %v65_v43 }
  0x5e   :  { %1124 = vmatprep.mubr.msk.f32.mxu0 %vm1276_vm0, %v1277_v1  ;;  %1199 = vmatprep.mubr.msk.f32.mxu1 %vm1276_vm0, %v1277_v1 }
  0x61   :  { %1125 = vmatmul.mubr.msk.f32.gmra.mrb[30].mxu0 %vm83_vm1, %v41_v44  ;;  %1200 = vmatmul.mubr.msk.f32.gmra.mrb[30].mxu1 %vm83_vm1, %v66_v45 }
  0x62   :  { %1127 = vmatprep.mubr.msk.f32.mxu0 %vm1276_vm0, %v1277_v1  ;;  %1202 = vmatprep.mubr.msk.f32.mxu1 %vm1276_vm0, %v1277_v1 }
  0x65   :  { %1128 = vmatmul.mubr.msk.f32.gmra.mrb[32].mxu0 %vm83_vm1, %v42_v46  ;;  %1203 = vmatmul.mubr.msk.f32.gmra.mrb[32].mxu1 %vm83_vm1, %v67_v47 }
  0x66   :  { %1130 = vmatprep.mubr.msk.f32.mxu0 %vm1276_vm0, %v1277_v1  ;;  %1205 = vmatprep.mubr.msk.f32.mxu1 %vm1276_vm0, %v1277_v1 }
  0x69   :  { %1131 = vmatmul.mubr.msk.f32.gmra.mrb[34].mxu0 %vm83_vm1, %v43_v48  ;;  %1206 = vmatmul.mubr.msk.f32.gmra.mrb[34].mxu1 %vm83_vm1, %v68_v49 }
  0x6a   :  { %1133 = vmatprep.mubr.msk.f32.mxu0 %vm1276_vm0, %v1277_v1  ;;  %1208 = vmatprep.mubr.msk.f32.mxu1 %vm1276_vm0, %v1277_v1 }
  0x6d   :  { %1134 = vmatmul.mubr.msk.f32.gmra.mrb[36].mxu0 %vm83_vm1, %v44_v50  ;;  %1209 = vmatmul.mubr.msk.f32.gmra.mrb[36].mxu1 %vm83_vm1, %v69_v51 }
  0x6e   :  { %1136 = vmatprep.mubr.msk.f32.mxu0 %vm1276_vm0, %v1277_v1  ;;  %1211 = vmatprep.mubr.msk.f32.mxu1 %vm1276_vm0, %v1277_v1 }
  0x71   :  { %1137 = vmatmul.mubr.msk.f32.gmra.mrb[38].mxu0 %vm83_vm1, %v45_v52  ;;  %1212 = vmatmul.mubr.msk.f32.gmra.mrb[38].mxu1 %vm83_vm1, %v70_v53 }
  0x72   :  { %1139 = vmatprep.mubr.msk.f32.mxu0 %vm1276_vm0, %v1277_v1  ;;  %1214 = vmatprep.mubr.msk.f32.mxu1 %vm1276_vm0, %v1277_v1 }
  0x75   :  { %1140 = vmatmul.mubr.msk.f32.gmra.mrb[40].mxu0 %vm83_vm1, %v46_v54  ;;  %1215 = vmatmul.mubr.msk.f32.gmra.mrb[40].mxu1 %vm83_vm1, %v71_v55 }
  0x76   :  { %1142 = vmatprep.mubr.msk.f32.mxu0 %vm1276_vm0, %v1277_v1  ;;  %1217 = vmatprep.mubr.msk.f32.mxu1 %vm1276_vm0, %v1277_v1 }
  0x79   :  { %1143 = vmatmul.mubr.msk.f32.gmra.mrb[42].mxu0 %vm83_vm1, %v47_v56  ;;  %1218 = vmatmul.mubr.msk.f32.gmra.mrb[42].mxu1 %vm83_vm1, %v72_v57 }
  0x7a   :  { %1145 = vmatprep.mubr.msk.f32.mxu0 %vm1276_vm0, %v1277_v1  ;;  %1220 = vmatprep.mubr.msk.f32.mxu1 %vm1276_vm0, %v1277_v1 }
  0x7d   :  { %1146 = vmatmul.mubr.msk.f32.gmra.mrb[44].mxu0 %vm83_vm1, %v48_v58  ;;  %1221 = vmatmul.mubr.msk.f32.gmra.mrb[44].mxu1 %vm83_vm1, %v73_v59 }
  0x7e   :  { %1148 = vmatprep.mubr.msk.f32.mxu0 %vm1276_vm0, %v1277_v1  ;;  %1223 = vmatprep.mubr.msk.f32.mxu1 %vm1276_vm0, %v1277_v1 }
  0x81   :  { %1149 = vmatmul.mubr.msk.f32.gmra.mrb[46].mxu0 %vm83_vm1, %v49_v60  ;;  %1224 = vmatmul.mubr.msk.f32.gmra.mrb[46].mxu1 %vm83_vm1, %v74_v61 }
  0x82   :  { %1151 = vmatprep.mubr.msk.f32.mxu0 %vm1276_vm0, %v1277_v1 }
  0x85   :  { %1152 = vmatmul.mubr.msk.f32.gmra.mrb[48].mxu0 %vm83_vm1, %v50_v62 }
  0xf8   :  { %v297_v63 = vpop.f32.mrb[0].mxu0  ;;  %v422_v0 = vpop.f32.mrb[0].mxu1 }
  0xf9   :  { %545 = vst.msk [vmem:[%s2221_s3] sm:$0xff] %vm83_vm1, %v297_v63  ;;  %v1081_v2 = vpop.f32.mrb[1].mxu0  ;;  %570 = vst.msk [vmem:[%s2221_s3 + $0xc8] sm:$0xff] %vm83_vm1, %v422_v0  ;;  %v1156_v1 = vpop.f32.mrb[1].mxu1 }
  0xfc   :  { %v302_v3 = vpop.f32.mrb[2].mxu0  ;;  %v427_v4 = vpop.f32.mrb[2].mxu1 }
  0xfd   :  { %546 = vst.msk [vmem:[%s2221_s3 + $0x8] sm:$0xff] %vm83_vm1, %v302_v3  ;;  %v1084_v5 = vpop.f32.mrb[3].mxu0  ;;  %571 = vst.msk [vmem:[%s2221_s3 + $0xd0] sm:$0xff] %vm83_vm1, %v427_v4  ;;  %v1159_v6 = vpop.f32.mrb[3].mxu1 }
 0x100   :  { %v748_v8 = vld [vmem:[%s2221_s3] sm:$0xff]  ;;  %v773_v9 = vld [vmem:[%s2221_s3 + $0xc8] sm:$0xff]  ;;  %v307_v10 = vpop.f32.mrb[4].mxu0  ;;  %v432_v11 = vpop.f32.mrb[4].mxu1 }
 0x101   :  { %v804_v12 = vadd.f32 %v1644_v7, %v748_v8  ;;  %v829_v13 = vadd.f32 %v1644_v7, %v773_v9  ;;  %547 = vst.msk [vmem:[%s2221_s3 + $0x10] sm:$0xff] %vm83_vm1, %v307_v10  ;;  %v1087_v14 = vpop.f32.mrb[5].mxu0  ;;  %572 = vst.msk [vmem:[%s2221_s3 + $0xd8] sm:$0xff] %vm83_vm1, %v432_v11  ;;  %v1162_v15 = vpop.f32.mrb[5].mxu1 }
 0x103   :  { %v853_v16 = vmax.f32 %v804_v12, 0.0  ;;  %v878_v17 = vmax.f32 %v829_v13, 0.0 }
 0x104   :  { %v749_v18 = vld [vmem:[%s2221_s3 + $0x8] sm:$0xff]  ;;  %v774_v19 = vld [vmem:[%s2221_s3 + $0xd0] sm:$0xff]  ;;  %v312_v20 = vpop.f32.mrb[6].mxu0  ;;  %v437_v21 = vpop.f32.mrb[6].mxu1 }
 0x105   :  { %902 = vst.msk [vmem:[%s2221_s3] sm:$0xff] %vm83_vm1, %v853_v16  ;;  %927 = vst.msk [vmem:[%s2221_s3 + $0xc8] sm:$0xff] %vm83_vm1, %v878_v17  ;;  %v805_v22 = vadd.f32 %v1644_v7, %v749_v18  ;;  %v830_v23 = vadd.f32 %v1644_v7, %v774_v19  ;;  %v1090_v24 = vpop.f32.mrb[7].mxu0  ;;  %v1165_v25 = vpop.f32.mrb[7].mxu1 }
 0x106   :  { %548 = vst.msk [vmem:[%s2221_s3 + $0x18] sm:$0xff] %vm83_vm1, %v312_v20  ;;  %573 = vst.msk [vmem:[%s2221_s3 + $0xe0] sm:$0xff] %vm83_vm1, %v437_v21 }
 0x107   :  { %v854_v26 = vmax.f32 %v805_v22, 0.0  ;;  %v879_v27 = vmax.f32 %v830_v23, 0.0 }
 0x108   :  { %v750_v28 = vld [vmem:[%s2221_s3 + $0x10] sm:$0xff]  ;;  %v775_v29 = vld [vmem:[%s2221_s3 + $0xd8] sm:$0xff]  ;;  %v317_v30 = vpop.f32.mrb[8].mxu0  ;;  %v442_v31 = vpop.f32.mrb[8].mxu1 }
 0x109   :  { %903 = vst.msk [vmem:[%s2221_s3 + $0x8] sm:$0xff] %vm83_vm1, %v854_v26  ;;  %928 = vst.msk [vmem:[%s2221_s3 + $0xd0] sm:$0xff] %vm83_vm1, %v879_v27  ;;  %v806_v32 = vadd.f32 %v1644_v7, %v750_v28  ;;  %v831_v33 = vadd.f32 %v1644_v7, %v775_v29  ;;  %v1093_v34 = vpop.f32.mrb[9].mxu0  ;;  %v1168_v35 = vpop.f32.mrb[9].mxu1 }
 0x10a   :  { %549 = vst.msk [vmem:[%s2221_s3 + $0x20] sm:$0xff] %vm83_vm1, %v317_v30  ;;  %574 = vst.msk [vmem:[%s2221_s3 + $0xe8] sm:$0xff] %vm83_vm1, %v442_v31 }
 0x10b   :  { %v855_v36 = vmax.f32 %v806_v32, 0.0  ;;  %v880_v37 = vmax.f32 %v831_v33, 0.0 }
 0x10c   :  { %v322_v40 = vpop.f32.mrb[10].mxu0  ;;  %v447_v41 = vpop.f32.mrb[10].mxu1 }
 0x10d   :  { %v751_v38 = vld [vmem:[%s2221_s3 + $0x18] sm:$0xff]  ;;  %v776_v39 = vld [vmem:[%s2221_s3 + $0xe0] sm:$0xff]  ;;  %904 = vst.msk [vmem:[%s2221_s3 + $0x10] sm:$0xff] %vm83_vm1, %v855_v36  ;;  %929 = vst.msk [vmem:[%s2221_s3 + $0xd8] sm:$0xff] %vm83_vm1, %v880_v37  ;;  %v1096_v44 = vpop.f32.mrb[11].mxu0  ;;  %v1171_v45 = vpop.f32.mrb[11].mxu1 }
 0x10e   :  { %v807_v42 = vadd.f32 %v1644_v7, %v751_v38  ;;  %v832_v43 = vadd.f32 %v1644_v7, %v776_v39  ;;  %550 = vst.msk [vmem:[%s2221_s3 + $0x28] sm:$0xff] %vm83_vm1, %v322_v40  ;;  %575 = vst.msk [vmem:[%s2221_s3 + $0xf0] sm:$0xff] %vm83_vm1, %v447_v41 }
 0x110   :  { %v856_v46 = vmax.f32 %v807_v42, 0.0  ;;  %v881_v47 = vmax.f32 %v832_v43, 0.0  ;;  %v327_v50 = vpop.f32.mrb[12].mxu0  ;;  %v452_v51 = vpop.f32.mrb[12].mxu1 }
 0x111   :  { %v752_v48 = vld [vmem:[%s2221_s3 + $0x20] sm:$0xff]  ;;  %v777_v49 = vld [vmem:[%s2221_s3 + $0xe8] sm:$0xff]  ;;  %551 = vst.msk [vmem:[%s2221_s3 + $0x30] sm:$0xff] %vm83_vm1, %v327_v50  ;;  %v1099_v54 = vpop.f32.mrb[13].mxu0  ;;  %576 = vst.msk [vmem:[%s2221_s3 + $0xf8] sm:$0xff] %vm83_vm1, %v452_v51  ;;  %v1174_v55 = vpop.f32.mrb[13].mxu1 }
 0x112   :  { %905 = vst.msk [vmem:[%s2221_s3 + $0x18] sm:$0xff] %vm83_vm1, %v856_v46  ;;  %930 = vst.msk [vmem:[%s2221_s3 + $0xe0] sm:$0xff] %vm83_vm1, %v881_v47  ;;  %v808_v52 = vadd.f32 %v1644_v7, %v752_v48  ;;  %v833_v53 = vadd.f32 %v1644_v7, %v777_v49 }
 0x114   :  { %v857_v56 = vmax.f32 %v808_v52, 0.0  ;;  %v882_v57 = vmax.f32 %v833_v53, 0.0  ;;  %v332_v60 = vpop.f32.mrb[14].mxu0  ;;  %v457_v61 = vpop.f32.mrb[14].mxu1 }
 0x115   :  { %v753_v58 = vld [vmem:[%s2221_s3 + $0x28] sm:$0xff]  ;;  %v778_v59 = vld [vmem:[%s2221_s3 + $0xf0] sm:$0xff]  ;;  %552 = vst.msk [vmem:[%s2221_s3 + $0x38] sm:$0xff] %vm83_vm1, %v332_v60  ;;  %v1102_v0 = vpop.f32.mrb[15].mxu0  ;;  %577 = vst.msk [vmem:[%s2221_s3 + $0x100] sm:$0xff] %vm83_vm1, %v457_v61  ;;  %v1177_v2 = vpop.f32.mrb[15].mxu1 }
 0x116   :  { %906 = vst.msk [vmem:[%s2221_s3 + $0x20] sm:$0xff] %vm83_vm1, %v857_v56  ;;  %931 = vst.msk [vmem:[%s2221_s3 + $0xe8] sm:$0xff] %vm83_vm1, %v882_v57  ;;  %v809_v62 = vadd.f32 %v1644_v7, %v753_v58  ;;  %v834_v63 = vadd.f32 %v1644_v7, %v778_v59 }
 0x118   :  { %v858_v1 = vmax.f32 %v809_v62, 0.0  ;;  %v883_v3 = vmax.f32 %v834_v63, 0.0  ;;  %v754_v4 = vld [vmem:[%s2221_s3 + $0x30] sm:$0xff]  ;;  %v779_v5 = vld [vmem:[%s2221_s3 + $0xf8] sm:$0xff]  ;;  %v337_v6 = vpop.f32.mrb[16].mxu0  ;;  %v462_v8 = vpop.f32.mrb[16].mxu1 }
 0x119   :  { %v810_v9 = vadd.f32 %v1644_v7, %v754_v4  ;;  %v835_v10 = vadd.f32 %v1644_v7, %v779_v5  ;;  %553 = vst.msk [vmem:[%s2221_s3 + $0x40] sm:$0xff] %vm83_vm1, %v337_v6  ;;  %v1105_v11 = vpop.f32.mrb[17].mxu0  ;;  %578 = vst.msk [vmem:[%s2221_s3 + $0x108] sm:$0xff] %vm83_vm1, %v462_v8  ;;  %v1180_v12 = vpop.f32.mrb[17].mxu1 }
 0x11a   :  { %907 = vst.msk [vmem:[%s2221_s3 + $0x28] sm:$0xff] %vm83_vm1, %v858_v1  ;;  %932 = vst.msk [vmem:[%s2221_s3 + $0xf0] sm:$0xff] %vm83_vm1, %v883_v3 }
 0x11b   :  { %v859_v13 = vmax.f32 %v810_v9, 0.0  ;;  %v884_v14 = vmax.f32 %v835_v10, 0.0 }
 0x11c   :  { %v755_v15 = vld [vmem:[%s2221_s3 + $0x38] sm:$0xff]  ;;  %v780_v16 = vld [vmem:[%s2221_s3 + $0x100] sm:$0xff]  ;;  %v342_v17 = vpop.f32.mrb[18].mxu0  ;;  %v467_v18 = vpop.f32.mrb[18].mxu1 }
 0x11d   :  { %908 = vst.msk [vmem:[%s2221_s3 + $0x30] sm:$0xff] %vm83_vm1, %v859_v13  ;;  %933 = vst.msk [vmem:[%s2221_s3 + $0xf8] sm:$0xff] %vm83_vm1, %v884_v14  ;;  %v811_v19 = vadd.f32 %v1644_v7, %v755_v15  ;;  %v836_v20 = vadd.f32 %v1644_v7, %v780_v16  ;;  %v1108_v21 = vpop.f32.mrb[19].mxu0  ;;  %v1183_v22 = vpop.f32.mrb[19].mxu1 }
 0x11e   :  { %554 = vst.msk [vmem:[%s2221_s3 + $0x48] sm:$0xff] %vm83_vm1, %v342_v17  ;;  %579 = vst.msk [vmem:[%s2221_s3 + $0x110] sm:$0xff] %vm83_vm1, %v467_v18 }
 0x11f   :  { %v860_v23 = vmax.f32 %v811_v19, 0.0  ;;  %v885_v24 = vmax.f32 %v836_v20, 0.0 }
 0x120   :  { %v756_v25 = vld [vmem:[%s2221_s3 + $0x40] sm:$0xff]  ;;  %v781_v26 = vld [vmem:[%s2221_s3 + $0x108] sm:$0xff]  ;;  %v347_v27 = vpop.f32.mrb[20].mxu0  ;;  %v472_v28 = vpop.f32.mrb[20].mxu1 }
 0x121   :  { %909 = vst.msk [vmem:[%s2221_s3 + $0x38] sm:$0xff] %vm83_vm1, %v860_v23  ;;  %934 = vst.msk [vmem:[%s2221_s3 + $0x100] sm:$0xff] %vm83_vm1, %v885_v24  ;;  %v812_v29 = vadd.f32 %v1644_v7, %v756_v25  ;;  %v837_v30 = vadd.f32 %v1644_v7, %v781_v26  ;;  %v1111_v31 = vpop.f32.mrb[21].mxu0  ;;  %v1186_v32 = vpop.f32.mrb[21].mxu1 }
 0x122   :  { %555 = vst.msk [vmem:[%s2221_s3 + $0x50] sm:$0xff] %vm83_vm1, %v347_v27  ;;  %580 = vst.msk [vmem:[%s2221_s3 + $0x118] sm:$0xff] %vm83_vm1, %v472_v28 }
 0x123   :  { %v861_v33 = vmax.f32 %v812_v29, 0.0  ;;  %v886_v34 = vmax.f32 %v837_v30, 0.0 }
 0x124   :  { %v352_v37 = vpop.f32.mrb[22].mxu0  ;;  %v477_v38 = vpop.f32.mrb[22].mxu1 }
 0x125   :  { %v757_v35 = vld [vmem:[%s2221_s3 + $0x48] sm:$0xff]  ;;  %v782_v36 = vld [vmem:[%s2221_s3 + $0x110] sm:$0xff]  ;;  %910 = vst.msk [vmem:[%s2221_s3 + $0x40] sm:$0xff] %vm83_vm1, %v861_v33  ;;  %935 = vst.msk [vmem:[%s2221_s3 + $0x108] sm:$0xff] %vm83_vm1, %v886_v34  ;;  %v1114_v41 = vpop.f32.mrb[23].mxu0  ;;  %v1189_v42 = vpop.f32.mrb[23].mxu1 }
 0x126   :  { %v813_v39 = vadd.f32 %v1644_v7, %v757_v35  ;;  %v838_v40 = vadd.f32 %v1644_v7, %v782_v36  ;;  %556 = vst.msk [vmem:[%s2221_s3 + $0x58] sm:$0xff] %vm83_vm1, %v352_v37  ;;  %581 = vst.msk [vmem:[%s2221_s3 + $0x120] sm:$0xff] %vm83_vm1, %v477_v38 }
 0x128   :  { %v862_v43 = vmax.f32 %v813_v39, 0.0  ;;  %v887_v44 = vmax.f32 %v838_v40, 0.0  ;;  %v357_v47 = vpop.f32.mrb[24].mxu0  ;;  %v482_v48 = vpop.f32.mrb[24].mxu1 }
 0x129   :  { %v758_v45 = vld [vmem:[%s2221_s3 + $0x50] sm:$0xff]  ;;  %v783_v46 = vld [vmem:[%s2221_s3 + $0x118] sm:$0xff]  ;;  %557 = vst.msk [vmem:[%s2221_s3 + $0x60] sm:$0xff] %vm83_vm1, %v357_v47  ;;  %v1117_v51 = vpop.f32.mrb[25].mxu0  ;;  %582 = vst.msk [vmem:[%s2221_s3 + $0x128] sm:$0xff] %vm83_vm1, %v482_v48  ;;  %v1192_v52 = vpop.f32.mrb[25].mxu1 }
 0x12a   :  { %911 = vst.msk [vmem:[%s2221_s3 + $0x48] sm:$0xff] %vm83_vm1, %v862_v43  ;;  %936 = vst.msk [vmem:[%s2221_s3 + $0x110] sm:$0xff] %vm83_vm1, %v887_v44  ;;  %v814_v49 = vadd.f32 %v1644_v7, %v758_v45  ;;  %v839_v50 = vadd.f32 %v1644_v7, %v783_v46 }
 0x12c   :  { %v863_v53 = vmax.f32 %v814_v49, 0.0  ;;  %v888_v54 = vmax.f32 %v839_v50, 0.0  ;;  %v362_v57 = vpop.f32.mrb[26].mxu0  ;;  %v487_v58 = vpop.f32.mrb[26].mxu1 }
 0x12d   :  { %v759_v55 = vld [vmem:[%s2221_s3 + $0x58] sm:$0xff]  ;;  %v784_v56 = vld [vmem:[%s2221_s3 + $0x120] sm:$0xff]  ;;  %558 = vst.msk [vmem:[%s2221_s3 + $0x68] sm:$0xff] %vm83_vm1, %v362_v57  ;;  %v1120_v61 = vpop.f32.mrb[27].mxu0  ;;  %583 = vst.msk [vmem:[%s2221_s3 + $0x130] sm:$0xff] %vm83_vm1, %v487_v58  ;;  %v1195_v62 = vpop.f32.mrb[27].mxu1 }
 0x12e   :  { %912 = vst.msk [vmem:[%s2221_s3 + $0x50] sm:$0xff] %vm83_vm1, %v863_v53  ;;  %937 = vst.msk [vmem:[%s2221_s3 + $0x118] sm:$0xff] %vm83_vm1, %v888_v54  ;;  %v815_v59 = vadd.f32 %v1644_v7, %v759_v55  ;;  %v840_v60 = vadd.f32 %v1644_v7, %v784_v56 }
 0x130   :  { %v864_v63 = vmax.f32 %v815_v59, 0.0  ;;  %v889_v0 = vmax.f32 %v840_v60, 0.0  ;;  %v760_v2 = vld [vmem:[%s2221_s3 + $0x60] sm:$0xff]  ;;  %v785_v1 = vld [vmem:[%s2221_s3 + $0x128] sm:$0xff]  ;;  %v367_v3 = vpop.f32.mrb[28].mxu0  ;;  %v492_v4 = vpop.f32.mrb[28].mxu1 }
 0x131   :  { %v816_v5 = vadd.f32 %v1644_v7, %v760_v2  ;;  %v841_v6 = vadd.f32 %v1644_v7, %v785_v1  ;;  %559 = vst.msk [vmem:[%s2221_s3 + $0x70] sm:$0xff] %vm83_vm1, %v367_v3  ;;  %v1123_v8 = vpop.f32.mrb[29].mxu0  ;;  %584 = vst.msk [vmem:[%s2221_s3 + $0x138] sm:$0xff] %vm83_vm1, %v492_v4  ;;  %v1198_v9 = vpop.f32.mrb[29].mxu1 }
 0x132   :  { %913 = vst.msk [vmem:[%s2221_s3 + $0x58] sm:$0xff] %vm83_vm1, %v864_v63  ;;  %938 = vst.msk [vmem:[%s2221_s3 + $0x120] sm:$0xff] %vm83_vm1, %v889_v0 }
 0x133   :  { %v865_v10 = vmax.f32 %v816_v5, 0.0  ;;  %v890_v11 = vmax.f32 %v841_v6, 0.0 }
 0x134   :  { %v761_v12 = vld [vmem:[%s2221_s3 + $0x68] sm:$0xff]  ;;  %v786_v13 = vld [vmem:[%s2221_s3 + $0x130] sm:$0xff]  ;;  %v372_v14 = vpop.f32.mrb[30].mxu0  ;;  %v497_v15 = vpop.f32.mrb[30].mxu1 }
 0x135   :  { %914 = vst.msk [vmem:[%s2221_s3 + $0x60] sm:$0xff] %vm83_vm1, %v865_v10  ;;  %939 = vst.msk [vmem:[%s2221_s3 + $0x128] sm:$0xff] %vm83_vm1, %v890_v11  ;;  %v817_v16 = vadd.f32 %v1644_v7, %v761_v12  ;;  %v842_v17 = vadd.f32 %v1644_v7, %v786_v13  ;;  %v1126_v18 = vpop.f32.mrb[31].mxu0  ;;  %v1201_v19 = vpop.f32.mrb[31].mxu1 }
 0x136   :  { %560 = vst.msk [vmem:[%s2221_s3 + $0x78] sm:$0xff] %vm83_vm1, %v372_v14  ;;  %585 = vst.msk [vmem:[%s2221_s3 + $0x140] sm:$0xff] %vm83_vm1, %v497_v15 }
 0x137   :  { %v866_v20 = vmax.f32 %v817_v16, 0.0  ;;  %v891_v21 = vmax.f32 %v842_v17, 0.0 }
 0x138   :  { %v762_v22 = vld [vmem:[%s2221_s3 + $0x70] sm:$0xff]  ;;  %v787_v23 = vld [vmem:[%s2221_s3 + $0x138] sm:$0xff]  ;;  %v377_v24 = vpop.f32.mrb[32].mxu0  ;;  %v502_v25 = vpop.f32.mrb[32].mxu1 }
 0x139   :  { %915 = vst.msk [vmem:[%s2221_s3 + $0x68] sm:$0xff] %vm83_vm1, %v866_v20  ;;  %940 = vst.msk [vmem:[%s2221_s3 + $0x130] sm:$0xff] %vm83_vm1, %v891_v21  ;;  %v818_v26 = vadd.f32 %v1644_v7, %v762_v22  ;;  %v843_v27 = vadd.f32 %v1644_v7, %v787_v23  ;;  %v1129_v28 = vpop.f32.mrb[33].mxu0  ;;  %v1204_v29 = vpop.f32.mrb[33].mxu1 }
 0x13a   :  { %561 = vst.msk [vmem:[%s2221_s3 + $0x80] sm:$0xff] %vm83_vm1, %v377_v24  ;;  %586 = vst.msk [vmem:[%s2221_s3 + $0x148] sm:$0xff] %vm83_vm1, %v502_v25 }
 0x13b   :  { %v867_v30 = vmax.f32 %v818_v26, 0.0  ;;  %v892_v31 = vmax.f32 %v843_v27, 0.0 }
 0x13c   :  { %v382_v34 = vpop.f32.mrb[34].mxu0  ;;  %v507_v35 = vpop.f32.mrb[34].mxu1 }
 0x13d   :  { %v763_v32 = vld [vmem:[%s2221_s3 + $0x78] sm:$0xff]  ;;  %v788_v33 = vld [vmem:[%s2221_s3 + $0x140] sm:$0xff]  ;;  %916 = vst.msk [vmem:[%s2221_s3 + $0x70] sm:$0xff] %vm83_vm1, %v867_v30  ;;  %941 = vst.msk [vmem:[%s2221_s3 + $0x138] sm:$0xff] %vm83_vm1, %v892_v31  ;;  %v1132_v38 = vpop.f32.mrb[35].mxu0  ;;  %v1207_v39 = vpop.f32.mrb[35].mxu1 }
 0x13e   :  { %v819_v36 = vadd.f32 %v1644_v7, %v763_v32  ;;  %v844_v37 = vadd.f32 %v1644_v7, %v788_v33  ;;  %562 = vst.msk [vmem:[%s2221_s3 + $0x88] sm:$0xff] %vm83_vm1, %v382_v34  ;;  %587 = vst.msk [vmem:[%s2221_s3 + $0x150] sm:$0xff] %vm83_vm1, %v507_v35 }
 0x140   :  { %v868_v40 = vmax.f32 %v819_v36, 0.0  ;;  %v893_v41 = vmax.f32 %v844_v37, 0.0  ;;  %v387_v44 = vpop.f32.mrb[36].mxu0  ;;  %v512_v45 = vpop.f32.mrb[36].mxu1 }
 0x141   :  { %v764_v42 = vld [vmem:[%s2221_s3 + $0x80] sm:$0xff]  ;;  %v789_v43 = vld [vmem:[%s2221_s3 + $0x148] sm:$0xff]  ;;  %563 = vst.msk [vmem:[%s2221_s3 + $0x90] sm:$0xff] %vm83_vm1, %v387_v44  ;;  %v1135_v48 = vpop.f32.mrb[37].mxu0  ;;  %588 = vst.msk [vmem:[%s2221_s3 + $0x158] sm:$0xff] %vm83_vm1, %v512_v45  ;;  %v1210_v49 = vpop.f32.mrb[37].mxu1 }
 0x142   :  { %917 = vst.msk [vmem:[%s2221_s3 + $0x78] sm:$0xff] %vm83_vm1, %v868_v40  ;;  %942 = vst.msk [vmem:[%s2221_s3 + $0x140] sm:$0xff] %vm83_vm1, %v893_v41  ;;  %v820_v46 = vadd.f32 %v1644_v7, %v764_v42  ;;  %v845_v47 = vadd.f32 %v1644_v7, %v789_v43 }
 0x144   :  { %v869_v50 = vmax.f32 %v820_v46, 0.0  ;;  %v894_v51 = vmax.f32 %v845_v47, 0.0  ;;  %v392_v54 = vpop.f32.mrb[38].mxu0  ;;  %v517_v55 = vpop.f32.mrb[38].mxu1 }
 0x145   :  { %v765_v52 = vld [vmem:[%s2221_s3 + $0x88] sm:$0xff]  ;;  %v790_v53 = vld [vmem:[%s2221_s3 + $0x150] sm:$0xff]  ;;  %564 = vst.msk [vmem:[%s2221_s3 + $0x98] sm:$0xff] %vm83_vm1, %v392_v54  ;;  %v1138_v58 = vpop.f32.mrb[39].mxu0  ;;  %589 = vst.msk [vmem:[%s2221_s3 + $0x160] sm:$0xff] %vm83_vm1, %v517_v55  ;;  %v1213_v59 = vpop.f32.mrb[39].mxu1 }
 0x146   :  { %918 = vst.msk [vmem:[%s2221_s3 + $0x80] sm:$0xff] %vm83_vm1, %v869_v50  ;;  %943 = vst.msk [vmem:[%s2221_s3 + $0x148] sm:$0xff] %vm83_vm1, %v894_v51  ;;  %v821_v56 = vadd.f32 %v1644_v7, %v765_v52  ;;  %v846_v57 = vadd.f32 %v1644_v7, %v790_v53 }
 0x148   :  { %v870_v60 = vmax.f32 %v821_v56, 0.0  ;;  %v895_v61 = vmax.f32 %v846_v57, 0.0  ;;  %v766_v62 = vld [vmem:[%s2221_s3 + $0x90] sm:$0xff]  ;;  %v791_v63 = vld [vmem:[%s2221_s3 + $0x158] sm:$0xff]  ;;  %v397_v0 = vpop.f32.mrb[40].mxu0  ;;  %v522_v2 = vpop.f32.mrb[40].mxu1 }
 0x149   :  { %v822_v1 = vadd.f32 %v1644_v7, %v766_v62  ;;  %v847_v3 = vadd.f32 %v1644_v7, %v791_v63  ;;  %565 = vst.msk [vmem:[%s2221_s3 + $0xa0] sm:$0xff] %vm83_vm1, %v397_v0  ;;  %v1141_v4 = vpop.f32.mrb[41].mxu0  ;;  %590 = vst.msk [vmem:[%s2221_s3 + $0x168] sm:$0xff] %vm83_vm1, %v522_v2  ;;  %v1216_v5 = vpop.f32.mrb[41].mxu1 }
 0x14a   :  { %919 = vst.msk [vmem:[%s2221_s3 + $0x88] sm:$0xff] %vm83_vm1, %v870_v60  ;;  %944 = vst.msk [vmem:[%s2221_s3 + $0x150] sm:$0xff] %vm83_vm1, %v895_v61 }
 0x14b   :  { %v871_v6 = vmax.f32 %v822_v1, 0.0  ;;  %v896_v8 = vmax.f32 %v847_v3, 0.0 }
 0x14c   :  { %v767_v9 = vld [vmem:[%s2221_s3 + $0x98] sm:$0xff]  ;;  %v792_v10 = vld [vmem:[%s2221_s3 + $0x160] sm:$0xff]  ;;  %v402_v11 = vpop.f32.mrb[42].mxu0  ;;  %v527_v12 = vpop.f32.mrb[42].mxu1 }
 0x14d   :  { %920 = vst.msk [vmem:[%s2221_s3 + $0x90] sm:$0xff] %vm83_vm1, %v871_v6  ;;  %945 = vst.msk [vmem:[%s2221_s3 + $0x158] sm:$0xff] %vm83_vm1, %v896_v8  ;;  %v823_v13 = vadd.f32 %v1644_v7, %v767_v9  ;;  %v848_v14 = vadd.f32 %v1644_v7, %v792_v10  ;;  %v1144_v15 = vpop.f32.mrb[43].mxu0  ;;  %v1219_v16 = vpop.f32.mrb[43].mxu1 }
 0x14e   :  { %566 = vst.msk [vmem:[%s2221_s3 + $0xa8] sm:$0xff] %vm83_vm1, %v402_v11  ;;  %591 = vst.msk [vmem:[%s2221_s3 + $0x170] sm:$0xff] %vm83_vm1, %v527_v12 }
 0x14f   :  { %v872_v17 = vmax.f32 %v823_v13, 0.0  ;;  %v897_v18 = vmax.f32 %v848_v14, 0.0 }
 0x150   :  { %v768_v19 = vld [vmem:[%s2221_s3 + $0xa0] sm:$0xff]  ;;  %v793_v20 = vld [vmem:[%s2221_s3 + $0x168] sm:$0xff]  ;;  %v407_v21 = vpop.f32.mrb[44].mxu0  ;;  %v532_v22 = vpop.f32.mrb[44].mxu1 }
 0x151   :  { %921 = vst.msk [vmem:[%s2221_s3 + $0x98] sm:$0xff] %vm83_vm1, %v872_v17  ;;  %946 = vst.msk [vmem:[%s2221_s3 + $0x160] sm:$0xff] %vm83_vm1, %v897_v18  ;;  %v824_v23 = vadd.f32 %v1644_v7, %v768_v19  ;;  %v849_v24 = vadd.f32 %v1644_v7, %v793_v20  ;;  %v1147_v25 = vpop.f32.mrb[45].mxu0  ;;  %v1222_v26 = vpop.f32.mrb[45].mxu1 }
 0x152   :  { %567 = vst.msk [vmem:[%s2221_s3 + $0xb0] sm:$0xff] %vm83_vm1, %v407_v21  ;;  %592 = vst.msk [vmem:[%s2221_s3 + $0x178] sm:$0xff] %vm83_vm1, %v532_v22 }
 0x153   :  { %v873_v27 = vmax.f32 %v824_v23, 0.0  ;;  %v898_v28 = vmax.f32 %v849_v24, 0.0 }
 0x154   :  { %v412_v31 = vpop.f32.mrb[46].mxu0  ;;  %v537_v32 = vpop.f32.mrb[46].mxu1 }
 0x155   :  { %v769_v29 = vld [vmem:[%s2221_s3 + $0xa8] sm:$0xff]  ;;  %v794_v30 = vld [vmem:[%s2221_s3 + $0x170] sm:$0xff]  ;;  %922 = vst.msk [vmem:[%s2221_s3 + $0xa0] sm:$0xff] %vm83_vm1, %v873_v27  ;;  %947 = vst.msk [vmem:[%s2221_s3 + $0x168] sm:$0xff] %vm83_vm1, %v898_v28  ;;  %v1150_v35 = vpop.f32.mrb[47].mxu0  ;;  %v1225_v36 = vpop.f32.mrb[47].mxu1 }
 0x156   :  { %v825_v33 = vadd.f32 %v1644_v7, %v769_v29  ;;  %v850_v34 = vadd.f32 %v1644_v7, %v794_v30  ;;  %568 = vst.msk [vmem:[%s2221_s3 + $0xb8] sm:$0xff] %vm83_vm1, %v412_v31  ;;  %593 = vst.msk [vmem:[%s2221_s3 + $0x180] sm:$0xff] %vm83_vm1, %v537_v32 }
 0x158   :  { %v874_v37 = vmax.f32 %v825_v33, 0.0  ;;  %v899_v38 = vmax.f32 %v850_v34, 0.0  ;;  %v417_v41 = vpop.f32.mrb[48].mxu0 }
 0x159   :  { %v770_v39 = vld [vmem:[%s2221_s3 + $0xb0] sm:$0xff]  ;;  %v795_v40 = vld [vmem:[%s2221_s3 + $0x178] sm:$0xff]  ;;  %569 = vst.msk [vmem:[%s2221_s3 + $0xc0] sm:$0xff] %vm83_vm1, %v417_v41  ;;  %v1153_v44 = vpop.f32.mrb[49].mxu0 }
 0x15a   :  { %923 = vst.msk [vmem:[%s2221_s3 + $0xa8] sm:$0xff] %vm83_vm1, %v874_v37  ;;  %948 = vst.msk [vmem:[%s2221_s3 + $0x170] sm:$0xff] %vm83_vm1, %v899_v38  ;;  %v826_v42 = vadd.f32 %v1644_v7, %v770_v39  ;;  %v851_v43 = vadd.f32 %v1644_v7, %v795_v40 }
 0x15c   :  { %v875_v45 = vmax.f32 %v826_v42, 0.0  ;;  %v900_v46 = vmax.f32 %v851_v43, 0.0 }
 0x15d   :  { %v771_v47 = vld [vmem:[%s2221_s3 + $0xb8] sm:$0xff]  ;;  %v796_v48 = vld [vmem:[%s2221_s3 + $0x180] sm:$0xff] }
 0x15e   :  { %924 = vst.msk [vmem:[%s2221_s3 + $0xb0] sm:$0xff] %vm83_vm1, %v875_v45  ;;  %949 = vst.msk [vmem:[%s2221_s3 + $0x178] sm:$0xff] %vm83_vm1, %v900_v46  ;;  %v827_v49 = vadd.f32 %v1644_v7, %v771_v47  ;;  %v852_v50 = vadd.f32 %v1644_v7, %v796_v48 }
 0x160   :  { %v876_v51 = vmax.f32 %v827_v49, 0.0  ;;  %v901_v52 = vmax.f32 %v852_v50, 0.0  ;;  %v772_v53 = vld [vmem:[%s2221_s3 + $0xc0] sm:$0xff] }
 0x161   :  { %v828_v54 = vadd.f32 %v1644_v7, %v772_v53 }
 0x162   :  { %925 = vst.msk [vmem:[%s2221_s3 + $0xb8] sm:$0xff] %vm83_vm1, %v876_v51  ;;  %950 = vst.msk [vmem:[%s2221_s3 + $0x180] sm:$0xff] %vm83_vm1, %v901_v52 }
 0x163   :  { %v877_v55 = vmax.f32 %v828_v54, 0.0 }
 0x165   :  { %926 = vst.msk [vmem:[%s2221_s3 + $0xc0] sm:$0xff] %vm83_vm1, %v877_v55 }
 0x166   :  { %955 = vsyncpa [#allocation3], 1 }

// kernel: cnn_forward.9
= control target key start
LH: loop header
LB: loop body
LE: loop exit
PB: predicated region body
PF: predicated region fallthrough
CT: control target
= control target key end

     0   :  { %vm226_vm0 = vcmask 48128   ;;  %s625_s1 = inlined_call_operand.vmem [shape: f32[512,6], index: 1, kind: input, shape index: {}]   ;;  %s626_s0 = inlined_call_operand.vmem [shape: f32[8,512], index: 0, kind: input, shape index: {}]   ;;  %s627_s3 = inlined_call_operand.vmem [shape: f32[8,6], index: 3, kind: output, shape index: {}]   ;;  %s628_s2 = inlined_call_operand.vmem [shape: f32[1,6], index: 2, kind: input, shape index: {}]  }
   0x1   :  { %v34_v0 = vld [vmem:[%s625_s1 + $0x80] sm:$0xff]  ;;  %v35_v1 = vld [vmem:[%s625_s1 + $0x88] sm:$0xff]  ;;  %v36_v11 = vld [vmem:[%s625_s1 + $0x90] sm:$0xff] }
   0x2   :  { %v66_v2 = vld [vmem:[%s625_s1 + $0x180] sm:$0xff]  ;;  %v325_v3 = vpack.c.bf16 %v35_v1, %v34_v0  ;;  %v67_v4 = vld [vmem:[%s625_s1 + $0x188] sm:$0xff]  ;;  %v37_v13 = vld [vmem:[%s625_s1 + $0x98] sm:$0xff] }
   0x3   :  { %v18_v5 = vld [vmem:[%s625_s1] sm:$0xff]  ;;  %v19_v6 = vld [vmem:[%s625_s1 + $0x8] sm:$0xff]  ;;  %v357_v7 = vpack.c.bf16 %v67_v4, %v66_v2  ;;  %v68_v14 = vld [vmem:[%s625_s1 + $0x190] sm:$0xff]  ;;  %v329_v16 = vpack.c.bf16 %v37_v13, %v36_v11 }
   0x4   :  { %v327_v8 = vpack.c.bf16 %v19_v6, %v18_v5  ;;  %v50_v9 = vld [vmem:[%s625_s1 + $0x100] sm:$0xff]  ;;  %v51_v10 = vld [vmem:[%s625_s1 + $0x108] sm:$0xff]  ;;  %326 = vmatprep.subr.bf16.mxu0 %v325_v3  ;;  %v69_v15 = vld [vmem:[%s625_s1 + $0x198] sm:$0xff] }
   0x5   :  { %v359_v12 = vpack.c.bf16 %v51_v10, %v50_v9  ;;  %358 = vmatprep.subr.bf16.mxu1 %v357_v7  ;;  %v361_v17 = vpack.c.bf16 %v69_v15, %v68_v14  ;;  %v20_v18 = vld [vmem:[%s625_s1 + $0x10] sm:$0xff]  ;;  %v21_v19 = vld [vmem:[%s625_s1 + $0x18] sm:$0xff]  ;;  %v38_v23 = vld [vmem:[%s625_s1 + $0xa0] sm:$0xff] }
   0x6   :  { %328 = vmatpush3.bf16.msra.mxu0 %v327_v8  ;;  %v52_v20 = vld [vmem:[%s625_s1 + $0x110] sm:$0xff]  ;;  %v331_v21 = vpack.c.bf16 %v21_v19, %v20_v18  ;;  %v53_v22 = vld [vmem:[%s625_s1 + $0x118] sm:$0xff]  ;;  %v39_v24 = vld [vmem:[%s625_s1 + $0xa8] sm:$0xff] }
   0x7   :  { %360 = vmatpush3.bf16.msra.mxu1 %v359_v12  ;;  %330 = vmatprep.subr.bf16.mxu0 %v329_v16  ;;  %v363_v25 = vpack.c.bf16 %v53_v22, %v52_v20  ;;  %v333_v26 = vpack.c.bf16 %v39_v24, %v38_v23  ;;  %v70_v27 = vld [vmem:[%s625_s1 + $0x1a0] sm:$0xff]  ;;  %v71_v28 = vld [vmem:[%s625_s1 + $0x1a8] sm:$0xff]  ;;  %v40_v35 = vld [vmem:[%s625_s1 + $0xb0] sm:$0xff] }
   0x8   :  { %362 = vmatprep.subr.bf16.mxu1 %v361_v17  ;;  %v22_v29 = vld [vmem:[%s625_s1 + $0x20] sm:$0xff]  ;;  %v365_v30 = vpack.c.bf16 %v71_v28, %v70_v27  ;;  %v23_v31 = vld [vmem:[%s625_s1 + $0x28] sm:$0xff]  ;;  %v41_v36 = vld [vmem:[%s625_s1 + $0xb8] sm:$0xff] }
   0x9   :  { %v54_v32 = vld [vmem:[%s625_s1 + $0x120] sm:$0xff]  ;;  %v55_v33 = vld [vmem:[%s625_s1 + $0x128] sm:$0xff]  ;;  %v335_v34 = vpack.c.bf16 %v23_v31, %v22_v29  ;;  %v72_v37 = vld [vmem:[%s625_s1 + $0x1b0] sm:$0xff]  ;;  %v337_v39 = vpack.c.bf16 %v41_v36, %v40_v35 }
   0xa   :  { %332 = vmatpush3.bf16.msra.mxu0 %v331_v21  ;;  %v367_v38 = vpack.c.bf16 %v55_v33, %v54_v32  ;;  %v73_v40 = vld [vmem:[%s625_s1 + $0x1b8] sm:$0xff]  ;;  %v24_v41 = vld [vmem:[%s625_s1 + $0x30] sm:$0xff]  ;;  %v42_v46 = vld [vmem:[%s625_s1 + $0xc0] sm:$0xff] }
   0xb   :  { %364 = vmatpush3.bf16.msra.mxu1 %v363_v25  ;;  %334 = vmatprep.subr.bf16.mxu0 %v333_v26  ;;  %v25_v42 = vld [vmem:[%s625_s1 + $0x38] sm:$0xff]  ;;  %v369_v43 = vpack.c.bf16 %v73_v40, %v72_v37  ;;  %v56_v44 = vld [vmem:[%s625_s1 + $0x130] sm:$0xff]  ;;  %v43_v47 = vld [vmem:[%s625_s1 + $0xc8] sm:$0xff] }
   0xc   :  { %366 = vmatprep.subr.bf16.mxu1 %v365_v30  ;;  %v57_v45 = vld [vmem:[%s625_s1 + $0x138] sm:$0xff]  ;;  %v74_v48 = vld [vmem:[%s625_s1 + $0x1c0] sm:$0xff]  ;;  %v75_v49 = vld [vmem:[%s625_s1 + $0x1c8] sm:$0xff]  ;;  %v339_v50 = vpack.c.bf16 %v25_v42, %v24_v41  ;;  %v341_v52 = vpack.c.bf16 %v43_v47, %v42_v46 }
   0xd   :  { %v371_v51 = vpack.c.bf16 %v57_v45, %v56_v44  ;;  %v26_v53 = vld [vmem:[%s625_s1 + $0x40] sm:$0xff]  ;;  %v27_v54 = vld [vmem:[%s625_s1 + $0x48] sm:$0xff]  ;;  %v373_v56 = vpack.c.bf16 %v75_v49, %v74_v48  ;;  %v44_v58 = vld [vmem:[%s625_s1 + $0xd0] sm:$0xff] }
   0xe   :  { %336 = vmatpush3.bf16.msra.mxu0 %v335_v34  ;;  %v58_v55 = vld [vmem:[%s625_s1 + $0x140] sm:$0xff]  ;;  %v59_v57 = vld [vmem:[%s625_s1 + $0x148] sm:$0xff]  ;;  %v45_v59 = vld [vmem:[%s625_s1 + $0xd8] sm:$0xff]  ;;  %v343_v62 = vpack.c.bf16 %v27_v54, %v26_v53 }
   0xf   :  { %368 = vmatpush3.bf16.msra.mxu1 %v367_v38  ;;  %338 = vmatprep.subr.bf16.mxu0 %v337_v39  ;;  %v76_v60 = vld [vmem:[%s625_s1 + $0x1d0] sm:$0xff]  ;;  %v77_v61 = vld [vmem:[%s625_s1 + $0x1d8] sm:$0xff]  ;;  %v375_v63 = vpack.c.bf16 %v59_v57, %v58_v55  ;;  %v345_v0 = vpack.c.bf16 %v45_v59, %v44_v58  ;;  %v46_v6 = vld [vmem:[%s625_s1 + $0xe0] sm:$0xff] }
  0x10   :  { %370 = vmatprep.subr.bf16.mxu1 %v369_v43  ;;  %v28_v1 = vld [vmem:[%s625_s1 + $0x50] sm:$0xff]  ;;  %v29_v2 = vld [vmem:[%s625_s1 + $0x58] sm:$0xff]  ;;  %v377_v4 = vpack.c.bf16 %v77_v61, %v76_v60  ;;  %v47_v7 = vld [vmem:[%s625_s1 + $0xe8] sm:$0xff] }
  0x11   :  { %v60_v3 = vld [vmem:[%s625_s1 + $0x150] sm:$0xff]  ;;  %v61_v5 = vld [vmem:[%s625_s1 + $0x158] sm:$0xff]  ;;  %v78_v8 = vld [vmem:[%s625_s1 + $0x1e0] sm:$0xff]  ;;  %v347_v10 = vpack.c.bf16 %v29_v2, %v28_v1  ;;  %v349_v14 = vpack.c.bf16 %v47_v7, %v46_v6 }
  0x12   :  { %340 = vmatpush3.bf16.msra.mxu0 %v339_v50  ;;  %v79_v9 = vld [vmem:[%s625_s1 + $0x1e8] sm:$0xff]  ;;  %v30_v11 = vld [vmem:[%s625_s1 + $0x60] sm:$0xff]  ;;  %v379_v13 = vpack.c.bf16 %v61_v5, %v60_v3  ;;  %v17_v17 = vld [vmem:[%s626_s0 + $0x18] sm:$0xff] }
  0x13   :  { %372 = vmatpush3.bf16.msra.mxu1 %v371_v51  ;;  %342 = vmatprep.subr.bf16.mxu0 %v341_v52  ;;  %v31_v12 = vld [vmem:[%s625_s1 + $0x68] sm:$0xff]  ;;  %v62_v15 = vld [vmem:[%s625_s1 + $0x160] sm:$0xff]  ;;  %v381_v18 = vpack.c.bf16 %v79_v9, %v78_v8  ;;  %v48_v20 = vld [vmem:[%s625_s1 + $0xf0] sm:$0xff] }
  0x14   :  { %374 = vmatprep.subr.bf16.mxu1 %v373_v56  ;;  %v15_v16 = vld [vmem:[%s626_s0 + $0x8] sm:$0xff]  ;;  %v49_v21 = vld [vmem:[%s625_s1 + $0xf8] sm:$0xff]  ;;  %v80_v22 = vld [vmem:[%s625_s1 + $0x1f0] sm:$0xff]  ;;  %216 = vmatprep.mubr.f32.mxu1 %v17_v17  ;;  %v351_v24 = vpack.c.bf16 %v31_v12, %v30_v11 }
  0x15   :  { %v63_v19 = vld [vmem:[%s625_s1 + $0x168] sm:$0xff]  ;;  %146 = vmatprep.mubr.f32.mxu0 %v15_v16  ;;  %v81_v23 = vld [vmem:[%s625_s1 + $0x1f8] sm:$0xff]  ;;  %v353_v26 = vpack.c.bf16 %v49_v21, %v48_v20  ;;  %v32_v27 = vld [vmem:[%s625_s1 + $0x70] sm:$0xff] }
  0x16   :  { %344 = vmatpush3.bf16.msra.mxu0 %v343_v62  ;;  %v383_v25 = vpack.c.bf16 %v63_v19, %v62_v15  ;;  %v33_v28 = vld [vmem:[%s625_s1 + $0x78] sm:$0xff]  ;;  %v385_v29 = vpack.c.bf16 %v81_v23, %v80_v22  ;;  %v64_v30 = vld [vmem:[%s625_s1 + $0x170] sm:$0xff]  ;;  %v14_v34 = vld [vmem:[%s626_s0] sm:$0xff] }
  0x17   :  { %376 = vmatpush3.bf16.msra.mxu1 %v375_v63  ;;  %346 = vmatprep.subr.bf16.mxu0 %v345_v0  ;;  %v65_v31 = vld [vmem:[%s625_s1 + $0x178] sm:$0xff]  ;;  %v355_v32 = vpack.c.bf16 %v33_v28, %v32_v27  ;;  %v16_v35 = vld [vmem:[%s626_s0 + $0x10] sm:$0xff]  ;;  %v254_v43 = vld [vmem:[%s628_s2] ss:$0 sm:$0xff] }
  0x18   :  { %378 = vmatprep.subr.bf16.mxu1 %v377_v4  ;;  %v387_v33 = vpack.c.bf16 %v65_v31, %v64_v30 }
  0x1a   :  { %348 = vmatpush3.bf16.msra.mxu0 %v347_v10 }
  0x1b   :  { %380 = vmatpush3.bf16.msra.mxu1 %v379_v13  ;;  %350 = vmatprep.subr.bf16.mxu0 %v349_v14 }
  0x1c   :  { %382 = vmatprep.subr.bf16.mxu1 %v381_v18 }
  0x1e   :  { %352 = vmatpush3.bf16.msra.mxu0 %v351_v24 }
  0x1f   :  { %384 = vmatpush3.bf16.msra.mxu1 %v383_v25  ;;  %354 = vmatprep.subr.bf16.mxu0 %v353_v26 }
  0x20   :  { %386 = vmatprep.subr.bf16.mxu1 %v385_v29 }
  0x22   :  { %356 = vmatpush3.bf16.msra.mxu0 %v355_v32 }
  0x23   :  { %388 = vmatpush3.bf16.msra.mxu1 %v387_v33 }
  0x25   :  { %147 = vmatmul.mubr.f32.vlgmr.msra.gmra.mrb[0].mxu0 %v14_v34 }
  0x26   :  { %217 = vmatmul.mubr.f32.vlgmr.msra.gmra.mrb[0].mxu1 %v16_v35 }
  0xf8   :  { %v287_v36 = vpop.f32.mrb[0].mxu0 }
  0xf9   :  { %v322_v37 = vpop.f32.mrb[0].mxu1  ;;  %v288_v38 = vpop.f32.mrb[1].mxu0 }
  0xfa   :  { %v289_v39 = vadd.f32 %v288_v38, %v287_v36  ;;  %v323_v40 = vpop.f32.mrb[1].mxu1 }
  0xfb   :  { %v324_v41 = vadd.f32 %v323_v40, %v322_v37 }
  0xfd   :  { %v219_v42 = vadd.f32 %v324_v41, %v289_v39 }
  0xff   :  { %227 = vst.msk [vmem:[%s627_s3] sm:$0xff] %vm226_vm0, %v219_v42 }
 0x106   :  { %v239_v44 = vld [vmem:[%s627_s3] sm:$0xff] }
 0x107   :  { %v247_v45 = vadd.f32 %v254_v43, %v239_v44 }
 0x109   :  { %249 = vst.msk [vmem:[%s627_s3] sm:$0xff] %vm226_vm0, %v247_v45 }

// kernel: cnn_forward.8
= control target key start
LH: loop header
LB: loop body
LE: loop exit
PB: predicated region body
PF: predicated region fallthrough
CT: control target
= control target key end

     0   :  { %s3565_s0 = inlined_call_operand.vmem [shape: f32[8,12544], index: 0, kind: input, shape index: {}]   ;;  %s3566_s1 = inlined_call_operand.hbm [shape: bf16[12544,512], index: 1, kind: input, shape index: {}]   ;;  %s3567_s2 = inlined_call_operand.hbm [shape: f32[1,512], index: 2, kind: input, shape index: {}]   ;;  %s3568_s3 = inlined_call_operand.vmem [shape: f32[8,512], index: 3, kind: output, shape index: {}]  }
   0x1   :  { %3574 = sst [smem:[#allocation9_spill]] %s3566_s1 }
   0x2   :  { %8 = vsyncpa [#allocation3], 0 }
   0x3   :  { %10 = vsyncpa [#allocation3 + $0x1], 0 }
   0x4   :  { %11 = vsyncpa [#allocation5], 0 }
   0x5   :  { %13 = vsyncpa [#allocation5 + $0x1], 0  ;;  %s3034_s12 = smov 0   ;;  %s3036_s13 = smov 0  }
   0x6   :  { %s3038_s14 = smov 0   ;;  %s3040_s15 = smov 0  }
   0x7   :  { %s3042_s16 = smov 0   ;;  %s3044_s17 = smov 0  }
   0x8   :  { %s3046_s18 = smov 0   ;;  %s3048_s19 = smov 0  }
   0x9   :  { %s3050_s20 = smov 0   ;;  %s3052_s21 = smov 0  }
   0xa   :  { %s3054_s22 = smov 0  }
   0xb LB: > { %s31_s23 = sadd.s32 1, %s2999_s20  ;;  %p82_p1 = scmp.ne.s32.totalorder %s2987_s17, %s2983_s16  ;;  %s3007_s22 = sphi %s3054_s22, %s19_s22   ;;  %s3003_s21 = sphi %s3052_s21, %s3602_s21   ;;  %s2999_s20 = sphi %s3050_s20, %s3601_s20   ;;  %s2995_s19 = sphi %s3048_s19, %s3600_s19   ;;  %s2991_s18 = sphi %s3046_s18, %s3599_s18   ;;  %s2987_s17 = sphi %s3044_s17, %s3598_s17   ;;  %s2983_s16 = sphi %s3042_s16, %s3597_s16   ;;  %s2979_s15 = sphi %s3040_s15, %s3596_s15   ;;  %s2975_s14 = sphi %s3038_s14, %s3595_s14   ;;  %s2971_s13 = sphi %s3036_s13, %s3594_s13   ;;  %s2967_s12 = sphi %s3034_s12, %s3593_s12  }
   0xc   : > { %p3091_p0 = scmp.ge.s32.totalorder %s31_s23, 7  ;;  %p3570_p2 = scmp.eq.s32.totalorder %s3007_s22, 0 }
   0xd   : > { %p3569_p4 = scmp.lt.s32.totalorder %s3007_s22, 14  ;;  %s179_s27 = sand.u32 1, %s2987_s17  }
   0xe   : > { %s3604_s23 = smov (%p3091_p0, %s31_s23), 0  ;;  %p84_p3 = por %p3570_p2, %p82_p1 }
   0xf   : > { %s2412_s28 = smul.u32 1792, %s179_s27  ;;  %s2148_s29 = sshll.u32 %s3003_s21, 1 }
  0x10   : > { %s2388_s30 = smul.u32 896, %s2999_s20  ;;  %p3112_p5 = pnand %p3569_p4, %p84_p3 }
  0x11   : > { %s183_s6 = scalar_lea.vmem [#allocation2], %s2412_s28  ;;  %s3577_s1 = sld [smem:[#allocation9_spill]] }
  0x12   : > { %s190_s5 = sadd.s32 %s2388_s30, %s2148_s29  ;;  %s193_s7 = sshll.u32 %s183_s6, 4  ;;  %s3116_s7 = int_to_ptr.vmem [resolvable:$true] %s193_s7 }
  0x13   : > { %s2150_s8 = sshll.u32 %s190_s5, 6  ;;  %s3124_s24 = scalar_lea.sflag [#allocation3], %s179_s27 }
  0x14   : > { %p2855_p8 = pneg %p3112_p5 }
  0x17   : > { %s3121_s11 = scalar_lea.hbm %s3577_s1, %s2150_s8  ;;  %s2858_s30 = scalar_lea.hbm %s3577_s1, 401408 }
  0x18   : > { %s2853_s26 = scalar_lea.hbm %s3121_s11, 28672  ;;  %p2859_p11 = scmp.lt.u32.totalorder %s3121_s11, %s3577_s1 }
  0x19   : > { %p2854_p7 = scmp.ne.s32.totalorder %s3121_s11, %s2853_s26  ;;  %p2860_p12 = scmp.lt.u32.totalorder %s2858_s30, %s2853_s26 }
  0x1a   : > { %p2862_p1 = scmp.lt.u32.totalorder %s2853_s26, %s3121_s11 }
  0x1b   : > { %p2856_p9 = pnand %p2855_p8, %p2854_p7  ;;  %p2861_p13 = por %p2860_p12, %p2859_p11 }
  0x1d   : > { %p2857_p10 = pneg %p2856_p9  ;;  %p2863_p3 = por %p2862_p1, %p2861_p13 }
  0x1f   : > { %p2864_p4 = pnand %p2863_p3, %p2857_p10 }
  0x21   : > { %2867 = shalt.err (!%p2864_p4)
}
  0x22   : > { %s2868_s27 = scalar_lea.vmem %s3116_s7, 28672  ;;  %s3009_s8 = smov [#allocation2]  }
  0x23   : > { %p2869_p7 = scmp.ne.s32.totalorder %s3116_s7, %s2868_s27  ;;  %s2873_s9 = sshll.u32 %s3009_s8, 4  ;;  %s2874_s9 = int_to_ptr.vmem [resolvable:$false] %s2873_s9 }
  0x24   : > { %s2875_s10 = scalar_lea.vmem %s2874_s9, 57344  ;;  %p2876_p6 = scmp.lt.s32.totalorder %s3116_s7, %s2874_s9 }
  0x25   : > { %p2871_p9 = pnand %p2869_p7, %p2855_p8  ;;  %p2877_p11 = scmp.lt.s32.totalorder %s2875_s10, %s2868_s27 }
  0x27   : > { %p2872_p2 = pneg %p2871_p9  ;;  %p2878_p12 = por %p2877_p11, %p2876_p6 }
  0x29   : > { %p2879_p13 = pnand %p2878_p12, %p2872_p2 }
  0x2b   : > { %2882 = shalt.err (!%p2879_p13)
}
  0x2c   : > { %s3010_s26 = smov 256   ;;  %s3011_s28 = smov 128  }
  0x2d   : > { %s3012_s29 = smov 8   ;;  %p220_p2 = scmp.lt.s32.totalorder %s3007_s22, 15 }
  0x2e   : > { %2421 = dma.hbm_to_vmem [thread:$0]  (!%p3112_p5), %s3121_s11, 28672, %s3116_s7, %s3124_s24, %s3010_s26, %s3011_s28, %s3012_s29  }
  0x2f   : > { %p3578_p4 = scmp.ge.s32.totalorder %s3007_s22, 1  ;;  %s2144_s5 = sadd.s32 4294967295, %s3007_s22  }
  0x30   : > { %s34_s6 = sadd.s32 1, %s3003_s21  ;;  %p88_p8 = scmp.ne.s32.totalorder %s2983_s16, %s2979_s15 }
  0x31   : > { %p3155_p6 = pnand %p3578_p4, %p220_p2  ;;  %s3606_s6 = smov (!%p3091_p0, %s34_s6), %s3003_s21 }
  0x32   : > { %p3166_p10 = scmp.eq.s32.totalorder %s2144_s5, 0  ;;  %p36_p5 = scmp.ge.s32.totalorder %s3606_s6, 2 }
  0x33   : > { %s101_s24 = sadd.s32 1, %s2975_s14  ;;  %p108_p3 = scmp.ne.s32.totalorder %s2975_s14, %s2971_s13 }
  0x34   : > { %p3173_p1 = por %p3166_p10, %p88_p8  ;;  %s3608_s6 = smov (%p36_p5, %s3606_s6), 0 }
  0x35   : > { %3582 = sst [smem:[#allocation8_spill]] %s3608_s6  ;;  %p3583_p0 = scmp.eq.s32.totalorder %s3007_s22, 0 }
  0x36   : > { %s3581_s7 = scalar_select %p3173_p1, 1, 0 }
  0x37   : > { %p3183_p7 = por %p108_p3, %p3583_p0  ;;  %p114_p9 = scmp.ne.s32.totalorder %s2971_s13, %s2967_s12 }
  0x38   : > { %s71_s25 = ssub.s32 %s3003_s21, %s3608_s6  ;;  %s203_s11 = sand.u32 1, %s2975_s14  }
  0x39   : > { %s3585_s27 = ssub.s32 %s2999_s20, %s3604_s23  ;;  %p99_p11 = scmp.eq.s32.totalorder %s71_s25, 0 }
  0x3a   : > { %s72_s8 = sor.u32 %s71_s25, %s3585_s27  ;;  %p3197_p13 = por %p114_p9, %p3166_p10 }
  0x3b   : > { %p73_p12 = scmp.eq.s32.totalorder %s72_s8, 0  ;;  %s3587_s26 = sadd.s32 1, %s2987_s17 }
  0x3c   : > { %s3586_s9 = scalar_select %p3197_p13, 1, 0 }
  0x3d   : > { %s3202_s10 = scalar_select %p99_p11, %s2975_s14, %s101_s24  }
  0x3e   : > { %s3207_s28 = scalar_select %p73_p12, %s2987_s17, %s3587_s26  }
  0x3f   : > { %s2151_s29 = sshll.u32 %s203_s11, 1  ;;  %s2389_s5 = sshll.u32 %s3003_s21, 5 }
  0x40   : > { %s3213_s6 = scalar_lea.hbm %s3567_s2, %s2389_s5  ;;  %s207_s4 = scalar_lea.vmem [#allocation4], %s2151_s29 }
  0x41   : > { %s215_s25 = sshll.u32 %s207_s4, 4  ;;  %p3588_p2 = scmp.lt.s32.totalorder %s3007_s22, 14  ;;  %s3215_s25 = int_to_ptr.vmem [resolvable:$true] %s215_s25 }
  0x42   : > { %s204_s27 = scalar_lea.sflag [#allocation5], %s203_s11  ;;  %s2883_s1 = scalar_lea.hbm %s3213_s6, 32 }
  0x43   : > { %p3221_p4 = pnand %p3588_p2, %p3183_p7  ;;  %p2884_p8 = scmp.ne.s32.totalorder %s3213_s6, %s2883_s1 }
  0x44   : > { %s2888_s15 = scalar_lea.hbm %s3567_s2, 64  ;;  %p2889_p0 = scmp.lt.u32.totalorder %s3213_s6, %s3567_s2 }
  0x45   : > { %p2885_p10 = pneg %p3221_p4  ;;  %p2890_p7 = scmp.lt.u32.totalorder %s2888_s15, %s2883_s1 }
  0x46   : > { %p2892_p11 = scmp.lt.u32.totalorder %s2883_s1, %s3213_s6 }
  0x47   : > { %p2886_p5 = pnand %p2885_p10, %p2884_p8  ;;  %p2891_p9 = por %p2890_p7, %p2889_p0 }
  0x49   : > { %p2887_p3 = pneg %p2886_p5  ;;  %p2893_p12 = por %p2892_p11, %p2891_p9 }
  0x4b   : > { %p2894_p2 = pnand %p2893_p12, %p2887_p3 }
  0x4d   : > { %2897 = shalt.err (!%p2894_p2)
}
  0x4e   : > { %s2898_s11 = scalar_lea.vmem %s3215_s25, 32  ;;  %s3013_s12 = smov [#allocation4]  }
  0x4f   : > { %p2899_p8 = scmp.ne.s32.totalorder %s3215_s25, %s2898_s11  ;;  %s2903_s4 = sshll.u32 %s3013_s12, 4  ;;  %s2904_s4 = int_to_ptr.vmem [resolvable:$false] %s2903_s4 }
  0x50   : > { %s2905_s8 = scalar_lea.vmem %s2904_s4, 64  ;;  %p2906_p1 = scmp.lt.s32.totalorder %s3215_s25, %s2904_s4 }
  0x51   : > { %p2901_p5 = pnand %p2899_p8, %p2885_p10  ;;  %p2907_p0 = scmp.lt.s32.totalorder %s2905_s8, %s2898_s11 }
  0x53   : > { %p2902_p13 = pneg %p2901_p5  ;;  %p2908_p7 = por %p2907_p0, %p2906_p1 }
  0x55   : > { %p2909_p9 = pnand %p2908_p7, %p2902_p13 }
  0x57   : > { %2912 = shalt.err (!%p2909_p9)
}
  0x58   : > { %2424 = dma.hbm_to_vmem [thread:$0]  (!%p3221_p4), %s3213_s6, 32, %s3215_s25, %s204_s27  }
  0x59   : > { %224 = sbr.rel (%p3155_p6) target bundleno = 599 (0x257), region = 32  ;;  %s226_s1 = sand.u32 (!%p3155_p6), 1, %s2983_s16  }
  0x5a   : > { %s2413_s26 = smul.u32 (!%p3155_p6), 1792, %s226_s1  ;;  %s227_s15 = scalar_lea.sflag (!%p3155_p6), [#allocation3], %s226_s1 }
  0x5b   : > { %p3590_p10 = scmp.ne.s32.totalorder (!%p3155_p6), %s3581_s7, 0 }
  0x5c   : > { %s3253_s29 = scalar_lea.vmem (!%p3155_p6), [#allocation2], %s2413_s26 }
  0x60   : > { %2958 = dma.done.wait (%p3590_p10), %s227_s15, 28672  }
  0x61   : > { %2960 = vsyncadd (%p3590_p10), %s227_s15, 4294938624  ;;  %s235_s24 = sand.u32 1, %s2971_s13   ;;  %p3591_p6 = scmp.ne.s32.totalorder %s3586_s9, 0 }
  0x62   : > { %s3260_s5 = sshll.u32 %s235_s24, 1  ;;  %s236_s30 = scalar_lea.sflag [#allocation5], %s235_s24 }
  0x63   : > { %s239_s6 = scalar_lea.vmem [#allocation4], %s3260_s5 }
  0x64   : > { %2962 = dma.done.wait (%p3591_p6), %s236_s30, 32  }
  0x65   : > { %2964 = vsyncadd (%p3591_p6), %s236_s30, 4294967264  ;;  %s2157_s7 = sshll.u32 %s2995_s19, 1  ;;  %v2517_v0 = vld [vmem:[%s3253_s29 + $0x4] ss:$8 sps:$4 sm:$0xff]   ;;  %v2521_v2 = vld [vmem:[%s3253_s29] ss:$8 sps:$4 sm:$0xff]  }
  0x66   : > { %p296_p1 = scmp.lt.s32.totalorder %s2157_s7, 3  ;;  %v2519_v1 = vld [vmem:[%s3253_s29 + $0x304] ss:$8 sps:$4 sm:$0xff]   ;;  %1675 = vmatprep.subr.bf16.mxu1 %v2517_v0  ;;  %v2522_v3 = vld [vmem:[%s3253_s29 + $0x300] ss:$8 sps:$4 sm:$0xff]   ;;  %s280_s19 = smul.u32 14, %s2991_s18 }
  0x67   : > { %1798 = vmatprep.subr.bf16.mxu0 %v2519_v1  ;;  %v2523_v4 = vld [vmem:[%s3253_s29 + $0x14] ss:$8 sps:$4 sm:$0xff]   ;;  %1676 = vmatpush1.bf16.msra.mxu1 %v2521_v2  ;;  %v2527_v6 = vld [vmem:[%s3253_s29 + $0x10] ss:$8 sps:$4 sm:$0xff]   ;;  %v2529_v8 = vld [vmem:[%s3253_s29 + $0x24] ss:$8 sps:$4 sm:$0xff]  }
  0x68   : > { %s3610_s7 = smov (!%p296_p1, %s2157_s7), 3  ;;  %1799 = vmatpush1.bf16.msra.mxu0 %v2522_v3  ;;  %v2525_v5 = vld [vmem:[%s3253_s29 + $0x314] ss:$8 sps:$4 sm:$0xff]   ;;  %1677 = vmatprep.subr.bf16.mxu1 %v2523_v4  ;;  %v2528_v7 = vld [vmem:[%s3253_s29 + $0x310] ss:$8 sps:$4 sm:$0xff]   ;;  %p283_p13 = scmp.lt.s32.totalorder %s280_s19, 97 }
  0x69   : > { %s2158_s25 = sshll.u32 %s3610_s7, 3  ;;  %1800 = vmatprep.subr.bf16.mxu0 %v2525_v5  ;;  %v2531_v9 = vld [vmem:[%s3253_s29 + $0x324] ss:$8 sps:$4 sm:$0xff]   ;;  %v2533_v10 = vld [vmem:[%s3253_s29 + $0x20] ss:$8 sps:$4 sm:$0xff]   ;;  %p2383_p4 = scmp.ne.s32.totalorder %s2991_s18, 0 }
  0x6a   : > { %s3271_s12 = scalar_lea.vmem %s3568_s3, %s2158_s25  ;;  %v2534_v11 = vld [vmem:[%s3253_s29 + $0x320] ss:$8 sps:$4 sm:$0xff]   ;;  %v2535_v12 = vld [vmem:[%s3253_s29 + $0x34] ss:$8 sps:$4 sm:$0xff]   ;;  %v2539_v14 = vld [vmem:[%s3253_s29 + $0x30] ss:$8 sps:$4 sm:$0xff]  }
  0x6b   : > { %1678 = vmatpush1.bf16.msra.mxu1 %v2527_v6  ;;  %v2537_v13 = vld [vmem:[%s3253_s29 + $0x334] ss:$8 sps:$4 sm:$0xff]   ;;  %v2540_v15 = vld [vmem:[%s3253_s29 + $0x330] ss:$8 sps:$4 sm:$0xff]   ;;  %v2541_v16 = vld [vmem:[%s3253_s29 + $0x44] ss:$8 sps:$4 sm:$0xff]  }
  0x6c   : > { %1801 = vmatpush1.bf16.msra.mxu0 %v2528_v7  ;;  %1679 = vmatprep.subr.bf16.mxu1 %v2529_v8  ;;  %v2543_v17 = vld [vmem:[%s3253_s29 + $0x344] ss:$8 sps:$4 sm:$0xff]   ;;  %v2545_v18 = vld [vmem:[%s3253_s29 + $0x40] ss:$8 sps:$4 sm:$0xff]   ;;  %v2547_v20 = vld [vmem:[%s3253_s29 + $0x54] ss:$8 sps:$4 sm:$0xff]  }
  0x6d   : > { %1802 = vmatprep.subr.bf16.mxu0 %v2531_v9  ;;  %v2546_v19 = vld [vmem:[%s3253_s29 + $0x340] ss:$8 sps:$4 sm:$0xff]   ;;  %v2549_v21 = vld [vmem:[%s3253_s29 + $0x354] ss:$8 sps:$4 sm:$0xff]   ;;  %v2551_v22 = vld [vmem:[%s3253_s29 + $0x50] ss:$8 sps:$4 sm:$0xff]  }
  0x6e   : > { %v2552_v23 = vld [vmem:[%s3253_s29 + $0x350] ss:$8 sps:$4 sm:$0xff]   ;;  %v2553_v24 = vld [vmem:[%s3253_s29 + $0x64] ss:$8 sps:$4 sm:$0xff]   ;;  %v2557_v26 = vld [vmem:[%s3253_s29 + $0x60] ss:$8 sps:$4 sm:$0xff]  }
  0x6f   : > { %1680 = vmatpush1.bf16.msra.mxu1 %v2533_v10  ;;  %v2555_v25 = vld [vmem:[%s3253_s29 + $0x364] ss:$8 sps:$4 sm:$0xff]   ;;  %v2558_v27 = vld [vmem:[%s3253_s29 + $0x360] ss:$8 sps:$4 sm:$0xff]   ;;  %v2559_v28 = vld [vmem:[%s3253_s29 + $0x74] ss:$8 sps:$4 sm:$0xff]  }
  0x70   : > { %1803 = vmatpush1.bf16.msra.mxu0 %v2534_v11  ;;  %1681 = vmatprep.subr.bf16.mxu1 %v2535_v12  ;;  %v2561_v29 = vld [vmem:[%s3253_s29 + $0x374] ss:$8 sps:$4 sm:$0xff]   ;;  %v2563_v30 = vld [vmem:[%s3253_s29 + $0x70] ss:$8 sps:$4 sm:$0xff]   ;;  %v2565_v32 = vld [vmem:[%s3253_s29 + $0x84] ss:$8 sps:$4 sm:$0xff]  }
  0x71   : > { %1804 = vmatprep.subr.bf16.mxu0 %v2537_v13  ;;  %v2564_v31 = vld [vmem:[%s3253_s29 + $0x370] ss:$8 sps:$4 sm:$0xff]   ;;  %v2567_v33 = vld [vmem:[%s3253_s29 + $0x384] ss:$8 sps:$4 sm:$0xff]   ;;  %v2569_v34 = vld [vmem:[%s3253_s29 + $0x80] ss:$8 sps:$4 sm:$0xff]  }
  0x72   : > { %v2570_v35 = vld [vmem:[%s3253_s29 + $0x380] ss:$8 sps:$4 sm:$0xff]   ;;  %v2571_v36 = vld [vmem:[%s3253_s29 + $0x94] ss:$8 sps:$4 sm:$0xff]   ;;  %s3612_s19 = smov (!%p283_p13, %s280_s19), 97 }
  0x73   : > { %1682 = vmatpush1.bf16.msra.mxu1 %v2539_v14  ;;  %v2573_v37 = vld [vmem:[%s3253_s29 + $0x394] ss:$8 sps:$4 sm:$0xff]   ;;  %v2575_v38 = vld [vmem:[%s3253_s29 + $0x90] ss:$8 sps:$4 sm:$0xff]   ;;  %v2577_v40 = vld [vmem:[%s3253_s29 + $0xa4] ss:$8 sps:$4 sm:$0xff]  }
  0x74   : > { %1805 = vmatpush1.bf16.msra.mxu0 %v2540_v15  ;;  %1683 = vmatprep.subr.bf16.mxu1 %v2541_v16  ;;  %v2576_v39 = vld [vmem:[%s3253_s29 + $0x390] ss:$8 sps:$4 sm:$0xff]   ;;  %s2156_s9 = sshll.u32 %s3612_s19, 3  ;;  %v2579_v41 = vld [vmem:[%s3253_s29 + $0x3a4] ss:$8 sps:$4 sm:$0xff]  }
  0x75   : > { %1806 = vmatprep.subr.bf16.mxu0 %v2543_v17  ;;  %v2581_v42 = vld [vmem:[%s3253_s29 + $0xa0] ss:$8 sps:$4 sm:$0xff]   ;;  %s3321_s1 = scalar_lea.vmem %s3565_s0, %s2156_s9  ;;  %v2583_v44 = vld [vmem:[%s3253_s29 + $0xb4] ss:$8 sps:$4 sm:$0xff]   ;;  %v2587_v47 = vld [vmem:[%s3253_s29 + $0xb0] ss:$8 sps:$4 sm:$0xff]  }
  0x76   : > { %v2582_v43 = vld [vmem:[%s3253_s29 + $0x3a0] ss:$8 sps:$4 sm:$0xff]   ;;  %v2585_v45 = vld [vmem:[%s3253_s29 + $0x3b4] ss:$8 sps:$4 sm:$0xff]   ;;  %v2588_v49 = vld [vmem:[%s3253_s29 + $0x3b0] ss:$8 sps:$4 sm:$0xff]  }
  0x77   : > { %1684 = vmatpush1.bf16.msra.mxu1 %v2545_v18  ;;  %v304_v46 = vld [vmem:[%s3321_s1 + $0x8] sm:$0xff]  ;;  %v310_v50 = vld [vmem:[%s3321_s1 + $0x38] sm:$0xff]  ;;  %v303_v5 = vld [vmem:[%s3321_s1] sm:$0xff] }
  0x78   : > { %1807 = vmatpush1.bf16.msra.mxu0 %v2546_v19  ;;  %1685 = vmatprep.subr.bf16.mxu1 %v2547_v20  ;;  %v542_v48 = vpack.c.bf16 %v304_v46, %v304_v46  ;;  %v2589_v51 = vld [vmem:[%s3253_s29 + $0xc4] ss:$8 sps:$4 sm:$0xff]   ;;  %v548_v53 = vpack.c.bf16 %v310_v50, %v310_v50  ;;  %v2593_v54 = vld [vmem:[%s3253_s29 + $0xc0] ss:$8 sps:$4 sm:$0xff]   ;;  %v2595_v56 = vld [vmem:[%s3253_s29 + $0xd4] ss:$8 sps:$4 sm:$0xff]   ;;  %v541_v10 = vpack.c.bf16 %v303_v5, %v303_v5 }
  0x79   : > { %1808 = vmatprep.subr.bf16.mxu0 %v2549_v21  ;;  %v2591_v52 = vld [vmem:[%s3253_s29 + $0x3c4] ss:$8 sps:$4 sm:$0xff]   ;;  %v2594_v55 = vld [vmem:[%s3253_s29 + $0x3c0] ss:$8 sps:$4 sm:$0xff]   ;;  %v2597_v57 = vld [vmem:[%s3253_s29 + $0x3d4] ss:$8 sps:$4 sm:$0xff]  }
  0x7a   : > { %1707 = vmatprep.mubr.bf16.mxu1 %v542_v48  ;;  %1830 = vmatprep.mubr.bf16.mxu0 %v548_v53  ;;  %v2599_v58 = vld [vmem:[%s3253_s29 + $0xd0] ss:$8 sps:$4 sm:$0xff]   ;;  %v2601_v60 = vld [vmem:[%s3253_s29 + $0xe4] ss:$8 sps:$4 sm:$0xff]   ;;  %v2605_v62 = vld [vmem:[%s3253_s29 + $0xe0] ss:$8 sps:$4 sm:$0xff]  }
  0x7b   : > { %1686 = vmatpush1.bf16.msra.mxu1 %v2551_v22  ;;  %v2600_v59 = vld [vmem:[%s3253_s29 + $0x3d0] ss:$8 sps:$4 sm:$0xff]   ;;  %v2603_v61 = vld [vmem:[%s3253_s29 + $0x3e4] ss:$8 sps:$4 sm:$0xff]   ;;  %v2606_v63 = vld [vmem:[%s3253_s29 + $0x3e0] ss:$8 sps:$4 sm:$0xff]  }
  0x7c   : > { %1809 = vmatpush1.bf16.msra.mxu0 %v2552_v23  ;;  %1687 = vmatprep.subr.bf16.mxu1 %v2553_v24  ;;  %v2607_v0 = vld [vmem:[%s3253_s29 + $0xf4] ss:$8 sps:$4 sm:$0xff]   ;;  %v2611_v2 = vld [vmem:[%s3253_s29 + $0xf0] ss:$8 sps:$4 sm:$0xff]   ;;  %v2615_v4 = vld [vmem:[%s3253_s29 + $0x104] ss:$8 sps:$4 sm:$0xff]  }
  0x7d   : > { %1810 = vmatprep.subr.bf16.mxu0 %v2555_v25  ;;  %v2609_v1 = vld [vmem:[%s3253_s29 + $0x3f4] ss:$8 sps:$4 sm:$0xff]   ;;  %v2612_v3 = vld [vmem:[%s3253_s29 + $0x3f0] ss:$8 sps:$4 sm:$0xff]   ;;  %v2618_v7 = vld [vmem:[%s3253_s29 + $0x404] ss:$8 sps:$4 sm:$0xff]  }
  0x7e   : > { %v309_v6 = vld [vmem:[%s3321_s1 + $0x30] sm:$0xff]  ;;  %v2613_v8 = vld [vmem:[%s3253_s29 + $0x100] ss:$8 sps:$4 sm:$0xff]   ;;  %v2627_v16 = vld [vmem:[%s3253_s29 + $0x124] ss:$8 sps:$4 sm:$0xff]  }
  0x7f   : > { %1688 = vmatpush1.bf16.msra.mxu1 %v2557_v26  ;;  %v2616_v9 = vld [vmem:[%s3253_s29 + $0x400] ss:$8 sps:$4 sm:$0xff]   ;;  %v547_v11 = vpack.c.bf16 %v309_v6, %v309_v6  ;;  %v2621_v12 = vld [vmem:[%s3253_s29 + $0x114] ss:$8 sps:$4 sm:$0xff]   ;;  %v2619_v14 = vld [vmem:[%s3253_s29 + $0x110] ss:$8 sps:$4 sm:$0xff]  }
  0x80   : > { %1811 = vmatpush1.bf16.msra.mxu0 %v2558_v27  ;;  %1689 = vmatprep.subr.bf16.mxu1 %v2559_v28  ;;  %v2624_v13 = vld [vmem:[%s3253_s29 + $0x414] ss:$8 sps:$4 sm:$0xff]   ;;  %v2622_v15 = vld [vmem:[%s3253_s29 + $0x410] ss:$8 sps:$4 sm:$0xff]   ;;  %v2630_v17 = vld [vmem:[%s3253_s29 + $0x424] ss:$8 sps:$4 sm:$0xff]  }
  0x81   : > { %1812 = vmatprep.subr.bf16.mxu0 %v2561_v29  ;;  %v2625_v18 = vld [vmem:[%s3253_s29 + $0x120] ss:$8 sps:$4 sm:$0xff]   ;;  %v2633_v20 = vld [vmem:[%s3253_s29 + $0x134] ss:$8 sps:$4 sm:$0xff]   ;;  %v2631_v22 = vld [vmem:[%s3253_s29 + $0x130] ss:$8 sps:$4 sm:$0xff]  }
  0x82   : > { %v2628_v19 = vld [vmem:[%s3253_s29 + $0x420] ss:$8 sps:$4 sm:$0xff]   ;;  %v2636_v21 = vld [vmem:[%s3253_s29 + $0x434] ss:$8 sps:$4 sm:$0xff]   ;;  %v2634_v23 = vld [vmem:[%s3253_s29 + $0x430] ss:$8 sps:$4 sm:$0xff]  }
  0x83   : > { %1690 = vmatpush1.bf16.msra.mxu1 %v2563_v30  ;;  %v2639_v24 = vld [vmem:[%s3253_s29 + $0x144] ss:$8 sps:$4 sm:$0xff]   ;;  %v2637_v26 = vld [vmem:[%s3253_s29 + $0x140] ss:$8 sps:$4 sm:$0xff]   ;;  %v2645_v28 = vld [vmem:[%s3253_s29 + $0x154] ss:$8 sps:$4 sm:$0xff]  }
  0x84   : > { %1813 = vmatpush1.bf16.msra.mxu0 %v2564_v31  ;;  %1691 = vmatprep.subr.bf16.mxu1 %v2565_v32  ;;  %v2642_v25 = vld [vmem:[%s3253_s29 + $0x444] ss:$8 sps:$4 sm:$0xff]   ;;  %v2640_v27 = vld [vmem:[%s3253_s29 + $0x440] ss:$8 sps:$4 sm:$0xff]   ;;  %v2648_v29 = vld [vmem:[%s3253_s29 + $0x454] ss:$8 sps:$4 sm:$0xff]  }
  0x85   : > { %1814 = vmatprep.subr.bf16.mxu0 %v2567_v33  ;;  %v2643_v30 = vld [vmem:[%s3253_s29 + $0x150] ss:$8 sps:$4 sm:$0xff]   ;;  %v2651_v32 = vld [vmem:[%s3253_s29 + $0x164] ss:$8 sps:$4 sm:$0xff]   ;;  %v2661_v46 = vld [vmem:[%s3253_s29 + $0x180] ss:$8 sps:$4 sm:$0xff]  }
  0x86   : > { %v2646_v31 = vld [vmem:[%s3253_s29 + $0x450] ss:$8 sps:$4 sm:$0xff]   ;;  %v2654_v33 = vld [vmem:[%s3253_s29 + $0x464] ss:$8 sps:$4 sm:$0xff]   ;;  %v2669_v48 = vld [vmem:[%s3253_s29 + $0x194] ss:$8 sps:$4 sm:$0xff]  }
  0x87   : > { %1692 = vmatpush1.bf16.msra.mxu1 %v2569_v34  ;;  %v306_v34 = vld [vmem:[%s3321_s1 + $0x18] sm:$0xff]  ;;  %v2678_v53 = vld [vmem:[%s3253_s29 + $0x4a4] ss:$8 sps:$4 sm:$0xff]   ;;  %v2697_v6 = vld [vmem:[%s3253_s29 + $0x1e0] ss:$8 sps:$4 sm:$0xff]  }
  0x88   : > { %1815 = vmatpush1.bf16.msra.mxu0 %v2570_v35  ;;  %1693 = vmatprep.subr.bf16.mxu1 %v2571_v36  ;;  %v2649_v35 = vld [vmem:[%s3253_s29 + $0x160] ss:$8 sps:$4 sm:$0xff]   ;;  %v544_v36 = vpack.c.bf16 %v306_v34, %v306_v34  ;;  %v2667_v50 = vld [vmem:[%s3253_s29 + $0x190] ss:$8 sps:$4 sm:$0xff]   ;;  %v2702_v5 = vld [vmem:[%s3253_s29 + $0x4e4] ss:$8 sps:$4 sm:$0xff]  }
  0x89   : > { %1816 = vmatprep.subr.bf16.mxu0 %v2573_v37  ;;  %v2652_v37 = vld [vmem:[%s3253_s29 + $0x460] ss:$8 sps:$4 sm:$0xff]   ;;  %v2727_v34 = vld [vmem:[%s3253_s29 + $0x230] ss:$8 sps:$4 sm:$0xff]  }
  0x8b   : > { %1694 = vmatpush1.bf16.msra.mxu1 %v2575_v38  ;;  %v312_v38 = vld [vmem:[%s3321_s1 + $0x48] sm:$0xff] }
  0x8c   : > { %1817 = vmatpush1.bf16.msra.mxu0 %v2576_v39  ;;  %1695 = vmatprep.subr.bf16.mxu1 %v2577_v40  ;;  %v2657_v39 = vld [vmem:[%s3253_s29 + $0x174] ss:$8 sps:$4 sm:$0xff]  }
  0x8d   : > { %1818 = vmatprep.subr.bf16.mxu0 %v2579_v41  ;;  %v2660_v40 = vld [vmem:[%s3253_s29 + $0x474] ss:$8 sps:$4 sm:$0xff]   ;;  %v550_v41 = vpack.c.bf16 %v312_v38, %v312_v38  ;;  %v2733_v38 = vld [vmem:[%s3253_s29 + $0x240] ss:$8 sps:$4 sm:$0xff]  }
  0x8f   : > { %1696 = vmatpush1.bf16.msra.mxu1 %v2581_v42  ;;  %v2655_v42 = vld [vmem:[%s3253_s29 + $0x170] ss:$8 sps:$4 sm:$0xff]  }
  0x90   : > { %1819 = vmatpush1.bf16.msra.mxu0 %v2582_v43  ;;  %1697 = vmatprep.subr.bf16.mxu1 %v2583_v44  ;;  %v2658_v43 = vld [vmem:[%s3253_s29 + $0x470] ss:$8 sps:$4 sm:$0xff]   ;;  %v2663_v44 = vld [vmem:[%s3253_s29 + $0x184] ss:$8 sps:$4 sm:$0xff]  }
  0x91   : > { %1820 = vmatprep.subr.bf16.mxu0 %v2585_v45  ;;  %v2666_v45 = vld [vmem:[%s3253_s29 + $0x484] ss:$8 sps:$4 sm:$0xff]  }
  0x93   : > { %1698 = vmatpush1.bf16.msra.mxu1 %v2587_v47  ;;  %v2664_v47 = vld [vmem:[%s3253_s29 + $0x480] ss:$8 sps:$4 sm:$0xff]  }
  0x94   : > { %1821 = vmatpush1.bf16.msra.mxu0 %v2588_v49  ;;  %1699 = vmatprep.subr.bf16.mxu1 %v2589_v51  ;;  %v2672_v49 = vld [vmem:[%s3253_s29 + $0x494] ss:$8 sps:$4 sm:$0xff]   ;;  %v2670_v51 = vld [vmem:[%s3253_s29 + $0x490] ss:$8 sps:$4 sm:$0xff]  }
  0x95   : > { %1822 = vmatprep.subr.bf16.mxu0 %v2591_v52  ;;  %v2675_v52 = vld [vmem:[%s3253_s29 + $0x1a4] ss:$8 sps:$4 sm:$0xff]  }
  0x97   : > { %1700 = vmatpush1.bf16.msra.mxu1 %v2593_v54  ;;  %v2673_v54 = vld [vmem:[%s3253_s29 + $0x1a0] ss:$8 sps:$4 sm:$0xff]  }
  0x98   : > { %1823 = vmatpush1.bf16.msra.mxu0 %v2594_v55  ;;  %1701 = vmatprep.subr.bf16.mxu1 %v2595_v56  ;;  %v2676_v55 = vld [vmem:[%s3253_s29 + $0x4a0] ss:$8 sps:$4 sm:$0xff]   ;;  %v2681_v56 = vld [vmem:[%s3253_s29 + $0x1b4] ss:$8 sps:$4 sm:$0xff]  }
  0x99   : > { %1824 = vmatprep.subr.bf16.mxu0 %v2597_v57  ;;  %v2684_v57 = vld [vmem:[%s3253_s29 + $0x4b4] ss:$8 sps:$4 sm:$0xff]  }
  0x9b   : > { %1702 = vmatpush1.bf16.msra.mxu1 %v2599_v58  ;;  %v2679_v58 = vld [vmem:[%s3253_s29 + $0x1b0] ss:$8 sps:$4 sm:$0xff]  }
  0x9c   : > { %1825 = vmatpush1.bf16.msra.mxu0 %v2600_v59  ;;  %1703 = vmatprep.subr.bf16.mxu1 %v2601_v60  ;;  %v2682_v59 = vld [vmem:[%s3253_s29 + $0x4b0] ss:$8 sps:$4 sm:$0xff]   ;;  %v2687_v60 = vld [vmem:[%s3253_s29 + $0x1c4] ss:$8 sps:$4 sm:$0xff]  }
  0x9d   : > { %1826 = vmatprep.subr.bf16.mxu0 %v2603_v61  ;;  %v2690_v61 = vld [vmem:[%s3253_s29 + $0x4c4] ss:$8 sps:$4 sm:$0xff]  }
  0x9f   : > { %1704 = vmatpush1.bf16.msra.mxu1 %v2605_v62  ;;  %v2685_v62 = vld [vmem:[%s3253_s29 + $0x1c0] ss:$8 sps:$4 sm:$0xff]  }
  0xa0   : > { %1827 = vmatpush1.bf16.msra.mxu0 %v2606_v63  ;;  %1705 = vmatprep.subr.bf16.mxu1 %v2607_v0  ;;  %v2688_v63 = vld [vmem:[%s3253_s29 + $0x4c0] ss:$8 sps:$4 sm:$0xff]   ;;  %v2693_v0 = vld [vmem:[%s3253_s29 + $0x1d4] ss:$8 sps:$4 sm:$0xff]  }
  0xa1   : > { %1828 = vmatprep.subr.bf16.mxu0 %v2609_v1  ;;  %v2696_v1 = vld [vmem:[%s3253_s29 + $0x4d4] ss:$8 sps:$4 sm:$0xff]  }
  0xa3   : > { %1706 = vmatpush1.bf16.msra.mxu1 %v2611_v2  ;;  %v2691_v2 = vld [vmem:[%s3253_s29 + $0x1d0] ss:$8 sps:$4 sm:$0xff]  }
  0xa4   : > { %1829 = vmatpush1.bf16.msra.mxu0 %v2612_v3  ;;  %1716 = vmatprep.subr.bf16.mxu1 %v2615_v4  ;;  %v2694_v3 = vld [vmem:[%s3253_s29 + $0x4d0] ss:$8 sps:$4 sm:$0xff]   ;;  %v2699_v4 = vld [vmem:[%s3253_s29 + $0x1e4] ss:$8 sps:$4 sm:$0xff]  }
  0xa5   : > { %1839 = vmatprep.subr.bf16.mxu0 %v2618_v7  ;;  %v2700_v7 = vld [vmem:[%s3253_s29 + $0x4e0] ss:$8 sps:$4 sm:$0xff]  }
  0xa6   : > { %1708 = vmatmul.mubr.bf16.vlgmr.msra.gmra.mrb[0].mxu1 %v541_v10  ;;  %v2703_v10 = vld [vmem:[%s3253_s29 + $0x1f0] ss:$8 sps:$4 sm:$0xff]  }
  0xa7   : > { %1831 = vmatmul.mubr.bf16.vlgmr.msra.gmra.mrb[0].mxu0 %v547_v11  ;;  %1717 = vmatpush1.bf16.msra.mxu1 %v2613_v8  ;;  %v2705_v8 = vld [vmem:[%s3253_s29 + $0x1f4] ss:$8 sps:$4 sm:$0xff]   ;;  %v2706_v11 = vld [vmem:[%s3253_s29 + $0x4f0] ss:$8 sps:$4 sm:$0xff]  }
  0xa8   : > { %1840 = vmatpush1.bf16.msra.mxu0 %v2616_v9  ;;  %1718 = vmatprep.subr.bf16.mxu1 %v2621_v12  ;;  %v2708_v9 = vld [vmem:[%s3253_s29 + $0x4f4] ss:$8 sps:$4 sm:$0xff]   ;;  %v2711_v12 = vld [vmem:[%s3253_s29 + $0x204] ss:$8 sps:$4 sm:$0xff]  }
  0xa9   : > { %1841 = vmatprep.subr.bf16.mxu0 %v2624_v13  ;;  %1748 = vmatprep.mubr.bf16.mxu1 %v544_v36  ;;  %v305_v13 = vld [vmem:[%s3321_s1 + $0x10] sm:$0xff]  ;;  %v2735_v36 = vld [vmem:[%s3253_s29 + $0x244] ss:$8 sps:$4 sm:$0xff]  }
  0xaa   : > { %1871 = vmatprep.mubr.bf16.mxu0 %v550_v41  ;;  %v2744_v41 = vld [vmem:[%s3253_s29 + $0x554] ss:$8 sps:$4 sm:$0xff]  }
  0xab   : > { %1719 = vmatpush1.bf16.msra.mxu1 %v2619_v14  ;;  %v311_v14 = vld [vmem:[%s3321_s1 + $0x40] sm:$0xff] }
  0xac   : > { %1842 = vmatpush1.bf16.msra.mxu0 %v2622_v15  ;;  %1720 = vmatprep.subr.bf16.mxu1 %v2627_v16  ;;  %v2714_v15 = vld [vmem:[%s3253_s29 + $0x504] ss:$8 sps:$4 sm:$0xff]   ;;  %v2709_v16 = vld [vmem:[%s3253_s29 + $0x200] ss:$8 sps:$4 sm:$0xff]  }
  0xad   : > { %1843 = vmatprep.subr.bf16.mxu0 %v2630_v17  ;;  %v2712_v17 = vld [vmem:[%s3253_s29 + $0x500] ss:$8 sps:$4 sm:$0xff]  }
  0xaf   : > { %1721 = vmatpush1.bf16.msra.mxu1 %v2625_v18  ;;  %v543_v18 = vpack.c.bf16 %v305_v13, %v305_v13  ;;  %v2798_v13 = vld [vmem:[%s3253_s29 + $0x5e4] ss:$8 sps:$4 sm:$0xff]  }
  0xb0   : > { %1844 = vmatpush1.bf16.msra.mxu0 %v2628_v19  ;;  %1722 = vmatprep.subr.bf16.mxu1 %v2633_v20  ;;  %v549_v19 = vpack.c.bf16 %v311_v14, %v311_v14  ;;  %v2717_v20 = vld [vmem:[%s3253_s29 + $0x214] ss:$8 sps:$4 sm:$0xff]   ;;  %v2793_v14 = vld [vmem:[%s3253_s29 + $0x2e0] ss:$8 sps:$4 sm:$0xff]  }
  0xb1   : > { %1845 = vmatprep.subr.bf16.mxu0 %v2636_v21  ;;  %v2720_v21 = vld [vmem:[%s3253_s29 + $0x514] ss:$8 sps:$4 sm:$0xff]  }
  0xb3   : > { %1723 = vmatpush1.bf16.msra.mxu1 %v2631_v22  ;;  %v308_v22 = vld [vmem:[%s3321_s1 + $0x28] sm:$0xff] }
  0xb4   : > { %1846 = vmatpush1.bf16.msra.mxu0 %v2634_v23  ;;  %1724 = vmatprep.subr.bf16.mxu1 %v2639_v24  ;;  %v2715_v23 = vld [vmem:[%s3253_s29 + $0x210] ss:$8 sps:$4 sm:$0xff]   ;;  %v546_v24 = vpack.c.bf16 %v308_v22, %v308_v22  ;;  %v2807_v22 = vld [vmem:[%s3253_s29 + $0x604] ss:$8 sps:$4 sm:$0xff]  }
  0xb5   : > { %1847 = vmatprep.subr.bf16.mxu0 %v2642_v25  ;;  %v314_v25 = vld [vmem:[%s3321_s1 + $0x58] sm:$0xff] }
  0xb7   : > { %1725 = vmatpush1.bf16.msra.mxu1 %v2637_v26  ;;  %v2718_v26 = vld [vmem:[%s3253_s29 + $0x510] ss:$8 sps:$4 sm:$0xff]  }
  0xb8   : > { %1848 = vmatpush1.bf16.msra.mxu0 %v2640_v27  ;;  %1726 = vmatprep.subr.bf16.mxu1 %v2645_v28  ;;  %v2723_v27 = vld [vmem:[%s3253_s29 + $0x224] ss:$8 sps:$4 sm:$0xff]   ;;  %v552_v28 = vpack.c.bf16 %v314_v25, %v314_v25 }
  0xb9   : > { %1849 = vmatprep.subr.bf16.mxu0 %v2648_v29  ;;  %v2726_v29 = vld [vmem:[%s3253_s29 + $0x524] ss:$8 sps:$4 sm:$0xff]  }
  0xbb   : > { %1727 = vmatpush1.bf16.msra.mxu1 %v2643_v30  ;;  %v2721_v30 = vld [vmem:[%s3253_s29 + $0x220] ss:$8 sps:$4 sm:$0xff]  }
  0xbc   : > { %1850 = vmatpush1.bf16.msra.mxu0 %v2646_v31  ;;  %1728 = vmatprep.subr.bf16.mxu1 %v2651_v32  ;;  %v2724_v31 = vld [vmem:[%s3253_s29 + $0x520] ss:$8 sps:$4 sm:$0xff]   ;;  %v2729_v32 = vld [vmem:[%s3253_s29 + $0x234] ss:$8 sps:$4 sm:$0xff]  }
  0xbd   : > { %1851 = vmatprep.subr.bf16.mxu0 %v2654_v33  ;;  %v2732_v33 = vld [vmem:[%s3253_s29 + $0x534] ss:$8 sps:$4 sm:$0xff]  }
  0xbf   : > { %1729 = vmatpush1.bf16.msra.mxu1 %v2649_v35  ;;  %v2730_v35 = vld [vmem:[%s3253_s29 + $0x530] ss:$8 sps:$4 sm:$0xff]  }
  0xc0   : > { %1852 = vmatpush1.bf16.msra.mxu0 %v2652_v37  ;;  %1730 = vmatprep.subr.bf16.mxu1 %v2657_v39  ;;  %v2738_v37 = vld [vmem:[%s3253_s29 + $0x544] ss:$8 sps:$4 sm:$0xff]   ;;  %v2736_v39 = vld [vmem:[%s3253_s29 + $0x540] ss:$8 sps:$4 sm:$0xff]  }
  0xc1   : > { %1853 = vmatprep.subr.bf16.mxu0 %v2660_v40  ;;  %v2741_v40 = vld [vmem:[%s3253_s29 + $0x254] ss:$8 sps:$4 sm:$0xff]  }
  0xc3   : > { %1731 = vmatpush1.bf16.msra.mxu1 %v2655_v42  ;;  %v2739_v42 = vld [vmem:[%s3253_s29 + $0x250] ss:$8 sps:$4 sm:$0xff]  }
  0xc4   : > { %1854 = vmatpush1.bf16.msra.mxu0 %v2658_v43  ;;  %1732 = vmatprep.subr.bf16.mxu1 %v2663_v44  ;;  %v2742_v43 = vld [vmem:[%s3253_s29 + $0x550] ss:$8 sps:$4 sm:$0xff]   ;;  %v2747_v44 = vld [vmem:[%s3253_s29 + $0x264] ss:$8 sps:$4 sm:$0xff]  }
  0xc5   : > { %1855 = vmatprep.subr.bf16.mxu0 %v2666_v45  ;;  %v2750_v45 = vld [vmem:[%s3253_s29 + $0x564] ss:$8 sps:$4 sm:$0xff]  }
  0xc7   : > { %1733 = vmatpush1.bf16.msra.mxu1 %v2661_v46  ;;  %v2745_v46 = vld [vmem:[%s3253_s29 + $0x260] ss:$8 sps:$4 sm:$0xff]  }
  0xc8   : > { %1856 = vmatpush1.bf16.msra.mxu0 %v2664_v47  ;;  %1734 = vmatprep.subr.bf16.mxu1 %v2669_v48  ;;  %v2748_v47 = vld [vmem:[%s3253_s29 + $0x560] ss:$8 sps:$4 sm:$0xff]   ;;  %v2753_v48 = vld [vmem:[%s3253_s29 + $0x274] ss:$8 sps:$4 sm:$0xff]  }
  0xc9   : > { %1857 = vmatprep.subr.bf16.mxu0 %v2672_v49  ;;  %v2756_v49 = vld [vmem:[%s3253_s29 + $0x574] ss:$8 sps:$4 sm:$0xff]  }
  0xcb   : > { %1735 = vmatpush1.bf16.msra.mxu1 %v2667_v50  ;;  %v2751_v50 = vld [vmem:[%s3253_s29 + $0x270] ss:$8 sps:$4 sm:$0xff]  }
  0xcc   : > { %1858 = vmatpush1.bf16.msra.mxu0 %v2670_v51  ;;  %1736 = vmatprep.subr.bf16.mxu1 %v2675_v52  ;;  %v2754_v51 = vld [vmem:[%s3253_s29 + $0x570] ss:$8 sps:$4 sm:$0xff]   ;;  %v2759_v52 = vld [vmem:[%s3253_s29 + $0x284] ss:$8 sps:$4 sm:$0xff]  }
  0xcd   : > { %1859 = vmatprep.subr.bf16.mxu0 %v2678_v53  ;;  %v2762_v53 = vld [vmem:[%s3253_s29 + $0x584] ss:$8 sps:$4 sm:$0xff]  }
  0xcf   : > { %1737 = vmatpush1.bf16.msra.mxu1 %v2673_v54  ;;  %v2757_v54 = vld [vmem:[%s3253_s29 + $0x280] ss:$8 sps:$4 sm:$0xff]  }
  0xd0   : > { %1860 = vmatpush1.bf16.msra.mxu0 %v2676_v55  ;;  %1738 = vmatprep.subr.bf16.mxu1 %v2681_v56  ;;  %v2760_v55 = vld [vmem:[%s3253_s29 + $0x580] ss:$8 sps:$4 sm:$0xff]   ;;  %v2765_v56 = vld [vmem:[%s3253_s29 + $0x294] ss:$8 sps:$4 sm:$0xff]  }
  0xd1   : > { %1861 = vmatprep.subr.bf16.mxu0 %v2684_v57  ;;  %v2768_v57 = vld [vmem:[%s3253_s29 + $0x594] ss:$8 sps:$4 sm:$0xff]  }
  0xd3   : > { %1739 = vmatpush1.bf16.msra.mxu1 %v2679_v58  ;;  %v2763_v58 = vld [vmem:[%s3253_s29 + $0x290] ss:$8 sps:$4 sm:$0xff]  }
  0xd4   : > { %1862 = vmatpush1.bf16.msra.mxu0 %v2682_v59  ;;  %1740 = vmatprep.subr.bf16.mxu1 %v2687_v60  ;;  %v2766_v59 = vld [vmem:[%s3253_s29 + $0x590] ss:$8 sps:$4 sm:$0xff]   ;;  %v2771_v60 = vld [vmem:[%s3253_s29 + $0x2a4] ss:$8 sps:$4 sm:$0xff]  }
  0xd5   : > { %1863 = vmatprep.subr.bf16.mxu0 %v2690_v61  ;;  %v2774_v61 = vld [vmem:[%s3253_s29 + $0x5a4] ss:$8 sps:$4 sm:$0xff]  }
  0xd7   : > { %1741 = vmatpush1.bf16.msra.mxu1 %v2685_v62  ;;  %v2769_v62 = vld [vmem:[%s3253_s29 + $0x2a0] ss:$8 sps:$4 sm:$0xff]  }
  0xd8   : > { %1864 = vmatpush1.bf16.msra.mxu0 %v2688_v63  ;;  %1742 = vmatprep.subr.bf16.mxu1 %v2693_v0  ;;  %v2772_v63 = vld [vmem:[%s3253_s29 + $0x5a0] ss:$8 sps:$4 sm:$0xff]   ;;  %v2777_v0 = vld [vmem:[%s3253_s29 + $0x2b4] ss:$8 sps:$4 sm:$0xff]  }
  0xd9   : > { %1865 = vmatprep.subr.bf16.mxu0 %v2696_v1  ;;  %v2780_v1 = vld [vmem:[%s3253_s29 + $0x5b4] ss:$8 sps:$4 sm:$0xff]  }
  0xdb   : > { %1743 = vmatpush1.bf16.msra.mxu1 %v2691_v2  ;;  %v2775_v2 = vld [vmem:[%s3253_s29 + $0x2b0] ss:$8 sps:$4 sm:$0xff]  }
  0xdc   : > { %1866 = vmatpush1.bf16.msra.mxu0 %v2694_v3  ;;  %1744 = vmatprep.subr.bf16.mxu1 %v2699_v4  ;;  %v2778_v3 = vld [vmem:[%s3253_s29 + $0x5b0] ss:$8 sps:$4 sm:$0xff]   ;;  %v2783_v4 = vld [vmem:[%s3253_s29 + $0x2c4] ss:$8 sps:$4 sm:$0xff]  }
  0xdd   : > { %1867 = vmatprep.subr.bf16.mxu0 %v2702_v5  ;;  %v2786_v5 = vld [vmem:[%s3253_s29 + $0x5c4] ss:$8 sps:$4 sm:$0xff]  }
  0xdf   : > { %1745 = vmatpush1.bf16.msra.mxu1 %v2697_v6  ;;  %v2781_v6 = vld [vmem:[%s3253_s29 + $0x2c0] ss:$8 sps:$4 sm:$0xff]  }
  0xe0   : > { %1868 = vmatpush1.bf16.msra.mxu0 %v2700_v7  ;;  %1746 = vmatprep.subr.bf16.mxu1 %v2705_v8  ;;  %v2784_v7 = vld [vmem:[%s3253_s29 + $0x5c0] ss:$8 sps:$4 sm:$0xff]   ;;  %v2789_v8 = vld [vmem:[%s3253_s29 + $0x2d4] ss:$8 sps:$4 sm:$0xff]  }
  0xe1   : > { %1869 = vmatprep.subr.bf16.mxu0 %v2708_v9  ;;  %v2792_v9 = vld [vmem:[%s3253_s29 + $0x5d4] ss:$8 sps:$4 sm:$0xff]  }
  0xe3   : > { %1747 = vmatpush1.bf16.msra.mxu1 %v2703_v10  ;;  %v2787_v10 = vld [vmem:[%s3253_s29 + $0x2d0] ss:$8 sps:$4 sm:$0xff]  }
  0xe4   : > { %1870 = vmatpush1.bf16.msra.mxu0 %v2706_v11  ;;  %1757 = vmatprep.subr.bf16.mxu1 %v2711_v12  ;;  %v2790_v11 = vld [vmem:[%s3253_s29 + $0x5d0] ss:$8 sps:$4 sm:$0xff]   ;;  %v2795_v12 = vld [vmem:[%s3253_s29 + $0x2e4] ss:$8 sps:$4 sm:$0xff]  }
  0xe5   : > { %1880 = vmatprep.subr.bf16.mxu0 %v2714_v15  ;;  %v2796_v15 = vld [vmem:[%s3253_s29 + $0x5e0] ss:$8 sps:$4 sm:$0xff]  }
  0xe6   : > { %1749 = vmatmul.mubr.bf16.vlgmr.msra.gmra.mrb[0].mxu1 %v543_v18  ;;  %v2799_v18 = vld [vmem:[%s3253_s29 + $0x2f0] ss:$8 sps:$4 sm:$0xff]  }
  0xe7   : > { %1872 = vmatmul.mubr.bf16.vlgmr.msra.gmra.mrb[0].mxu0 %v549_v19  ;;  %1758 = vmatpush1.bf16.msra.mxu1 %v2709_v16  ;;  %v2801_v16 = vld [vmem:[%s3253_s29 + $0x2f4] ss:$8 sps:$4 sm:$0xff]   ;;  %v2802_v19 = vld [vmem:[%s3253_s29 + $0x5f0] ss:$8 sps:$4 sm:$0xff]  }
  0xe8   : > { %1881 = vmatpush1.bf16.msra.mxu0 %v2712_v17  ;;  %1759 = vmatprep.subr.bf16.mxu1 %v2717_v20  ;;  %v2804_v17 = vld [vmem:[%s3253_s29 + $0x5f4] ss:$8 sps:$4 sm:$0xff]   ;;  %v307_v20 = vld [vmem:[%s3321_s1 + $0x20] sm:$0xff] }
  0xe9   : > { %1882 = vmatprep.subr.bf16.mxu0 %v2720_v21  ;;  %1789 = vmatprep.mubr.bf16.mxu1 %v546_v24  ;;  %v313_v21 = vld [vmem:[%s3321_s1 + $0x50] sm:$0xff]  ;;  %v545_v24 = vpack.c.bf16 %v307_v20, %v307_v20 }
  0xea   : > { %1912 = vmatprep.mubr.bf16.mxu0 %v552_v28  ;;  %v551_v25 = vpack.c.bf16 %v313_v21, %v313_v21  ;;  %v2810_v28 = vld [vmem:[%s3253_s29 + $0x614] ss:$8 sps:$4 sm:$0xff]  }
  0xeb   : > { %1760 = vmatpush1.bf16.msra.mxu1 %v2715_v23  ;;  %v316_v23 = vld [vmem:[%s3321_s1 + $0x68] sm:$0xff] }
  0xec   : > { %1883 = vmatpush1.bf16.msra.mxu0 %v2718_v26  ;;  %1761 = vmatprep.subr.bf16.mxu1 %v2723_v27  ;;  %v2805_v26 = vld [vmem:[%s3253_s29 + $0x600] ss:$8 sps:$4 sm:$0xff]   ;;  %v554_v27 = vpack.c.bf16 %v316_v23, %v316_v23 }
  0xed   : > { %1884 = vmatprep.subr.bf16.mxu0 %v2726_v29  ;;  %v2808_v29 = vld [vmem:[%s3253_s29 + $0x610] ss:$8 sps:$4 sm:$0xff]  }
  0xef   : > { %1762 = vmatpush1.bf16.msra.mxu1 %v2721_v30  ;;  %v2813_v30 = vld [vmem:[%s3253_s29 + $0x624] ss:$8 sps:$4 sm:$0xff]  }
  0xf0   : > { %1885 = vmatpush1.bf16.msra.mxu0 %v2724_v31  ;;  %1763 = vmatprep.subr.bf16.mxu1 %v2729_v32  ;;  %v2811_v31 = vld [vmem:[%s3253_s29 + $0x620] ss:$8 sps:$4 sm:$0xff]   ;;  %v2816_v32 = vld [vmem:[%s3253_s29 + $0x634] ss:$8 sps:$4 sm:$0xff]  }
  0xf1   : > { %1886 = vmatprep.subr.bf16.mxu0 %v2732_v33  ;;  %v2814_v33 = vld [vmem:[%s3253_s29 + $0x630] ss:$8 sps:$4 sm:$0xff]  }
  0xf3   : > { %1764 = vmatpush1.bf16.msra.mxu1 %v2727_v34  ;;  %v2819_v34 = vld [vmem:[%s3253_s29 + $0x644] ss:$8 sps:$4 sm:$0xff]  }
  0xf4   : > { %1887 = vmatpush1.bf16.msra.mxu0 %v2730_v35  ;;  %1765 = vmatprep.subr.bf16.mxu1 %v2735_v36  ;;  %v2817_v35 = vld [vmem:[%s3253_s29 + $0x640] ss:$8 sps:$4 sm:$0xff]   ;;  %v2822_v36 = vld [vmem:[%s3253_s29 + $0x654] ss:$8 sps:$4 sm:$0xff]  }
  0xf5   : > { %1888 = vmatprep.subr.bf16.mxu0 %v2738_v37  ;;  %v2820_v37 = vld [vmem:[%s3253_s29 + $0x650] ss:$8 sps:$4 sm:$0xff]  }
  0xf7   : > { %1766 = vmatpush1.bf16.msra.mxu1 %v2733_v38  ;;  %v2825_v38 = vld [vmem:[%s3253_s29 + $0x664] ss:$8 sps:$4 sm:$0xff]  }
  0xf8   : > { %1889 = vmatpush1.bf16.msra.mxu0 %v2736_v39  ;;  %1767 = vmatprep.subr.bf16.mxu1 %v2741_v40  ;;  %v2823_v39 = vld [vmem:[%s3253_s29 + $0x660] ss:$8 sps:$4 sm:$0xff]   ;;  %v2828_v40 = vld [vmem:[%s3253_s29 + $0x674] ss:$8 sps:$4 sm:$0xff]  }
  0xf9   : > { %1890 = vmatprep.subr.bf16.mxu0 %v2744_v41  ;;  %v2826_v41 = vld [vmem:[%s3253_s29 + $0x670] ss:$8 sps:$4 sm:$0xff]  }
  0xfb   : > { %1768 = vmatpush1.bf16.msra.mxu1 %v2739_v42  ;;  %v2831_v42 = vld [vmem:[%s3253_s29 + $0x684] ss:$8 sps:$4 sm:$0xff]  }
  0xfc   : > { %1891 = vmatpush1.bf16.msra.mxu0 %v2742_v43  ;;  %1769 = vmatprep.subr.bf16.mxu1 %v2747_v44  ;;  %v2829_v43 = vld [vmem:[%s3253_s29 + $0x680] ss:$8 sps:$4 sm:$0xff]   ;;  %v2834_v44 = vld [vmem:[%s3253_s29 + $0x694] ss:$8 sps:$4 sm:$0xff]  }
  0xfd   : > { %1892 = vmatprep.subr.bf16.mxu0 %v2750_v45  ;;  %v2832_v45 = vld [vmem:[%s3253_s29 + $0x690] ss:$8 sps:$4 sm:$0xff]  }
  0xff   : > { %1770 = vmatpush1.bf16.msra.mxu1 %v2745_v46  ;;  %v2837_v46 = vld [vmem:[%s3253_s29 + $0x6a4] ss:$8 sps:$4 sm:$0xff]  }
 0x100   : > { %1893 = vmatpush1.bf16.msra.mxu0 %v2748_v47  ;;  %1771 = vmatprep.subr.bf16.mxu1 %v2753_v48  ;;  %v2835_v47 = vld [vmem:[%s3253_s29 + $0x6a0] ss:$8 sps:$4 sm:$0xff]   ;;  %v2840_v48 = vld [vmem:[%s3253_s29 + $0x6b4] ss:$8 sps:$4 sm:$0xff]  }
 0x101   : > { %1894 = vmatprep.subr.bf16.mxu0 %v2756_v49  ;;  %v2838_v49 = vld [vmem:[%s3253_s29 + $0x6b0] ss:$8 sps:$4 sm:$0xff]  }
 0x103   : > { %1772 = vmatpush1.bf16.msra.mxu1 %v2751_v50  ;;  %v2843_v50 = vld [vmem:[%s3253_s29 + $0x6c4] ss:$8 sps:$4 sm:$0xff]  }
 0x104   : > { %1895 = vmatpush1.bf16.msra.mxu0 %v2754_v51  ;;  %1773 = vmatprep.subr.bf16.mxu1 %v2759_v52  ;;  %v2841_v51 = vld [vmem:[%s3253_s29 + $0x6c0] ss:$8 sps:$4 sm:$0xff]   ;;  %v2846_v52 = vld [vmem:[%s3253_s29 + $0x6d4] ss:$8 sps:$4 sm:$0xff]  }
 0x105   : > { %1896 = vmatprep.subr.bf16.mxu0 %v2762_v53  ;;  %v2844_v53 = vld [vmem:[%s3253_s29 + $0x6d0] ss:$8 sps:$4 sm:$0xff]  }
 0x107   : > { %1774 = vmatpush1.bf16.msra.mxu1 %v2757_v54  ;;  %v2849_v54 = vld [vmem:[%s3253_s29 + $0x6e4] ss:$8 sps:$4 sm:$0xff]  }
 0x108   : > { %1897 = vmatpush1.bf16.msra.mxu0 %v2760_v55  ;;  %1775 = vmatprep.subr.bf16.mxu1 %v2765_v56  ;;  %v2847_v55 = vld [vmem:[%s3253_s29 + $0x6e0] ss:$8 sps:$4 sm:$0xff]   ;;  %v2852_v56 = vld [vmem:[%s3253_s29 + $0x6f4] ss:$8 sps:$4 sm:$0xff]  }
 0x109   : > { %1898 = vmatprep.subr.bf16.mxu0 %v2768_v57  ;;  %v2850_v57 = vld [vmem:[%s3253_s29 + $0x6f0] ss:$8 sps:$4 sm:$0xff]  }
 0x10b   : > { %1776 = vmatpush1.bf16.msra.mxu1 %v2763_v58  ;;  %v315_v58 = vld [vmem:[%s3321_s1 + $0x60] sm:$0xff] }
 0x10c   : > { %1899 = vmatpush1.bf16.msra.mxu0 %v2766_v59  ;;  %1777 = vmatprep.subr.bf16.mxu1 %v2771_v60  ;;  %v553_v59 = vpack.c.bf16 %v315_v58, %v315_v58 }
 0x10d   : > { %1900 = vmatprep.subr.bf16.mxu0 %v2774_v61 }
 0x10f   : > { %1778 = vmatpush1.bf16.msra.mxu1 %v2769_v62 }
 0x110   : > { %1901 = vmatpush1.bf16.msra.mxu0 %v2772_v63  ;;  %1779 = vmatprep.subr.bf16.mxu1 %v2777_v0 }
 0x111   : > { %1902 = vmatprep.subr.bf16.mxu0 %v2780_v1 }
 0x113   : > { %1780 = vmatpush1.bf16.msra.mxu1 %v2775_v2 }
 0x114   : > { %1903 = vmatpush1.bf16.msra.mxu0 %v2778_v3  ;;  %1781 = vmatprep.subr.bf16.mxu1 %v2783_v4 }
 0x115   : > { %1904 = vmatprep.subr.bf16.mxu0 %v2786_v5 }
 0x117   : > { %1782 = vmatpush1.bf16.msra.mxu1 %v2781_v6 }
 0x118   : > { %1905 = vmatpush1.bf16.msra.mxu0 %v2784_v7  ;;  %1783 = vmatprep.subr.bf16.mxu1 %v2789_v8 }
 0x119   : > { %1906 = vmatprep.subr.bf16.mxu0 %v2792_v9 }
 0x11b   : > { %1784 = vmatpush1.bf16.msra.mxu1 %v2787_v10 }
 0x11c   : > { %1907 = vmatpush1.bf16.msra.mxu0 %v2790_v11  ;;  %1785 = vmatprep.subr.bf16.mxu1 %v2795_v12 }
 0x11d   : > { %1908 = vmatprep.subr.bf16.mxu0 %v2798_v13 }
 0x11f   : > { %1786 = vmatpush1.bf16.msra.mxu1 %v2793_v14 }
 0x120   : > { %1909 = vmatpush1.bf16.msra.mxu0 %v2796_v15  ;;  %1787 = vmatprep.subr.bf16.mxu1 %v2801_v16 }
 0x121   : > { %1910 = vmatprep.subr.bf16.mxu0 %v2804_v17 }
 0x123   : > { %1788 = vmatpush1.bf16.msra.mxu1 %v2799_v18 }
 0x124   : > { %1911 = vmatpush1.bf16.msra.mxu0 %v2802_v19 }
 0x125   : > { %1921 = vmatprep.subr.bf16.mxu0 %v2807_v22 }
 0x126   : > { %1790 = vmatmul.mubr.bf16.vlgmr.msra.gmra.mrb[0].mxu1 %v545_v24 }
 0x127   : > { %1913 = vmatmul.mubr.bf16.vlgmr.msra.gmra.mrb[0].mxu0 %v551_v25 }
 0x128   : > { %1922 = vmatpush1.bf16.msra.mxu0 %v2805_v26  ;;  %1953 = vmatprep.mubr.bf16.mxu0 %v554_v27 }
 0x129   : > { %1923 = vmatprep.subr.bf16.mxu0 %v2810_v28 }
 0x12c   : > { %1924 = vmatpush1.bf16.msra.mxu0 %v2808_v29 }
 0x12d   : > { %1925 = vmatprep.subr.bf16.mxu0 %v2813_v30 }
 0x130   : > { %1926 = vmatpush1.bf16.msra.mxu0 %v2811_v31 }
 0x131   : > { %1927 = vmatprep.subr.bf16.mxu0 %v2816_v32 }
 0x134   : > { %1928 = vmatpush1.bf16.msra.mxu0 %v2814_v33 }
 0x135   : > { %1929 = vmatprep.subr.bf16.mxu0 %v2819_v34 }
 0x138   : > { %1930 = vmatpush1.bf16.msra.mxu0 %v2817_v35 }
 0x139   : > { %1931 = vmatprep.subr.bf16.mxu0 %v2822_v36 }
 0x13c   : > { %1932 = vmatpush1.bf16.msra.mxu0 %v2820_v37 }
 0x13d   : > { %1933 = vmatprep.subr.bf16.mxu0 %v2825_v38 }
 0x140   : > { %1934 = vmatpush1.bf16.msra.mxu0 %v2823_v39 }
 0x141   : > { %1935 = vmatprep.subr.bf16.mxu0 %v2828_v40 }
 0x144   : > { %1936 = vmatpush1.bf16.msra.mxu0 %v2826_v41 }
 0x145   : > { %1937 = vmatprep.subr.bf16.mxu0 %v2831_v42 }
 0x148   : > { %1938 = vmatpush1.bf16.msra.mxu0 %v2829_v43 }
 0x149   : > { %1939 = vmatprep.subr.bf16.mxu0 %v2834_v44 }
 0x14c   : > { %1940 = vmatpush1.bf16.msra.mxu0 %v2832_v45 }
 0x14d   : > { %1941 = vmatprep.subr.bf16.mxu0 %v2837_v46 }
 0x150   : > { %1942 = vmatpush1.bf16.msra.mxu0 %v2835_v47 }
 0x151   : > { %1943 = vmatprep.subr.bf16.mxu0 %v2840_v48 }
 0x154   : > { %1944 = vmatpush1.bf16.msra.mxu0 %v2838_v49 }
 0x155   : > { %1945 = vmatprep.subr.bf16.mxu0 %v2843_v50 }
 0x158   : > { %1946 = vmatpush1.bf16.msra.mxu0 %v2841_v51 }
 0x159   : > { %1947 = vmatprep.subr.bf16.mxu0 %v2846_v52 }
 0x15c   : > { %1948 = vmatpush1.bf16.msra.mxu0 %v2844_v53 }
 0x15d   : > { %1949 = vmatprep.subr.bf16.mxu0 %v2849_v54 }
 0x160   : > { %1950 = vmatpush1.bf16.msra.mxu0 %v2847_v55 }
 0x161   : > { %1951 = vmatprep.subr.bf16.mxu0 %v2852_v56 }
 0x164   : > { %1952 = vmatpush1.bf16.msra.mxu0 %v2850_v57 }
 0x167   : > { %1954 = vmatmul.mubr.bf16.vlgmr.msra.gmra.mrb[0].mxu0 %v553_v59 }
 0x1f9   : > { %v1791_v60 = vpop.f32.mrb[0].mxu1 }
 0x1fa   : > { %v1793_v61 = vpop.f32.mrb[1].mxu1 }
 0x1fb   : > { %v1795_v62 = vpop.f32.mrb[2].mxu1 }
 0x1fc   : > { %v1796_v63 = vpop.f32.mrb[3].mxu1 }
 0x237   : > { %1965 = sbr.rel (%p2383_p4) target bundleno = 575 (0x23f), region = 44 }
 0x23a   : > { %v1955_v0 = vpop.f32.mrb[0].mxu0 }
 0x23b   : > { %v2390_v1 = vadd.f32 %v1955_v0, %v1791_v60  ;;  %v1957_v2 = vpop.f32.mrb[1].mxu0 }
 0x23c   : > { %v2391_v3 = vadd.f32 %v1957_v2, %v1793_v61  ;;  %v1959_v4 = vpop.f32.mrb[2].mxu0 }
 0x23d   : > { %v1960_v5 = vpop.f32.mrb[3].mxu0  ;;  %1966 = vst [vmem:[%s3271_s12] sm:$0xff] (!%p2383_p4), %v2390_v1 }
 0x23e   : > { %1967 = vst [vmem:[%s3271_s12 + $0x8] sm:$0xff] %v2391_v3 }
 0x23f PF: > { %p2384_p3 = scmp.le.s32.totalorder %s2991_s18, 0 }
 0x241   : > { %1971 = sbr.rel (%p2384_p3) target bundleno = 585 (0x249), region = 48 }
 0x245   : > { %v1972_v6 = vld [vmem:[%s3271_s12] sm:$0xff] (!%p2384_p3)  ;;  %v1973_v7 = vld [vmem:[%s3271_s12 + $0x8] sm:$0xff] (!%p2384_p3) }
 0x246   : > { %v1974_v8 = vadd.f32 (!%p2384_p3), %v2390_v1, %v1972_v6  ;;  %v1975_v9 = vadd.f32 (!%p2384_p3), %v2391_v3, %v1973_v7 }
 0x248   : > { %1976 = vst [vmem:[%s3271_s12] sm:$0xff] %v1974_v8  ;;  %1977 = vst [vmem:[%s3271_s12 + $0x8] sm:$0xff] %v1975_v9 }
 0x249 PF: > { %p2385_p11 = scmp.ne.s32.totalorder %s2991_s18, 6 }
 0x24a   : > { %v1986_v10 = vlaneseq (!%p2385_p11)  ;;  %v1984_v12 = vld [vmem:[%s239_s6] sm:$0x3] (!%p2385_p11) }
 0x24b   : > { %1981 = sbr.rel (%p2385_p11) target bundleno = 599 (0x257), region = 52 }
 0x24c   : > { %v1987_v11 = vshrl.u32 (!%p2385_p11), %v1986_v10, 7 }
 0x24e   : > { %v1988_v13 = vsub.s32 (!%p2385_p11), 0, %v1987_v11  ;;  %v1992_v14 = vsub.s32 (!%p2385_p11), 1, %v1987_v11 }
 0x24f   : > { %v1982_v15 = vld [vmem:[%s3271_s12] sm:$0xff] (!%p2385_p11)  ;;  %v1983_v16 = vld [vmem:[%s3271_s12 + $0x8] sm:$0xff] (!%p2385_p11) }
 0x250   : > { %v1989_v17 = vrot.slane (!%p2385_p11), %v1984_v12, %v1988_v13  ;;  %v1993_v18 = vrot.slane (!%p2385_p11), %v1984_v12, %v1992_v14 }
 0x252   : > { %v1996_v19 = vadd.f32 %v1989_v17, %v1982_v15  ;;  %v1997_v20 = vadd.f32 %v1993_v18, %v1983_v16 }
 0x254   : > { %v1998_v21 = vmax.f32 %v1996_v19, 0.0  ;;  %v1999_v22 = vmax.f32 %v1997_v20, 0.0 }
 0x256   : > { %2000 = vst [vmem:[%s3271_s12] sm:$0xff] %v1998_v21  ;;  %2001 = vst [vmem:[%s3271_s12 + $0x8] sm:$0xff] %v1999_v22 }
 0x257 PF: > { %s19_s22 = sadd.s32 1, %s3007_s22   ;;  %s3592_s26 = sld [smem:[#allocation8_spill]] }
 0x258   : > { %p16_p12 = scmp.ge.s32.totalorder %s19_s22, 16   ;;  %s3593_s12 = smov %s2971_s13 }
 0x259   : > { %s3594_s13 = smov %s2975_s14  ;;  %s3595_s14 = smov %s3202_s10 }
 0x25a   : > { %s3596_s15 = smov %s2983_s16  ;;  %s3597_s16 = smov %s2987_s17 }
 0x25b   : > { %s3598_s17 = smov %s3207_s28  ;;  %s3599_s18 = smov %s2999_s20 }
 0x25c   : > { %s3600_s19 = smov %s3003_s21  ;;  %s3601_s20 = smov %s3604_s23 }
 0x25d   : > { %s3602_s21 = smov %s3592_s26  ;;  %18 = sbr.rel (!%p16_p12) target bundleno = 11 (0xb), region = 100 }
 0x264   :  { %2032 = vsyncpa [#allocation3], 1 }
 0x265   :  { %2034 = vsyncpa [#allocation3 + $0x1], 1 }
 0x266   :  { %2035 = vsyncpa [#allocation5], 1 }
 0x267   :  { %2037 = vsyncpa [#allocation5 + $0x1], 1 }

</bundles_post_ra>
